<compile_context>
chip_gen: v6e
topology: v6e:2x2x1
jax: 0.10.0
libtpu: 0.0.40
codegen_flags: <defaults>
</compile_context>

<pallas_src>
import jax
import jax.numpy as jnp
from jax.experimental import pallas as pl
from jax.experimental.pallas import tpu as pltpu

# ---------------- configuration ----------------
HIDDEN = 32
NUM_HEADS = 4
HEAD_DIM = HIDDEN // NUM_HEADS          # 8
ALL_HEAD = NUM_HEADS * HEAD_DIM         # 32
SEQ = 8
BATCH = 2
MAX_REL_POS = 8
ATT_SPAN = MAX_REL_POS                  # pos_ebd_size
TWO_SPAN = 2 * ATT_SPAN                 # 16
POS_ATT_TYPE = ("c2p", "p2c")
SCALE_FACTOR = 1 + ("c2p" in POS_ATT_TYPE) + ("p2c" in POS_ATT_TYPE)  # 3
INV_SCALE = 1.0 / float((HEAD_DIM * SCALE_FACTOR) ** 0.5)
MASK_NEG = -1e30


# ---------------- Pallas kernel (single invocation, no grid) ----------------
def _fused_attn_kernel(x_ref, w_ref, b_ref, selc_ref, selp_ref, mask_ref, o_ref):
    """Whole forward in one step.

    x_ref    : [B*N + 2S, HIDDEN] bf16  hidden rows (all batches), then rel_embedding rows
    w_ref    : [HIDDEN, 3*AH]     bf16  pre-transposed concat of Wq / Wk / Wv
    b_ref    : [1, 3*AH]          f32   concat of bq / bk / bv
    selc_ref : [B*N, B*N, 2S]     f32   selc[r,c,s] = (c2p_pos[r%N, c%N] == s)
    selp_ref : [B*N, B*N, 2S]     f32   selp[r,c,s] = (p2c_pos[c%N, r%N] == s)
    mask_ref : [B*N, B*N]         f32   additive bias: 0 within-batch & allowed, -1e30 else
    o_ref    : [B*N, AH]          f32   context output (wrapper reshapes to [B, N, AH])
    """
    bn = BATCH * SEQ
    ah = ALL_HEAD
    d = HEAD_DIM

    # Fused q/k/v + positional projections: one MXU matmul (bf16 in, f32 accumulate).
    proj = (jnp.dot(x_ref[...], w_ref[...], preferred_element_type=jnp.float32)
            + b_ref[...])                                  # [BN+2S, 3*AH] f32
    projb = proj.astype(jnp.bfloat16)                      # all consumers are MXU operands

    mask_big = mask_ref[...]                               # [BN, BN]
    rmask = mask_big < jnp.float32(-1.0)                   # masked / cross-batch slots
    selc = selc_ref[...]                                   # [BN, BN, 2S]
    selp = selp_ref[...]

    for h in range(NUM_HEADS):                             # tiny, fully unrolled
        lo = h * d
        q_h = projb[:bn, lo:lo + d]                        # [BN, D]
        kpk_h = projb[:, ah + lo:ah + lo + d]              # [BN+2S, D]  (k rows, then pos_k rows)
        k_h = kpk_h[:bn]                                   # [BN, D]
        pq_h = projb[bn:, lo:lo + d]                       # [2S, D]     pos_q (share_att_key)
        v_h = projb[:bn, 2 * ah + lo:2 * ah + lo + d]      # [BN, D]

        # Fused content-to-content + content-to-position matmul: Q_h @ [K_h; PK_h]^T
        # (contiguous column slice of proj -> no concat; contracting on last axes -> no .T).
        s_all = jax.lax.dot_general(q_h, kpk_h, (((1,), (1,)), ((), ())),
                                    preferred_element_type=jnp.float32)    # [BN, BN+2S]
        c2c = s_all[:, :bn]                                # [BN, BN] (cross-batch blocks masked)
        c2p_att = s_all[:, bn:]                            # [BN, 2S]

        # position-to-content raw scores: K_h @ PQ_h^T
        p2c_att = jax.lax.dot_general(k_h, pq_h, (((1,), (1,)), ((), ())),
                                      preferred_element_type=jnp.float32)  # [BN, 2S]

        # Relative-position gathers as one-hot contractions (selection precomputed in wrapper):
        #   bias_c2p[r,c] = c2p_att[r, c2p_pos[r%N, c%N]]
        #   bias_p2c[r,c] = p2c_att[c, p2c_pos[c%N, r%N]]
        bias_c2p = jnp.sum(selc * c2p_att[:, None, :], axis=-1)   # [BN, BN]
        bias_p2c = jnp.sum(selp * p2c_att[None, :, :], axis=-1)   # [BN, BN]

        # Single scale application + additive mask, XSoftmax, re-zero masked slots.
        scores = (c2c + bias_c2p + bias_p2c) * jnp.float32(INV_SCALE) + mask_big
        m = jnp.max(scores, axis=-1, keepdims=True)
        e = jnp.exp(scores - m)
        denom = jnp.sum(e, axis=-1, keepdims=True)
        probs = e * pl.reciprocal(denom, approx=True)              # divide on the EUP slot
        probs = jnp.where(rmask, jnp.float32(0.0), probs)

        # Cross-batch probs are exactly 0, so one context matmul covers both batches.
        ctx_h = jnp.dot(probs.astype(jnp.bfloat16), v_h,
                        preferred_element_type=jnp.float32)        # [BN, D]
        o_ref[:, lo:lo + d] = ctx_h                                # slice store (no lane concat)


# ---------------- module wrapper ----------------
def disentangled_self_attention(hidden_states, attention_mask, relative_pos,
                                rel_embeddings, params):
    B, N, _ = hidden_states.shape
    BN = B * N

    # Fused, pre-transposed projection weights (PyTorch Linear W is [out, in]); bf16 for MXU.
    wqkv = jnp.concatenate([params["wq"], params["wk"], params["wv"]],
                           axis=0).T.astype(jnp.bfloat16)                    # [HIDDEN, 3*AH]
    bqkv = jnp.concatenate([params["bq"], params["bk"], params["bv"]]
                           ).reshape(1, 3 * ALL_HEAD).astype(jnp.float32)

    # All batches' hidden rows, then the shared rel_embedding rows, in one slab.
    rel = rel_embeddings[:TWO_SPAN, :]
    x_aug = jnp.concatenate([hidden_states.reshape(BN, HIDDEN), rel],
                            axis=0).astype(jnp.bfloat16)                     # [BN+2S, HIDDEN]

    # Batch-invariant relative-position selection tensors, tiled over the batch-folded axes.
    rp = relative_pos[0]                                                     # [N, N]
    c2p_pos = jnp.clip(rp + ATT_SPAN, 0, TWO_SPAN - 1).astype(jnp.int32)
    p2c_pos = jnp.clip(-rp + ATT_SPAN, 0, TWO_SPAN - 1).astype(jnp.int32)
    selc = jax.nn.one_hot(c2p_pos, TWO_SPAN, dtype=jnp.float32)              # [N, N, 2S]
    selp = jax.nn.one_hot(p2c_pos.T, TWO_SPAN, dtype=jnp.float32)            # pre-transposed idx
    selc_big = jnp.tile(selc, (B, B, 1))                                     # [BN, BN, 2S]
    selp_big = jnp.tile(selp, (B, B, 1))

    # Block-diagonal additive mask bias over the batch-folded score matrix.
    am = attention_mask[:, 0]                                                # [B, N, N]
    ridx = jnp.arange(BN)
    bidx = ridx // N
    iidx = ridx % N
    allow_big = am[bidx[:, None], iidx[:, None], iidx[None, :]] != 0         # [BN, BN]
    same_batch = bidx[:, None] == bidx[None, :]
    mask_big = jnp.where(same_batch & allow_big,
                         jnp.float32(0.0), jnp.float32(MASK_NEG))            # [BN, BN]

    out_flat = pl.pallas_call(
        _fused_attn_kernel,
        out_shape=jax.ShapeDtypeStruct((BN, ALL_HEAD), jnp.float32),
    )(x_aug, wqkv, bqkv, selc_big, selp_big, mask_big)
    return out_flat.reshape(B, N, ALL_HEAD)                                  # [B, N, H*D]


# ---------------- pure-JAX reference (for verification) ----------------
def _reference(hidden_states, attention_mask, relative_pos, rel_embeddings, params):
    P = jax.lax.Precision.HIGHEST
    B, N, _ = hidden_states.shape

    def lin(x, w, b):
        return jnp.matmul(x, w.T, precision=P) + b

    def t4s(x):
        b = x.shape[0]
        return (x.reshape(b, x.shape[1], NUM_HEADS, HEAD_DIM)
                .transpose(0, 2, 1, 3).reshape(-1, x.shape[1], HEAD_DIM))

    q = t4s(lin(hidden_states, params["wq"], params["bq"]))
    k = t4s(lin(hidden_states, params["wk"], params["bk"]))
    v = t4s(lin(hidden_states, params["wv"], params["bv"]))
    scale = jnp.sqrt(jnp.float32(HEAD_DIM * SCALE_FACTOR))
    scores = jnp.matmul(q, jnp.swapaxes(k, -1, -2) / scale, precision=P)

    rel = rel_embeddings[:TWO_SPAN][None]
    pos_k = jnp.tile(t4s(lin(rel, params["wk"], params["bk"])), (B, 1, 1))
    pos_q = jnp.tile(t4s(lin(rel, params["wq"], params["bq"])), (B, 1, 1))

    rp = relative_pos[:, None]  # [B,1,N,N]
    c2p_pos = jnp.clip(rp + ATT_SPAN, 0, TWO_SPAN - 1)
    p2c_pos = jnp.clip(-rp + ATT_SPAN, 0, TWO_SPAN - 1)

    c2p_att = jnp.matmul(q, jnp.swapaxes(pos_k, -1, -2), precision=P)
    idx = jnp.broadcast_to(c2p_pos, (B, NUM_HEADS, N, N)).reshape(-1, N, N)
    bias = jnp.take_along_axis(c2p_att, idx, axis=-1) / scale

    p2c_att = jnp.matmul(k, jnp.swapaxes(pos_q, -1, -2), precision=P)
    idx = jnp.broadcast_to(p2c_pos, (B, NUM_HEADS, N, N)).reshape(-1, N, N)
    bias = bias + jnp.swapaxes(jnp.take_along_axis(p2c_att, idx, axis=-1), -1, -2) / scale

    scores = (scores + bias).reshape(B, NUM_HEADS, N, N)
    rmask = attention_mask == 0
    neg = jnp.finfo(jnp.float32).min
    probs = jax.nn.softmax(jnp.where(rmask, neg, scores), axis=-1)
    probs = jnp.where(rmask, 0.0, probs)
    ctx = jnp.matmul(probs.reshape(-1, N, N), v, precision=P)
    return ctx.reshape(B, NUM_HEADS, N, HEAD_DIM).transpose(0, 2, 1, 3).reshape(B, N, ALL_HEAD)


# ---------------- main ----------------
if __name__ == "__main__":
    key = jax.random.PRNGKey(0)
    ks = jax.random.split(key, 8)
    params = {
        "wq": 0.02 * jax.random.normal(ks[0], (ALL_HEAD, HIDDEN), jnp.float32),
        "bq": 0.02 * jax.random.normal(ks[1], (ALL_HEAD,), jnp.float32),
        "wk": 0.02 * jax.random.normal(ks[2], (ALL_HEAD, HIDDEN), jnp.float32),
        "bk": 0.02 * jax.random.normal(ks[3], (ALL_HEAD,), jnp.float32),
        "wv": 0.02 * jax.random.normal(ks[4], (ALL_HEAD, HIDDEN), jnp.float32),
        "bv": 0.02 * jax.random.normal(ks[5], (ALL_HEAD,), jnp.float32),
    }
    hidden_states = jax.random.normal(ks[6], (BATCH, SEQ, HIDDEN), jnp.float32)
    rel_embeddings = 0.02 * jax.random.normal(ks[7], (2 * MAX_REL_POS, HIDDEN), jnp.float32)

    pos_ids = jnp.arange(SEQ)
    relative_pos = jnp.broadcast_to(
        (pos_ids[:, None] - pos_ids[None, :])[None], (BATCH, SEQ, SEQ)).astype(jnp.int32)

    lengths = jnp.array([SEQ, 5])
    attention_mask = (jnp.arange(SEQ)[None, None, None, :]
                      < lengths[:, None, None, None]).astype(jnp.int32)
    attention_mask = jnp.broadcast_to(attention_mask, (BATCH, 1, SEQ, SEQ))

    out = disentangled_self_attention(hidden_states, attention_mask, relative_pos,
                                      rel_embeddings, params)
    out = jax.block_until_ready(out)

    ref = _reference(hidden_states, attention_mask, relative_pos, rel_embeddings, params)
    assert out.shape == (BATCH, SEQ, ALL_HEAD), out.shape
    assert jnp.allclose(out, ref, atol=5e-3, rtol=5e-2), float(jnp.max(jnp.abs(out - ref)))
    print("KERNEL_OK")
</pallas_src>

<mosaic_0001>
module attributes {stable_mosaic.version = 11 : i64} {
  func.func @_fused_attn_kernel(%arg0: memref<32x32xbf16, #tpu.memory_space<vmem>>, %arg1: memref<32x96xbf16, #tpu.memory_space<vmem>>, %arg2: memref<1x96xf32, #tpu.memory_space<vmem>>, %arg3: memref<16x16x16xf32, #tpu.memory_space<vmem>>, %arg4: memref<16x16x16xf32, #tpu.memory_space<vmem>>, %arg5: memref<16x16xf32, #tpu.memory_space<vmem>>, %arg6: memref<16x32xf32, #tpu.memory_space<vmem>>) attributes {dimension_semantics = [], scalar_prefetch = 0 : i64, scratch_operands = 0 : i64, tpu.core_type = #tpu.core_type<tc>} {
    %c0 = arith.constant 0 : index
    %c0_0 = arith.constant 0 : index
    %0 = vector.load %arg0[%c0, %c0_0] : memref<32x32xbf16, #tpu.memory_space<vmem>>, vector<32x32xbf16>
    %c0_1 = arith.constant 0 : index
    %c0_2 = arith.constant 0 : index
    %1 = vector.load %arg1[%c0_1, %c0_2] : memref<32x96xbf16, #tpu.memory_space<vmem>>, vector<32x96xbf16>
    %cst = arith.constant dense<0.000000e+00> : vector<32x96xf32>
    %2 = tpu.matmul %0, %1, %cst {dimension_numbers = #tpu.dot_dimension_numbers<[1], [0], [0], [1], [0, 0, 1, 1], [], []>} : vector<32x32xbf16>, vector<32x96xbf16>, vector<32x96xf32> -> vector<32x96xf32>
    %c0_3 = arith.constant 0 : index
    %c0_4 = arith.constant 0 : index
    %3 = vector.load %arg2[%c0_3, %c0_4] : memref<1x96xf32, #tpu.memory_space<vmem>>, vector<1x96xf32>
    %4 = vector.broadcast %3 : vector<1x96xf32> to vector<32x96xf32>
    %5 = arith.addf %2, %4 : vector<32x96xf32>
    %6 = arith.truncf %5 : vector<32x96xf32> to vector<32x96xbf16>
    %c0_5 = arith.constant 0 : index
    %c0_6 = arith.constant 0 : index
    %7 = vector.load %arg5[%c0_5, %c0_6] : memref<16x16xf32, #tpu.memory_space<vmem>>, vector<16x16xf32>
    %cst_7 = arith.constant -1.000000e+00 : f32
    %8 = vector.broadcast %cst_7 : f32 to vector<16x16xf32>
    %9 = arith.cmpf olt, %7, %8 : vector<16x16xf32>
    %c0_8 = arith.constant 0 : index
    %c0_9 = arith.constant 0 : index
    %c0_10 = arith.constant 0 : index
    %10 = vector.load %arg3[%c0_8, %c0_9, %c0_10] : memref<16x16x16xf32, #tpu.memory_space<vmem>>, vector<16x16x16xf32>
    %c0_11 = arith.constant 0 : index
    %c0_12 = arith.constant 0 : index
    %c0_13 = arith.constant 0 : index
    %11 = vector.load %arg4[%c0_11, %c0_12, %c0_13] : memref<16x16x16xf32, #tpu.memory_space<vmem>>, vector<16x16x16xf32>
    %12 = vector.extract_strided_slice %6 {offsets = [0, 0], sizes = [16, 8], strides = [1, 1]} : vector<32x96xbf16> to vector<16x8xbf16>
    %13 = vector.extract_strided_slice %6 {offsets = [0, 32], sizes = [32, 8], strides = [1, 1]} : vector<32x96xbf16> to vector<32x8xbf16>
    %14 = vector.extract_strided_slice %13 {offsets = [0, 0], sizes = [16, 8], strides = [1, 1]} : vector<32x8xbf16> to vector<16x8xbf16>
    %15 = vector.extract_strided_slice %6 {offsets = [16, 0], sizes = [16, 8], strides = [1, 1]} : vector<32x96xbf16> to vector<16x8xbf16>
    %16 = vector.extract_strided_slice %6 {offsets = [0, 64], sizes = [16, 8], strides = [1, 1]} : vector<32x96xbf16> to vector<16x8xbf16>
    %cst_14 = arith.constant dense<0.000000e+00> : vector<16x32xf32>
    %17 = tpu.matmul %12, %13, %cst_14 {dimension_numbers = #tpu.dot_dimension_numbers<[1], [1], [0], [0], [0, 0, 1, 0], [], []>} : vector<16x8xbf16>, vector<32x8xbf16>, vector<16x32xf32> -> vector<16x32xf32>
    %18 = vector.extract_strided_slice %17 {offsets = [0, 0], sizes = [16, 16], strides = [1, 1]} : vector<16x32xf32> to vector<16x16xf32>
    %19 = vector.extract_strided_slice %17 {offsets = [0, 16], sizes = [16, 16], strides = [1, 1]} : vector<16x32xf32> to vector<16x16xf32>
    %cst_15 = arith.constant dense<0.000000e+00> : vector<16x16xf32>
    %20 = tpu.matmul %14, %15, %cst_15 {dimension_numbers = #tpu.dot_dimension_numbers<[1], [1], [0], [0], [0, 0, 1, 0], [], []>} : vector<16x8xbf16>, vector<16x8xbf16>, vector<16x16xf32> -> vector<16x16xf32>
    %21 = vector.shape_cast %19 : vector<16x16xf32> to vector<16x1x16xf32>
    %22 = vector.broadcast %21 : vector<16x1x16xf32> to vector<16x16x16xf32>
    %23 = arith.mulf %10, %22 : vector<16x16x16xf32>
    %cst_16 = arith.constant dense<0.000000e+00> : vector<16x16xf32>
    %24 = vector.multi_reduction <add>, %23, %cst_16 [2] : vector<16x16x16xf32> to vector<16x16xf32>
    %25 = vector.shape_cast %20 : vector<16x16xf32> to vector<1x16x16xf32>
    %26 = vector.broadcast %25 : vector<1x16x16xf32> to vector<16x16x16xf32>
    %27 = arith.mulf %11, %26 : vector<16x16x16xf32>
    %cst_17 = arith.constant dense<0.000000e+00> : vector<16x16xf32>
    %28 = vector.multi_reduction <add>, %27, %cst_17 [2] : vector<16x16x16xf32> to vector<16x16xf32>
    %29 = arith.addf %18, %24 : vector<16x16xf32>
    %30 = arith.addf %29, %28 : vector<16x16xf32>
    %cst_18 = arith.constant 0.204124153 : f32
    %31 = vector.broadcast %cst_18 : f32 to vector<16x16xf32>
    %32 = arith.mulf %30, %31 : vector<16x16xf32>
    %33 = arith.addf %32, %7 : vector<16x16xf32>
    %cst_19 = arith.constant dense<0xFF800000> : vector<16xf32>
    %34 = vector.multi_reduction <maximumf>, %33, %cst_19 [1] : vector<16x16xf32> to vector<16xf32>
    %35 = vector.shape_cast %34 : vector<16xf32> to vector<16x1xf32>
    %36 = vector.broadcast %35 : vector<16x1xf32> to vector<16x16xf32>
    %37 = arith.subf %33, %36 : vector<16x16xf32>
    %38 = math.exp %37 : vector<16x16xf32>
    %cst_20 = arith.constant dense<0.000000e+00> : vector<16xf32>
    %39 = vector.multi_reduction <add>, %38, %cst_20 [1] : vector<16x16xf32> to vector<16xf32>
    %40 = vector.shape_cast %39 : vector<16xf32> to vector<16x1xf32>
    %41 = tpu.reciprocal %40 {approx = true} : vector<16x1xf32> -> vector<16x1xf32>
    %42 = vector.broadcast %41 : vector<16x1xf32> to vector<16x16xf32>
    %43 = arith.mulf %38, %42 : vector<16x16xf32>
    %cst_21 = arith.constant 0.000000e+00 : f32
    %44 = vector.broadcast %cst_21 : f32 to vector<16x16xf32>
    %45 = arith.select %9, %44, %43 : vector<16x16xi1>, vector<16x16xf32>
    %46 = arith.truncf %45 : vector<16x16xf32> to vector<16x16xbf16>
    %cst_22 = arith.constant dense<0.000000e+00> : vector<16x8xf32>
    %47 = tpu.matmul %46, %16, %cst_22 {dimension_numbers = #tpu.dot_dimension_numbers<[1], [0], [0], [1], [0, 0, 1, 1], [], []>} : vector<16x16xbf16>, vector<16x8xbf16>, vector<16x8xf32> -> vector<16x8xf32>
    %c0_23 = arith.constant 0 : index
    %c0_24 = arith.constant 0 : index
    %48 = vector.load %arg6[%c0_23, %c0_24] : memref<16x32xf32, #tpu.memory_space<vmem>>, vector<16x8xf32>
    tpu.vector_store %arg6[%c0_23, %c0_24], %47 {strides = array<i32>} : memref<16x32xf32, #tpu.memory_space<vmem>>, vector<16x8xf32>,
    %49 = vector.extract_strided_slice %6 {offsets = [0, 8], sizes = [16, 8], strides = [1, 1]} : vector<32x96xbf16> to vector<16x8xbf16>
    %50 = vector.extract_strided_slice %6 {offsets = [0, 40], sizes = [32, 8], strides = [1, 1]} : vector<32x96xbf16> to vector<32x8xbf16>
    %51 = vector.extract_strided_slice %50 {offsets = [0, 0], sizes = [16, 8], strides = [1, 1]} : vector<32x8xbf16> to vector<16x8xbf16>
    %52 = vector.extract_strided_slice %6 {offsets = [16, 8], sizes = [16, 8], strides = [1, 1]} : vector<32x96xbf16> to vector<16x8xbf16>
    %53 = vector.extract_strided_slice %6 {offsets = [0, 72], sizes = [16, 8], strides = [1, 1]} : vector<32x96xbf16> to vector<16x8xbf16>
    %cst_25 = arith.constant dense<0.000000e+00> : vector<16x32xf32>
    %54 = tpu.matmul %49, %50, %cst_25 {dimension_numbers = #tpu.dot_dimension_numbers<[1], [1], [0], [0], [0, 0, 1, 0], [], []>} : vector<16x8xbf16>, vector<32x8xbf16>, vector<16x32xf32> -> vector<16x32xf32>
    %55 = vector.extract_strided_slice %54 {offsets = [0, 0], sizes = [16, 16], strides = [1, 1]} : vector<16x32xf32> to vector<16x16xf32>
    %56 = vector.extract_strided_slice %54 {offsets = [0, 16], sizes = [16, 16], strides = [1, 1]} : vector<16x32xf32> to vector<16x16xf32>
    %cst_26 = arith.constant dense<0.000000e+00> : vector<16x16xf32>
    %57 = tpu.matmul %51, %52, %cst_26 {dimension_numbers = #tpu.dot_dimension_numbers<[1], [1], [0], [0], [0, 0, 1, 0], [], []>} : vector<16x8xbf16>, vector<16x8xbf16>, vector<16x16xf32> -> vector<16x16xf32>
    %58 = vector.shape_cast %56 : vector<16x16xf32> to vector<16x1x16xf32>
    %59 = vector.broadcast %58 : vector<16x1x16xf32> to vector<16x16x16xf32>
    %60 = arith.mulf %10, %59 : vector<16x16x16xf32>
    %cst_27 = arith.constant dense<0.000000e+00> : vector<16x16xf32>
    %61 = vector.multi_reduction <add>, %60, %cst_27 [2] : vector<16x16x16xf32> to vector<16x16xf32>
    %62 = vector.shape_cast %57 : vector<16x16xf32> to vector<1x16x16xf32>
    %63 = vector.broadcast %62 : vector<1x16x16xf32> to vector<16x16x16xf32>
    %64 = arith.mulf %11, %63 : vector<16x16x16xf32>
    %cst_28 = arith.constant dense<0.000000e+00> : vector<16x16xf32>
    %65 = vector.multi_reduction <add>, %64, %cst_28 [2] : vector<16x16x16xf32> to vector<16x16xf32>
    %66 = arith.addf %55, %61 : vector<16x16xf32>
    %67 = arith.addf %66, %65 : vector<16x16xf32>
    %cst_29 = arith.constant 0.204124153 : f32
    %68 = vector.broadcast %cst_29 : f32 to vector<16x16xf32>
    %69 = arith.mulf %67, %68 : vector<16x16xf32>
    %70 = arith.addf %69, %7 : vector<16x16xf32>
    %cst_30 = arith.constant dense<0xFF800000> : vector<16xf32>
    %71 = vector.multi_reduction <maximumf>, %70, %cst_30 [1] : vector<16x16xf32> to vector<16xf32>
    %72 = vector.shape_cast %71 : vector<16xf32> to vector<16x1xf32>
    %73 = vector.broadcast %72 : vector<16x1xf32> to vector<16x16xf32>
    %74 = arith.subf %70, %73 : vector<16x16xf32>
    %75 = math.exp %74 : vector<16x16xf32>
    %cst_31 = arith.constant dense<0.000000e+00> : vector<16xf32>
    %76 = vector.multi_reduction <add>, %75, %cst_31 [1] : vector<16x16xf32> to vector<16xf32>
    %77 = vector.shape_cast %76 : vector<16xf32> to vector<16x1xf32>
    %78 = tpu.reciprocal %77 {approx = true} : vector<16x1xf32> -> vector<16x1xf32>
    %79 = vector.broadcast %78 : vector<16x1xf32> to vector<16x16xf32>
    %80 = arith.mulf %75, %79 : vector<16x16xf32>
    %cst_32 = arith.constant 0.000000e+00 : f32
    %81 = vector.broadcast %cst_32 : f32 to vector<16x16xf32>
    %82 = arith.select %9, %81, %80 : vector<16x16xi1>, vector<16x16xf32>
    %83 = arith.truncf %82 : vector<16x16xf32> to vector<16x16xbf16>
    %cst_33 = arith.constant dense<0.000000e+00> : vector<16x8xf32>
    %84 = tpu.matmul %83, %53, %cst_33 {dimension_numbers = #tpu.dot_dimension_numbers<[1], [0], [0], [1], [0, 0, 1, 1], [], []>} : vector<16x16xbf16>, vector<16x8xbf16>, vector<16x8xf32> -> vector<16x8xf32>
    %c0_34 = arith.constant 0 : index
    %c8 = arith.constant 8 : index
    %85 = vector.load %arg6[%c0_34, %c8] : memref<16x32xf32, #tpu.memory_space<vmem>>, vector<16x8xf32>
    tpu.vector_store %arg6[%c0_34, %c8], %84 {strides = array<i32>} : memref<16x32xf32, #tpu.memory_space<vmem>>, vector<16x8xf32>,
    %86 = vector.extract_strided_slice %6 {offsets = [0, 16], sizes = [16, 8], strides = [1, 1]} : vector<32x96xbf16> to vector<16x8xbf16>
    %87 = vector.extract_strided_slice %6 {offsets = [0, 48], sizes = [32, 8], strides = [1, 1]} : vector<32x96xbf16> to vector<32x8xbf16>
    %88 = vector.extract_strided_slice %87 {offsets = [0, 0], sizes = [16, 8], strides = [1, 1]} : vector<32x8xbf16> to vector<16x8xbf16>
    %89 = vector.extract_strided_slice %6 {offsets = [16, 16], sizes = [16, 8], strides = [1, 1]} : vector<32x96xbf16> to vector<16x8xbf16>
    %90 = vector.extract_strided_slice %6 {offsets = [0, 80], sizes = [16, 8], strides = [1, 1]} : vector<32x96xbf16> to vector<16x8xbf16>
    %cst_35 = arith.constant dense<0.000000e+00> : vector<16x32xf32>
    %91 = tpu.matmul %86, %87, %cst_35 {dimension_numbers = #tpu.dot_dimension_numbers<[1], [1], [0], [0], [0, 0, 1, 0], [], []>} : vector<16x8xbf16>, vector<32x8xbf16>, vector<16x32xf32> -> vector<16x32xf32>
    %92 = vector.extract_strided_slice %91 {offsets = [0, 0], sizes = [16, 16], strides = [1, 1]} : vector<16x32xf32> to vector<16x16xf32>
    %93 = vector.extract_strided_slice %91 {offsets = [0, 16], sizes = [16, 16], strides = [1, 1]} : vector<16x32xf32> to vector<16x16xf32>
    %cst_36 = arith.constant dense<0.000000e+00> : vector<16x16xf32>
    %94 = tpu.matmul %88, %89, %cst_36 {dimension_numbers = #tpu.dot_dimension_numbers<[1], [1], [0], [0], [0, 0, 1, 0], [], []>} : vector<16x8xbf16>, vector<16x8xbf16>, vector<16x16xf32> -> vector<16x16xf32>
    %95 = vector.shape_cast %93 : vector<16x16xf32> to vector<16x1x16xf32>
    %96 = vector.broadcast %95 : vector<16x1x16xf32> to vector<16x16x16xf32>
    %97 = arith.mulf %10, %96 : vector<16x16x16xf32>
    %cst_37 = arith.constant dense<0.000000e+00> : vector<16x16xf32>
    %98 = vector.multi_reduction <add>, %97, %cst_37 [2] : vector<16x16x16xf32> to vector<16x16xf32>
    %99 = vector.shape_cast %94 : vector<16x16xf32> to vector<1x16x16xf32>
    %100 = vector.broadcast %99 : vector<1x16x16xf32> to vector<16x16x16xf32>
    %101 = arith.mulf %11, %100 : vector<16x16x16xf32>
    %cst_38 = arith.constant dense<0.000000e+00> : vector<16x16xf32>
    %102 = vector.multi_reduction <add>, %101, %cst_38 [2] : vector<16x16x16xf32> to vector<16x16xf32>
    %103 = arith.addf %92, %98 : vector<16x16xf32>
    %104 = arith.addf %103, %102 : vector<16x16xf32>
    %cst_39 = arith.constant 0.204124153 : f32
    %105 = vector.broadcast %cst_39 : f32 to vector<16x16xf32>
    %106 = arith.mulf %104, %105 : vector<16x16xf32>
    %107 = arith.addf %106, %7 : vector<16x16xf32>
    %cst_40 = arith.constant dense<0xFF800000> : vector<16xf32>
    %108 = vector.multi_reduction <maximumf>, %107, %cst_40 [1] : vector<16x16xf32> to vector<16xf32>
    %109 = vector.shape_cast %108 : vector<16xf32> to vector<16x1xf32>
    %110 = vector.broadcast %109 : vector<16x1xf32> to vector<16x16xf32>
    %111 = arith.subf %107, %110 : vector<16x16xf32>
    %112 = math.exp %111 : vector<16x16xf32>
    %cst_41 = arith.constant dense<0.000000e+00> : vector<16xf32>
    %113 = vector.multi_reduction <add>, %112, %cst_41 [1] : vector<16x16xf32> to vector<16xf32>
    %114 = vector.shape_cast %113 : vector<16xf32> to vector<16x1xf32>
    %115 = tpu.reciprocal %114 {approx = true} : vector<16x1xf32> -> vector<16x1xf32>
    %116 = vector.broadcast %115 : vector<16x1xf32> to vector<16x16xf32>
    %117 = arith.mulf %112, %116 : vector<16x16xf32>
    %cst_42 = arith.constant 0.000000e+00 : f32
    %118 = vector.broadcast %cst_42 : f32 to vector<16x16xf32>
    %119 = arith.select %9, %118, %117 : vector<16x16xi1>, vector<16x16xf32>
    %120 = arith.truncf %119 : vector<16x16xf32> to vector<16x16xbf16>
    %cst_43 = arith.constant dense<0.000000e+00> : vector<16x8xf32>
    %121 = tpu.matmul %120, %90, %cst_43 {dimension_numbers = #tpu.dot_dimension_numbers<[1], [0], [0], [1], [0, 0, 1, 1], [], []>} : vector<16x16xbf16>, vector<16x8xbf16>, vector<16x8xf32> -> vector<16x8xf32>
    %c0_44 = arith.constant 0 : index
    %c16 = arith.constant 16 : index
    %122 = vector.load %arg6[%c0_44, %c16] : memref<16x32xf32, #tpu.memory_space<vmem>>, vector<16x8xf32>
    tpu.vector_store %arg6[%c0_44, %c16], %121 {strides = array<i32>} : memref<16x32xf32, #tpu.memory_space<vmem>>, vector<16x8xf32>,
    %123 = vector.extract_strided_slice %6 {offsets = [0, 24], sizes = [16, 8], strides = [1, 1]} : vector<32x96xbf16> to vector<16x8xbf16>
    %124 = vector.extract_strided_slice %6 {offsets = [0, 56], sizes = [32, 8], strides = [1, 1]} : vector<32x96xbf16> to vector<32x8xbf16>
    %125 = vector.extract_strided_slice %124 {offsets = [0, 0], sizes = [16, 8], strides = [1, 1]} : vector<32x8xbf16> to vector<16x8xbf16>
    %126 = vector.extract_strided_slice %6 {offsets = [16, 24], sizes = [16, 8], strides = [1, 1]} : vector<32x96xbf16> to vector<16x8xbf16>
    %127 = vector.extract_strided_slice %6 {offsets = [0, 88], sizes = [16, 8], strides = [1, 1]} : vector<32x96xbf16> to vector<16x8xbf16>
    %cst_45 = arith.constant dense<0.000000e+00> : vector<16x32xf32>
    %128 = tpu.matmul %123, %124, %cst_45 {dimension_numbers = #tpu.dot_dimension_numbers<[1], [1], [0], [0], [0, 0, 1, 0], [], []>} : vector<16x8xbf16>, vector<32x8xbf16>, vector<16x32xf32> -> vector<16x32xf32>
    %129 = vector.extract_strided_slice %128 {offsets = [0, 0], sizes = [16, 16], strides = [1, 1]} : vector<16x32xf32> to vector<16x16xf32>
    %130 = vector.extract_strided_slice %128 {offsets = [0, 16], sizes = [16, 16], strides = [1, 1]} : vector<16x32xf32> to vector<16x16xf32>
    %cst_46 = arith.constant dense<0.000000e+00> : vector<16x16xf32>
    %131 = tpu.matmul %125, %126, %cst_46 {dimension_numbers = #tpu.dot_dimension_numbers<[1], [1], [0], [0], [0, 0, 1, 0], [], []>} : vector<16x8xbf16>, vector<16x8xbf16>, vector<16x16xf32> -> vector<16x16xf32>
    %132 = vector.shape_cast %130 : vector<16x16xf32> to vector<16x1x16xf32>
    %133 = vector.broadcast %132 : vector<16x1x16xf32> to vector<16x16x16xf32>
    %134 = arith.mulf %10, %133 : vector<16x16x16xf32>
    %cst_47 = arith.constant dense<0.000000e+00> : vector<16x16xf32>
    %135 = vector.multi_reduction <add>, %134, %cst_47 [2] : vector<16x16x16xf32> to vector<16x16xf32>
    %136 = vector.shape_cast %131 : vector<16x16xf32> to vector<1x16x16xf32>
    %137 = vector.broadcast %136 : vector<1x16x16xf32> to vector<16x16x16xf32>
    %138 = arith.mulf %11, %137 : vector<16x16x16xf32>
    %cst_48 = arith.constant dense<0.000000e+00> : vector<16x16xf32>
    %139 = vector.multi_reduction <add>, %138, %cst_48 [2] : vector<16x16x16xf32> to vector<16x16xf32>
    %140 = arith.addf %129, %135 : vector<16x16xf32>
    %141 = arith.addf %140, %139 : vector<16x16xf32>
    %cst_49 = arith.constant 0.204124153 : f32
    %142 = vector.broadcast %cst_49 : f32 to vector<16x16xf32>
    %143 = arith.mulf %141, %142 : vector<16x16xf32>
    %144 = arith.addf %143, %7 : vector<16x16xf32>
    %cst_50 = arith.constant dense<0xFF800000> : vector<16xf32>
    %145 = vector.multi_reduction <maximumf>, %144, %cst_50 [1] : vector<16x16xf32> to vector<16xf32>
    %146 = vector.shape_cast %145 : vector<16xf32> to vector<16x1xf32>
    %147 = vector.broadcast %146 : vector<16x1xf32> to vector<16x16xf32>
    %148 = arith.subf %144, %147 : vector<16x16xf32>
    %149 = math.exp %148 : vector<16x16xf32>
    %cst_51 = arith.constant dense<0.000000e+00> : vector<16xf32>
    %150 = vector.multi_reduction <add>, %149, %cst_51 [1] : vector<16x16xf32> to vector<16xf32>
    %151 = vector.shape_cast %150 : vector<16xf32> to vector<16x1xf32>
    %152 = tpu.reciprocal %151 {approx = true} : vector<16x1xf32> -> vector<16x1xf32>
    %153 = vector.broadcast %152 : vector<16x1xf32> to vector<16x16xf32>
    %154 = arith.mulf %149, %153 : vector<16x16xf32>
    %cst_52 = arith.constant 0.000000e+00 : f32
    %155 = vector.broadcast %cst_52 : f32 to vector<16x16xf32>
    %156 = arith.select %9, %155, %154 : vector<16x16xi1>, vector<16x16xf32>
    %157 = arith.truncf %156 : vector<16x16xf32> to vector<16x16xbf16>
    %cst_53 = arith.constant dense<0.000000e+00> : vector<16x8xf32>
    %158 = tpu.matmul %157, %127, %cst_53 {dimension_numbers = #tpu.dot_dimension_numbers<[1], [0], [0], [1], [0, 0, 1, 1], [], []>} : vector<16x16xbf16>, vector<16x8xbf16>, vector<16x8xf32> -> vector<16x8xf32>
    %c0_54 = arith.constant 0 : index
    %c24 = arith.constant 24 : index
    %159 = vector.load %arg6[%c0_54, %c24] : memref<16x32xf32, #tpu.memory_space<vmem>>, vector<16x8xf32>
    tpu.vector_store %arg6[%c0_54, %c24], %158 {strides = array<i32>} : memref<16x32xf32, #tpu.memory_space<vmem>>, vector<16x8xf32>,
    return
  }
}

</mosaic_0001>

<bundles_post_ra>
// kernel: tpu_custom_call.1
= control target key start
LH: loop header
LB: loop body
LE: loop exit
PB: predicated region body
PF: predicated region fallthrough
CT: control target
= control target key end

     0   :  { %11 = vsyncpa [#allocation3], 0  ;;  %s6915_s0 = inlined_call_operand.hbm [shape: bf16[32,32], index: 0, kind: input, shape index: {}]   ;;  %s6916_s1 = inlined_call_operand.hbm [shape: bf16[32,96], index: 1, kind: input, shape index: {}]   ;;  %s6917_s2 = inlined_call_operand.vmem [shape: f32[1,96], index: 2, kind: input, shape index: {}]   ;;  %s6918_s3 = inlined_call_operand.hbm [shape: f32[16,16,16], index: 3, kind: input, shape index: {}]   ;;  %s6919_s4 = inlined_call_operand.hbm [shape: f32[16,16,16], index: 4, kind: input, shape index: {}]   ;;  %s6920_s5 = inlined_call_operand.hbm [shape: f32[16,16], index: 5, kind: input, shape index: {}]   ;;  %s6921_s6 = inlined_call_operand.hbm [shape: f32[16,32], index: 6, kind: output, shape index: {}]  }
   0x1   :  { %12 = vsyncpa [#allocation6], 0 }
   0x2   :  { %13 = vsyncpa [#allocation9], 0 }
   0x3   :  { %14 = vsyncpa [#allocation4], 0  ;;  %s4950_s21 = smov [#allocation5]  }
   0x4   :  { %s32_s22 = sshll.u32 %s4950_s21, 4  ;;  %s33_s22 = int_to_ptr.vmem [resolvable:$true] %s32_s22 }
   0x5   :  { %s4830_s23 = scalar_lea.vmem %s33_s22, 256  ;;  %p4835_p1 = scmp.lt.s32.totalorder %s33_s22, %s33_s22 }
   0x6   :  { %p4831_p0 = scmp.ne.s32.totalorder %s33_s22, %s4830_s23  ;;  %p4836_p2 = scmp.lt.s32.totalorder %s4830_s23, %s4830_s23 }
   0x8   :  { %p4837_p3 = por %p4836_p2, %p4835_p1 }
   0xa   :  { %p4838_p4 = pnand %p4837_p3, %p4831_p0 }
   0xc   :  { %4841 = shalt.err (!%p4838_p4)
}
   0xd   :  { %s4951_s24 = smov 64   ;;  %s4952_s25 = smov 4  }
   0xe   :  { %38 = dma.hbm_to_vmem [thread:$0]  %s6916_s1, 256, %s33_s22, [#allocation6], %s4951_s24, %s4951_s24, %s4952_s25  }
   0xf   :  { %s4953_s28 = smov [#allocation8]   ;;  %s4954_s30 = smov [#allocation2]  }
  0x10   :  { %s58_s29 = sshll.u32 %s4953_s28, 4  ;;  %s20_s7 = sshll.u32 %s4954_s30, 4  ;;  %s59_s29 = int_to_ptr.vmem [resolvable:$true] %s58_s29  ;;  %s21_s7 = int_to_ptr.vmem [resolvable:$true] %s20_s7 }
  0x11   :  { %s4850_s8 = scalar_lea.vmem %s59_s29, 4096  ;;  %p4855_p6 = scmp.lt.s32.totalorder %s59_s29, %s59_s29 }
  0x12   :  { %p4851_p5 = scmp.ne.s32.totalorder %s59_s29, %s4850_s8  ;;  %p4856_p7 = scmp.lt.s32.totalorder %s4850_s8, %s4850_s8 }
  0x14   :  { %p4857_p8 = por %p4856_p7, %p4855_p6 }
  0x16   :  { %p4858_p9 = pnand %p4857_p8, %p4851_p5 }
  0x18   :  { %4861 = shalt.err (!%p4858_p9)
}
  0x19   :  { %s4955_s9 = smov 128   ;;  %s4956_s10 = smov 8  }
  0x1a   :  { %64 = dma.hbm_to_vmem [thread:$0]  %s6919_s4, 4096, %s59_s29, [#allocation9], %s4955_s9, %s4955_s9, %s4956_s10  }
  0x1b   :  { %s4870_s1 = scalar_lea.vmem %s21_s7, 256  ;;  %p4875_p11 = scmp.lt.s32.totalorder %s21_s7, %s21_s7 }
  0x1c   :  { %p4871_p10 = scmp.ne.s32.totalorder %s21_s7, %s4870_s1  ;;  %p4876_p12 = scmp.lt.s32.totalorder %s4870_s1, %s4870_s1 }
  0x1e   :  { %p4877_p13 = por %p4876_p12, %p4875_p11 }
  0x20   :  { %p4878_p0 = pnand %p4877_p13, %p4871_p10 }
  0x22   :  { %4881 = shalt.err (!%p4878_p0)
}
  0x23   :  { %26 = dma.hbm_to_vmem [thread:$0]  %s6915_s0, 256, %s21_s7, [#allocation3], %s4951_s24, %s4951_s24, %s4952_s25  }
  0x24   :  { %s4957_s15 = smov [#allocation7]   ;;  %s4958_s17 = smov [#allocation10]  }
  0x25   :  { %s46_s16 = sshll.u32 %s4957_s15, 4  ;;  %s70_s18 = sshll.u32 %s4958_s17, 4  ;;  %s47_s16 = int_to_ptr.vmem [resolvable:$true] %s46_s16  ;;  %s71_s18 = int_to_ptr.vmem [resolvable:$true] %s70_s18 }
  0x26   :  { %s4890_s4 = scalar_lea.vmem %s47_s16, 4096  ;;  %p4895_p2 = scmp.lt.s32.totalorder %s47_s16, %s47_s16 }
  0x27   :  { %p4891_p1 = scmp.ne.s32.totalorder %s47_s16, %s4890_s4  ;;  %p4896_p3 = scmp.lt.s32.totalorder %s4890_s4, %s4890_s4 }
  0x29   :  { %p4897_p4 = por %p4896_p3, %p4895_p2 }
  0x2b   :  { %p4898_p5 = pnand %p4897_p4, %p4891_p1 }
  0x2d   :  { %4901 = shalt.err (!%p4898_p5)
}
  0x2e   :  { %52 = dma.hbm_to_vmem [thread:$0]  %s6918_s3, 4096, %s47_s16, [#allocation6], %s4955_s9, %s4955_s9, %s4956_s10  }
  0x2f   :  { %s4910_s0 = scalar_lea.vmem %s71_s18, 256  ;;  %p4915_p7 = scmp.lt.s32.totalorder %s71_s18, %s71_s18 }
  0x30   :  { %p4911_p6 = scmp.ne.s32.totalorder %s71_s18, %s4910_s0  ;;  %p4916_p8 = scmp.lt.s32.totalorder %s4910_s0, %s4910_s0 }
  0x32   :  { %p4917_p9 = por %p4916_p8, %p4915_p7 }
  0x34   :  { %p4918_p10 = pnand %p4917_p9, %p4911_p6 }
  0x36   :  { %4921 = shalt.err (!%p4918_p10)
}
  0x37   :  { %76 = dma.hbm_to_vmem [thread:$0]  %s6920_s5, 256, %s71_s18, [#allocation9], %s4955_s9, %s4955_s9, %s4956_s10  }
  0x38   :  { %4942 = dma.done.wait [#allocation3], 256  }
  0x39   :  { %4943 = vsyncadd [#allocation3], 4294967040 }
  0x3a   :  { %4944 = dma.done.wait [#allocation6], 4352  }
  0x3b   :  { %4945 = vsyncadd [#allocation6], 4294962944 }
  0x3c   :  { %4946 = dma.done.wait [#allocation9], 4352  }
  0x3d   :  { %4947 = vsyncadd [#allocation9], 4294962944  ;;  %v4620_v0 = vld [vmem:[#allocation5 + $0x8] sm:$0xff]   ;;  %v4621_v1 = vld [vmem:[#allocation5] sm:$0xff]   ;;  %vm130_vm0 = vcmask 261120   ;;  %v6922_v4 = vmov 0.0   ;;  %v363_v21 = vlaneseq }
  0x3e   :  { %4507 = vmatprep.subr.bf16.mxu0 %v4620_v0  ;;  %v4622_v2 = vld [vmem:[#allocation2] sm:$0xff]   ;;  %v4623_v3 = vld [vmem:[#allocation2 + $0x8] sm:$0xff]   ;;  %4515 = vmatprep.subr.bf16.mxu1 %v6922_v4  ;;  %vm4960_vm1 = vmmov 0   ;;  %vm262_vm2 = vcmask 64512   ;;  %s4961_s23 = smov 96   ;;  %vm601_vm3 = vcmask 130048  }
  0x3f   :  { %4508 = vmatpush3.bf16.msra.mxu0 %v4620_v0  ;;  %4511 = vmatprep.mubr.msk.bf16.mxu0 %vm130_vm0, %v4622_v2  ;;  %v4456_v6 = vld [vmem:[%s6917_s2] ss:$0 sm:$0xff]  ;;  %v5067_v22 = vshrl.u32 %v363_v21, 7  ;;  %v859_v23 = vand.u32 127, %v363_v21  ;;  %v226_v29 = vld [vmem:[#allocation8 + $0x10] sm:$0xff]  ;;  %v225_v32 = vld [vmem:[#allocation8 + $0x8] sm:$0xff] }
  0x40   :  { %4509 = vmatprep.subr.bf16.mxu0 %v4621_v1  ;;  %4519 = vmatprep.mubr.msk.bf16.mxu1 %vm4960_vm1, %v6922_v4  ;;  %v224_v27 = vld [vmem:[#allocation8] sm:$0xff]  ;;  %v227_v37 = vld [vmem:[#allocation8 + $0x18] sm:$0xff]  ;;  %v242_v44 = vld [vmem:[#allocation8 + $0x90] sm:$0xff]  ;;  %s4963_s2 = smov 112   ;;  %vm869_vm4 = vcmask 130112   ;;  %vm1006_vm5 = vcmask 1041409  }
  0x41   :  { %v5070_v24 = vsub.s32 %v859_v23, %v5067_v22  ;;  %v864_v25 = vadd.s32 4294967288, %v859_v23  ;;  %v240_v36 = vld [vmem:[#allocation8 + $0x80] sm:$0xff]  ;;  %v241_v45 = vld [vmem:[#allocation8 + $0x88] sm:$0xff]  ;;  %v243_v52 = vld [vmem:[#allocation8 + $0x98] sm:$0xff]  ;;  %vm1008_vm6 = vcmask 1042434   ;;  %vm1010_vm7 = vcmask 1043459  }
  0x42   :  { %v228_v51 = vld [vmem:[#allocation8 + $0x20] sm:$0xff]  ;;  %v229_v60 = vld [vmem:[#allocation8 + $0x28] sm:$0xff]  ;;  %v230_v2 = vld [vmem:[#allocation8 + $0x30] sm:$0xff]  ;;  %vm1012_vm8 = vcmask 1044484   ;;  %vm1014_vm9 = vcmask 1045509   ;;  %vm1016_vm10 = vcmask 1046534  }
  0x43   :  { %4510 = vmatpush3.bf16.msra.mxu0 %v4621_v1  ;;  %v5073_v26 = vsub.s32 %v864_v25, %v5067_v22  ;;  %v244_v59 = vld [vmem:[#allocation8 + $0xa0] sm:$0xff]  ;;  %vm1018_vm11 = vcmask 1047559   ;;  %s4964_s25 = smov 88   ;;  %s4965_s26 = smov 120   ;;  %vm3389_vm14 = vcmask 195712   ;;  %vm4434_vm15 = vcmask 261312  }
  0x44   :  { %4523 = vmatprep.subr.bf16.mxu0 %v6922_v4  ;;  %v248_v25 = vld [vmem:[#allocation8 + $0xc0] sm:$0xff]  ;;  %s4967_s27 = smov 56   ;;  %s4968_s28 = smov 72  }
  0x45   :  { %s4969_s29 = smov 104   ;;  %s4970_s30 = smov 48  }
  0x46   :  { %4512 = vmatmul.mubr.msk.bf16.vlgmr.msra.gmra.mxu0 %vm130_vm0, %v4623_v3  ;;  %v245_v3 = vld [vmem:[#allocation8 + $0xa8] sm:$0xff]  ;;  %s4971_s7 = smov 40   ;;  %s4972_s8 = smov 16  }
  0x47   :  { %4525 = vmatprep.mubr.msk.bf16.mxu0 %vm4960_vm1, %v6922_v4  ;;  %s4973_s11 = smov 24   ;;  %s4974_s12 = smov [#allocation11]  }
  0x48   :  { %s4442_s1 = sshll.u32 %s4974_s12, 4  ;;  %s4443_s1 = int_to_ptr.vmem [resolvable:$true] %s4442_s1 }
  0x49   :  { %s4922_s13 = scalar_lea.vmem %s4443_s1, 256  ;;  %p4927_p12 = scmp.lt.s32.totalorder %s4443_s1, %s4443_s1 }
  0x4a   :  { %p4923_p11 = scmp.ne.s32.totalorder %s4443_s1, %s4922_s13  ;;  %p4928_p13 = scmp.lt.s32.totalorder %s4922_s13, %s4922_s13 }
  0x4c   :  { %p4929_p0 = por %p4928_p13, %p4927_p12 }
  0x4e   :  { %p4930_p1 = pnand %p4929_p0, %p4923_p11 }
 0x106   :  { %v4513_v5 = vpop.f32.mrf.mxu0 }
 0x107   :  { %v180_v9 = vadd.f32 %v4513_v5, %v4456_v6 }
 0x108   :  { %v171_v7 = vpop.f32.mrf.mxu0 }
 0x109   :  { %v172_v14 = vadd.f32 %v4456_v6, %v171_v7 }
 0x10a   :  { %v4514_v8 = vpop.f32.mrf.mxu0 }
 0x10b   :  { %v183_v10 = vadd.f32 %v4514_v8, %v4456_v6 }
 0x10c   :  { %v174_v11 = vpop.f32.mrf.mxu0 }
 0x10d   :  { %v5047_v12 = vpack.c.bf16 %v183_v10, %v180_v9  ;;  %v175_v13 = vadd.f32 %v4456_v6, %v174_v11  ;;  %v246_v9 = vld [vmem:[#allocation8 + $0xb0] sm:$0xff]  ;;  %v231_v10 = vld [vmem:[#allocation8 + $0x38] sm:$0xff] }
 0x10f   :  { %6976 = vst [vmem:[#allocation16_spill] sm:$0xff] %v5047_v12  ;;  %260 = vrot.lane.b32.xlu0 %v5047_v12, %s4961_s23  ;;  %v314_v15 = vsel %vm262_vm2, %v5047_v12, 0  ;;  %v5052_v16 = vpack.c.bf16 %v175_v13, %v172_v14 }
 0x110   :  { %4524 = vmatpush3.bf16.xpose.msra.mxu0 %v314_v15 }
 0x111   :  { %6977 = vst [vmem:[#allocation17_spill] sm:$0xff] %v5052_v16  ;;  %4529 = vmatprep.subr.bf16.mxu0 %v6922_v4 }
 0x113   :  { %258 = vrot.lane.b32.xlu0 %v5052_v16, %s4961_s23 }
 0x181   :  { %v261_v17 = vpop.permute.xlu0 %260 }
 0x182   :  { %v270_v18 = vsel %vm262_vm2, %v261_v17, 0  ;;  %v232_v17 = vld [vmem:[#allocation8 + $0x40] sm:$0xff] }
 0x183   :  { %4516 = vmatpush3.bf16.xpose.msra.mxu1 %v270_v18  ;;  %v247_v18 = vld [vmem:[#allocation8 + $0xb8] sm:$0xff] }
 0x184   :  { %4517 = vmatprep.subr.bf16.mxu1 %v6922_v4 }
 0x185   :  { %v259_v19 = vpop.permute.xlu0 %258 }
 0x186   :  { %4526 = vmatmul.mubr.msk.bf16.vlgmr.msra.gmra.mxu0 %vm262_vm2, %v259_v19  ;;  %v267_v20 = vsel %vm262_vm2, %v259_v19, 0 }
 0x187   :  { %4531 = vmatprep.mubr.msk.bf16.mxu0 %vm4960_vm1, %v6922_v4 }
 0x18b   :  { %4518 = vmatpush3.bf16.xpose.msra.mxu1 %v267_v20 }
 0x18c   :  { %4535 = vmatprep.subr.bf16.mxu1 %v6922_v4 }
 0x192   :  { %4520 = vmatmul.mubr.msk.bf16.vlgmr.msra.gmra.mxu1 %vm262_vm2, %v5052_v16 }
 0x193   :  { %4539 = vmatprep.mubr.msk.bf16.mxu1 %vm4960_vm1, %v6922_v4 }
 0x246   :  { %v5075_v28 = vpop.f32.mrf.mxu0 }
 0x247   :  { %v698_v30 = vmul.f32 %v5075_v28, %v224_v27  ;;  %v700_v34 = vmul.f32 %v5075_v28, %v226_v29  ;;  %v714_v42 = vmul.f32 %v5075_v28, %v240_v36  ;;  %v716_v48 = vmul.f32 %v5075_v28, %v242_v44  ;;  %v233_v27 = vld [vmem:[#allocation8 + $0x48] sm:$0xff] }
 0x248   :  { %v4527_v31 = vpop.f32.mrf.mxu0  ;;  %v702_v56 = vmul.f32 %v5075_v28, %v228_v51  ;;  %v718_v0 = vmul.f32 %v5075_v28, %v244_v59  ;;  %v704_v7 = vmul.f32 %v5075_v28, %v230_v2  ;;  %v720_v14 = vmul.f32 %v5075_v28, %v246_v9 }
 0x249   :  { %v730_v33 = vsel %vm601_vm3, %v698_v30, 0.0  ;;  %v736_v40 = vsel %vm601_vm3, %v700_v34, 0.0  ;;  %v778_v46 = vsel %vm601_vm3, %v714_v42, 0.0  ;;  %v784_v54 = vsel %vm601_vm3, %v716_v48, 0.0  ;;  %v249_v34 = vld [vmem:[#allocation8 + $0xc8] sm:$0xff] }
 0x24a   :  { %731 = vadd.xlane.f32.xlu1 %v730_v33  ;;  %v5080_v35 = vpop.f32.mrf.mxu0  ;;  %v742_v62 = vsel %vm601_vm3, %v702_v56, 0.0  ;;  %v790_v5 = vsel %vm601_vm3, %v718_v0, 0.0  ;;  %v748_v11 = vsel %vm601_vm3, %v704_v7, 0.0  ;;  %v796_v19 = vsel %vm601_vm3, %v720_v14, 0.0  ;;  %v234_v33 = vld [vmem:[#allocation8 + $0x50] sm:$0xff] }
 0x24b   :  { %v699_v38 = vmul.f32 %v5080_v35, %v225_v32  ;;  %v701_v43 = vmul.f32 %v5080_v35, %v227_v37  ;;  %v715_v49 = vmul.f32 %v5080_v35, %v241_v45  ;;  %v717_v57 = vmul.f32 %v5080_v35, %v243_v52 }
 0x24c   :  { %v4528_v39 = vpop.f32.mrf.mxu0  ;;  %v703_v1 = vmul.f32 %v5080_v35, %v229_v60  ;;  %v719_v8 = vmul.f32 %v5080_v35, %v245_v3  ;;  %v705_v15 = vmul.f32 %v5080_v35, %v231_v10  ;;  %v706_v21 = vmul.f32 %v5075_v28, %v232_v17  ;;  %v238_v60 = vld [vmem:[#allocation8 + $0x70] sm:$0xff] }
 0x24d   :  { %v733_v41 = vsel %vm601_vm3, %v699_v38, 0.0  ;;  %v739_v47 = vsel %vm601_vm3, %v701_v43, 0.0  ;;  %v781_v55 = vsel %vm601_vm3, %v715_v49, 0.0  ;;  %v787_v63 = vsel %vm601_vm3, %v717_v57, 0.0 }
 0x24e   :  { %737 = vadd.xlane.f32.xlu1 %v736_v40  ;;  %734 = vadd.xlane.f32.xlu0 %v733_v41  ;;  %v745_v6 = vsel %vm601_vm3, %v703_v1, 0.0  ;;  %v793_v13 = vsel %vm601_vm3, %v719_v8, 0.0  ;;  %v751_v20 = vsel %vm601_vm3, %v705_v15, 0.0  ;;  %v721_v23 = vmul.f32 %v5080_v35, %v247_v18  ;;  %v250_v40 = vld [vmem:[#allocation8 + $0xd0] sm:$0xff]  ;;  %v235_v41 = vld [vmem:[#allocation8 + $0x58] sm:$0xff] }
 0x24f   :  { %v754_v29 = vsel %vm601_vm3, %v706_v21, 0.0  ;;  %v722_v31 = vmul.f32 %v5075_v28, %v248_v25  ;;  %v707_v32 = vmul.f32 %v5080_v35, %v233_v27  ;;  %v708_v38 = vmul.f32 %v5075_v28, %v234_v33 }
 0x250   :  { %v799_v30 = vsel %vm601_vm3, %v721_v23, 0.0  ;;  %v723_v39 = vmul.f32 %v5080_v35, %v249_v34  ;;  %v724_v44 = vmul.f32 %v5075_v28, %v250_v40  ;;  %v709_v45 = vmul.f32 %v5080_v35, %v235_v41 }
 0x251   :  { %v802_v36 = vsel %vm601_vm3, %v722_v31, 0.0  ;;  %v757_v37 = vsel %vm601_vm3, %v707_v32, 0.0  ;;  %v760_v42 = vsel %vm601_vm3, %v708_v38, 0.0  ;;  %v712_v2 = vmul.f32 %v5075_v28, %v238_v60 }
 0x252   :  { %779 = vadd.xlane.f32.xlu1 %v778_v46  ;;  %740 = vadd.xlane.f32.xlu0 %v739_v47  ;;  %v5091_v50 = vpop.f32.mrf.mxu1  ;;  %v805_v43 = vsel %vm601_vm3, %v723_v39, 0.0  ;;  %v236_v46 = vld [vmem:[#allocation8 + $0x60] sm:$0xff]  ;;  %v251_v47 = vld [vmem:[#allocation8 + $0xd8] sm:$0xff]  ;;  %v808_v48 = vsel %vm601_vm3, %v724_v44, 0.0  ;;  %v763_v49 = vsel %vm601_vm3, %v709_v45, 0.0  ;;  %v5152_v18 = vsub.s32 0, %v5067_v22 }
 0x253   :  { %v710_v51 = vmul.f32 %v5075_v28, %v236_v46  ;;  %v725_v52 = vmul.f32 %v5080_v35, %v251_v47  ;;  %v772_v7 = vsel %vm601_vm3, %v712_v2, 0.0  ;;  %v359_v23 = vcombine.high %v5091_v50, %v5091_v50 }
 0x254   :  { %v4521_v53 = vpop.f32.mrf.mxu1  ;;  %6979 = vst [vmem:[#allocation19_spill] sm:$0xff] %v5152_v18 }
 0x255   :  { %v252_v53 = vld [vmem:[#allocation8 + $0xe0] sm:$0xff]  ;;  %v811_v56 = vsel %vm601_vm3, %v725_v52, 0.0 }
 0x256   :  { %785 = vadd.xlane.f32.xlu1 %v784_v54  ;;  %782 = vadd.xlane.f32.xlu0 %v781_v55  ;;  %v5097_v58 = vpop.f32.mrf.mxu1  ;;  %v237_v54 = vld [vmem:[#allocation8 + $0x68] sm:$0xff]  ;;  %v766_v55 = vsel %vm601_vm3, %v710_v51, 0.0  ;;  %v726_v57 = vmul.f32 %v5075_v28, %v252_v53 }
 0x257   :  { %v711_v59 = vmul.f32 %v5080_v35, %v237_v54  ;;  %v408_v25 = vcombine.high %v5097_v58, %v5097_v58 }
 0x258   :  { %v4522_v61 = vpop.f32.mrf.mxu1  ;;  %v814_v0 = vsel %vm601_vm3, %v726_v57, 0.0 }
 0x259   :  { %v253_v61 = vld [vmem:[#allocation8 + $0xe8] sm:$0xff]  ;;  %v769_v1 = vsel %vm601_vm3, %v711_v59, 0.0 }
 0x25a   :  { %743 = vadd.xlane.f32.xlu1 %v742_v62  ;;  %788 = vadd.xlane.f32.xlu0 %v787_v63  ;;  %v4962_v62 = vmov 1966171168   ;;  %v727_v3 = vmul.f32 %v5080_v35, %v253_v61 }
 0x25b   :  { %v361_v63 = vunpack.c.l.s4 %v4962_v62 }
 0x25c   :  { %v817_v8 = vsel %vm601_vm3, %v727_v3, 0.0 }
 0x25e   :  { %791 = vadd.xlane.f32.xlu1 %v790_v5  ;;  %746 = vadd.xlane.f32.xlu0 %v745_v6  ;;  %v239_v5 = vld [vmem:[#allocation8 + $0x78] sm:$0xff]  ;;  %v362_v6 = vunpack.c.0.s8 %v361_v63 }
 0x25f   :  { %v713_v9 = vmul.f32 %v5080_v35, %v239_v5 }
 0x260   :  { %v5143_v10 = vsub.s32 %v362_v6, %v5067_v22 }
 0x262   :  { %749 = vadd.xlane.f32.xlu1 %v748_v11  ;;  %794 = vadd.xlane.f32.xlu0 %v793_v13  ;;  %6978 = vst [vmem:[#allocation18_spill] sm:$0xff] %v5143_v10  ;;  %v775_v11 = vsel %vm601_vm3, %v713_v9, 0.0  ;;  %v366_v13 = vrot.slane %v5091_v50, %v5143_v10  ;;  %v415_v17 = vrot.slane %v5097_v58, %v5143_v10 }
 0x263   :  { %v422_v32 = vrot.slane %v408_v25, %v5143_v10 }
 0x264   :  { %v374_v14 = vcombine.high %v366_v13, %v366_v13  ;;  %v382_v15 = vrot.slane %v366_v13, %v5143_v10  ;;  %v431_v27 = vrot.slane %v415_v17, %v5143_v10 }
 0x265   :  { %v438_v39 = vrot.slane %v422_v32, %v5143_v10  ;;  %v424_v41 = vcombine.high %v422_v32, %v422_v32 }
 0x266   :  { %797 = vadd.xlane.f32.xlu1 %v796_v19  ;;  %752 = vadd.xlane.f32.xlu0 %v751_v20  ;;  %v423_v19 = vcombine.high %v415_v17, %v415_v17  ;;  %v460_v20 = vrot.slane %v382_v15, %v5152_v18  ;;  %v396_v21 = vrot.slane %v374_v14, %v5143_v10 }
 0x267   :  { %v404_v31 = vcombine.high %v382_v15, %v382_v15  ;;  %v453_v34 = vcombine.high %v431_v27, %v431_v27  ;;  %v492_v45 = vrot.slane %v431_v27, %v5152_v18  ;;  %v454_v53 = vcombine.high %v438_v39, %v438_v39 }
 0x268   :  { %v445_v22 = vrot.slane %v423_v19, %v5143_v10  ;;  %v406_v46 = vcombine.high %v396_v21, %v396_v21 }
 0x269   :  { %v500_v38 = vrot.slane %v453_v34, %v5152_v18 }
 0x26a   :  { %755 = vadd.xlane.f32.xlu1 %v754_v29  ;;  %800 = vadd.xlane.f32.xlu0 %v799_v30  ;;  %v464_v29 = vrot.slane %v396_v21, %v5152_v18  ;;  %v373_v30 = vrot.slane %v359_v23, %v5143_v10  ;;  %v496_v33 = vrot.slane %v445_v22, %v5152_v18 }
 0x26c   :  { %v375_v44 = vcombine.high %v373_v30, %v373_v30 }
 0x26e   :  { %803 = vadd.xlane.f32.xlu1 %v802_v36  ;;  %758 = vadd.xlane.f32.xlu0 %v757_v37  ;;  %v468_v36 = vrot.slane %v404_v31, %v5152_v18  ;;  %v389_v37 = vrot.slane %v373_v30, %v5143_v10  ;;  %v403_v51 = vrot.slane %v375_v44, %v5143_v10  ;;  %v5267_v44 = vld [vmem:[#allocation7 + $0x20] sm:$0xff] }
 0x26f   :  { %6983 = vst [vmem:[#allocation23_spill] sm:$0xff] %v5267_v44 }
 0x270   :  { %v476_v40 = vrot.slane %v389_v37, %v5152_v18  ;;  %v480_v54 = vrot.slane %v403_v51, %v5152_v18  ;;  %v407_v60 = vcombine.high %v403_v51, %v403_v51 }
 0x272   :  { %761 = vadd.xlane.f32.xlu1 %v760_v42  ;;  %806 = vadd.xlane.f32.xlu0 %v805_v43  ;;  %v508_v42 = vrot.slane %v438_v39, %v5152_v18  ;;  %v455_v43 = vcombine.high %v445_v22, %v445_v22  ;;  %v488_v62 = vrot.slane %v407_v60, %v5152_v18 }
 0x274   :  { %v504_v47 = vrot.slane %v455_v43, %v5152_v18  ;;  %v5265_v43 = vld [vmem:[#allocation7 + $0x10] sm:$0xff] }
 0x275   :  { %6982 = vst [vmem:[#allocation22_spill] sm:$0xff] %v5265_v43 }
 0x276   :  { %809 = vadd.xlane.f32.xlu1 %v808_v48  ;;  %764 = vadd.xlane.f32.xlu0 %v763_v49  ;;  %v452_v48 = vrot.slane %v424_v41, %v5143_v10  ;;  %v472_v49 = vrot.slane %v406_v46, %v5152_v18 }
 0x278   :  { %v512_v52 = vrot.slane %v452_v48, %v5152_v18  ;;  %v456_v57 = vcombine.high %v452_v48, %v452_v48 }
 0x27a   :  { %767 = vadd.xlane.f32.xlu1 %v766_v55  ;;  %812 = vadd.xlane.f32.xlu0 %v811_v56  ;;  %v405_v55 = vcombine.high %v389_v37, %v389_v37  ;;  %v516_v56 = vrot.slane %v454_v53, %v5152_v18  ;;  %v520_v61 = vrot.slane %v456_v57, %v5152_v18  ;;  %v5257_v37 = vld [vmem:[#allocation7] sm:$0xff] }
 0x27b   :  { %6980 = vst [vmem:[#allocation20_spill] sm:$0xff] %v5257_v37  ;;  %v5275_v53 = vld [vmem:[#allocation7 + $0x40] sm:$0xff] }
 0x27c   :  { %v484_v59 = vrot.slane %v405_v55, %v5152_v18  ;;  %6985 = vst [vmem:[#allocation25_spill] sm:$0xff] %v5275_v53 }
 0x27e   :  { %815 = vadd.xlane.f32.xlu1 %v814_v0  ;;  %770 = vadd.xlane.f32.xlu0 %v769_v1 }
 0x282   :  { %773 = vadd.xlane.f32.xlu1 %v772_v7  ;;  %818 = vadd.xlane.f32.xlu0 %v817_v8 }
 0x286   :  { %776 = vadd.xlane.f32.xlu0 %v775_v11 }
 0x293   :  { %521 = vrot.lane.b32.xlu1 %v460_v20, %s4963_s2 }
 0x297   :  { %523 = vrot.lane.b32.xlu1 %v464_v29, %s4963_s2 }
 0x29b   :  { %539 = vrot.lane.b32.xlu1 %v496_v33, %s4963_s2 }
 0x29c   :  { %525 = vrot.lane.b32.xlu0 %v468_v36, %s4963_s2 }
 0x29f   :  { %541 = vrot.lane.b32.xlu1 %v500_v38, %s4963_s2  ;;  %v5259_v38 = vld [vmem:[#allocation7 + $0x8] sm:$0xff] }
 0x2a0   :  { %529 = vrot.lane.b32.xlu0 %v476_v40, %s4963_s2  ;;  %6981 = vst [vmem:[#allocation21_spill] sm:$0xff] %v5259_v38 }
 0x2a3   :  { %545 = vrot.lane.b32.xlu1 %v508_v42, %s4963_s2 }
 0x2a4   :  { %537 = vrot.lane.b32.xlu0 %v492_v45, %s4963_s2 }
 0x2a7   :  { %543 = vrot.lane.b32.xlu1 %v504_v47, %s4963_s2 }
 0x2a8   :  { %527 = vrot.lane.b32.xlu0 %v472_v49, %s4963_s2  ;;  %v5271_v49 = vld [vmem:[#allocation7 + $0x18] sm:$0xff] }
 0x2a9   :  { %6984 = vst [vmem:[#allocation24_spill] sm:$0xff] %v5271_v49 }
 0x2ab   :  { %547 = vrot.lane.b32.xlu1 %v512_v52, %s4963_s2 }
 0x2ac   :  { %531 = vrot.lane.b32.xlu0 %v480_v54, %s4963_s2 }
 0x2af   :  { %549 = vrot.lane.b32.xlu1 %v516_v56, %s4963_s2 }
 0x2b0   :  { %533 = vrot.lane.b32.xlu0 %v484_v59, %s4963_s2  ;;  %v5280_v59 = vld [vmem:[#allocation7 + $0x28] sm:$0xff] }
 0x2b1   :  { %6986 = vst [vmem:[#allocation26_spill] sm:$0xff] %v5280_v59 }
 0x2b3   :  { %551 = vrot.lane.b32.xlu1 %v520_v61, %s4963_s2  ;;  %v5283_v61 = vld [vmem:[#allocation7 + $0x80] sm:$0xff] }
 0x2b4   :  { %535 = vrot.lane.b32.xlu0 %v488_v62, %s4963_s2  ;;  %6987 = vst [vmem:[#allocation27_spill] sm:$0xff] %v5283_v61 }
 0x2d3   :  { %v5199_v63 = vpop.xlane.xlu1 %731 }
 0x2d7   :  { %v5201_v0 = vpop.xlane.xlu1 %737  ;;  %v5203_v1 = vpop.xlane.xlu0 %734 }
 0x2db   :  { %v5205_v2 = vpop.xlane.xlu1 %779  ;;  %v5207_v3 = vpop.xlane.xlu0 %740 }
 0x2df   :  { %v5209_v5 = vpop.xlane.xlu1 %785  ;;  %v5211_v6 = vpop.xlane.xlu0 %782 }
 0x2e3   :  { %v5213_v7 = vpop.xlane.xlu1 %743  ;;  %v5215_v8 = vpop.xlane.xlu0 %788 }
 0x2e7   :  { %v5217_v9 = vpop.xlane.xlu1 %791  ;;  %v5219_v11 = vpop.xlane.xlu0 %746 }
 0x2eb   :  { %v5221_v13 = vpop.xlane.xlu1 %749  ;;  %v5223_v14 = vpop.xlane.xlu0 %794 }
 0x2ef   :  { %v5225_v15 = vpop.xlane.xlu1 %797  ;;  %v5227_v17 = vpop.xlane.xlu0 %752 }
 0x2f3   :  { %v5229_v19 = vpop.xlane.xlu1 %755  ;;  %v5231_v20 = vpop.xlane.xlu0 %800 }
 0x2f7   :  { %v5233_v21 = vpop.xlane.xlu1 %803  ;;  %v5235_v23 = vpop.xlane.xlu0 %758 }
 0x2fb   :  { %v5237_v25 = vpop.xlane.xlu1 %761  ;;  %v5239_v27 = vpop.xlane.xlu0 %806 }
 0x2ff   :  { %v5241_v29 = vpop.xlane.xlu1 %809  ;;  %v5243_v22 = vpop.xlane.xlu0 %764 }
 0x303   :  { %v5245_v30 = vpop.xlane.xlu1 %767  ;;  %v5247_v31 = vpop.xlane.xlu0 %812 }
 0x307   :  { %v5249_v32 = vpop.xlane.xlu1 %815  ;;  %v5251_v33 = vpop.xlane.xlu0 %770 }
 0x30b   :  { %v5253_v34 = vpop.xlane.xlu1 %773  ;;  %v5255_v36 = vpop.xlane.xlu0 %818 }
 0x30f   :  { %v5261_v39 = vpop.xlane.xlu0 %776  ;;  %v522_v40 = vpop.permute.xlu1 %521 }
 0x310   :  { %v569_v41 = vmul.f32 %v522_v40, %v5257_v37  ;;  %v570_v42 = vmul.f32 %v522_v40, %v5259_v38 }
 0x312   :  { %v602_v45 = vsel %vm601_vm3, %v569_v41, 0.0  ;;  %v605_v46 = vsel %vm601_vm3, %v570_v42, 0.0 }
 0x313   :  { %v526_v47 = vpop.permute.xlu0 %525  ;;  %v524_v48 = vpop.permute.xlu1 %523  ;;  %603 = vadd.xlane.f32.xlu0 %v602_v45  ;;  %606 = vadd.xlane.f32.xlu1 %v605_v46  ;;  %v5288_v45 = vld [vmem:[#allocation7 + $0x48] sm:$0xff] }
 0x314   :  { %v571_v51 = vmul.f32 %v524_v48, %v5265_v43  ;;  %v573_v52 = vmul.f32 %v526_v47, %v5267_v44  ;;  %v572_v56 = vmul.f32 %v524_v48, %v5271_v49  ;;  %v574_v41 = vmul.f32 %v526_v47, %v5280_v59  ;;  %6988 = vst [vmem:[#allocation28_spill] sm:$0xff] %v5288_v45  ;;  %v5291_v48 = vld [vmem:[#allocation7 + $0x30] sm:$0xff]  ;;  %v5296_v47 = vld [vmem:[#allocation7 + $0x88] sm:$0xff] }
 0x315   :  { %6989 = vst [vmem:[#allocation29_spill] sm:$0xff] %v5291_v48  ;;  %6990 = vst [vmem:[#allocation30_spill] sm:$0xff] %v5296_v47  ;;  %v1084_v49 = vrot.slane %v5213_v7, %v5070_v24 }
 0x316   :  { %v608_v54 = vsel %vm601_vm3, %v571_v51, 0.0  ;;  %v614_v55 = vsel %vm601_vm3, %v573_v52, 0.0  ;;  %v611_v62 = vsel %vm601_vm3, %v572_v56, 0.0  ;;  %v617_v51 = vsel %vm601_vm3, %v574_v41, 0.0 }
 0x317   :  { %v530_v57 = vpop.permute.xlu0 %529  ;;  %609 = vadd.xlane.f32.xlu0 %v608_v54  ;;  %615 = vadd.xlane.f32.xlu1 %v614_v55  ;;  %v540_v55 = vpop.permute.xlu1 %539 }
 0x318   :  { %v577_v60 = vmul.f32 %v530_v57, %v5275_v53  ;;  %v578_v54 = vmul.f32 %v530_v57, %v5288_v45  ;;  %v5304_v57 = vld [vmem:[#allocation7 + $0x38] sm:$0xff]  ;;  %v5307_v45 = vld [vmem:[#allocation7 + $0x60] sm:$0xff] }
 0x319   :  { %6992 = vst [vmem:[#allocation32_spill] sm:$0xff] %v5304_v57  ;;  %6993 = vst [vmem:[#allocation33_spill] sm:$0xff] %v5307_v45 }
 0x31a   :  { %v626_v40 = vsel %vm601_vm3, %v577_v60, 0.0 }
 0x31b   :  { %612 = vadd.xlane.f32.xlu0 %v611_v62  ;;  %v538_v42 = vpop.permute.xlu0 %537  ;;  %627 = vadd.xlane.f32.xlu1 %v626_v40  ;;  %v5299_v62 = vld [vmem:[#allocation7 + $0x50] sm:$0xff]  ;;  %v629_v40 = vsel %vm601_vm3, %v578_v54, 0.0 }
 0x31c   :  { %v585_v46 = vmul.f32 %v538_v42, %v5283_v61  ;;  %6991 = vst [vmem:[#allocation31_spill] sm:$0xff] %v5299_v62  ;;  %v586_v41 = vmul.f32 %v538_v42, %v5296_v47  ;;  %v5312_v42 = vld [vmem:[#allocation7 + $0x58] sm:$0xff]  ;;  %v1075_v47 = vrot.slane %v5201_v0, %v5070_v24  ;;  %v1070_v61 = vrot.slane %v5203_v1, %v5073_v26 }
 0x31d   :  { %6994 = vst [vmem:[#allocation34_spill] sm:$0xff] %v5312_v42 }
 0x31e   :  { %v650_v52 = vsel %vm601_vm3, %v585_v46, 0.0  ;;  %v653_v53 = vsel %vm601_vm3, %v586_v41, 0.0 }
 0x31f   :  { %618 = vadd.xlane.f32.xlu0 %v617_v51  ;;  %v528_v56 = vpop.permute.xlu0 %527  ;;  %651 = vadd.xlane.f32.xlu1 %v650_v52  ;;  %v542_v52 = vpop.permute.xlu1 %541 }
 0x320   :  { %v575_v60 = vmul.f32 %v528_v56, %v5291_v48  ;;  %v576_v54 = vmul.f32 %v528_v56, %v5304_v57 }
 0x322   :  { %v620_v4 = vsel %vm601_vm3, %v575_v60, 0.0 }
 0x323   :  { %630 = vadd.xlane.f32.xlu0 %v629_v40  ;;  %v532_v46 = vpop.permute.xlu0 %531  ;;  %621 = vadd.xlane.f32.xlu1 %v620_v4  ;;  %v5314_v40 = vld [vmem:[#allocation7 + $0x90] sm:$0xff] }
 0x324   :  { %v579_v51 = vmul.f32 %v532_v46, %v5299_v62  ;;  %6995 = vst [vmem:[#allocation35_spill] sm:$0xff] %v5314_v40  ;;  %v623_v62 = vsel %vm601_vm3, %v576_v54, 0.0  ;;  %v580_v44 = vmul.f32 %v532_v46, %v5312_v42  ;;  %v587_v41 = vmul.f32 %v540_v55, %v5314_v40  ;;  %v5329_v46 = vld [vmem:[#allocation7 + $0x98] sm:$0xff] }
 0x325   :  { %6998 = vst [vmem:[#allocation38_spill] sm:$0xff] %v5329_v46  ;;  %v588_v40 = vmul.f32 %v540_v55, %v5329_v46  ;;  %v5345_v55 = vld [vmem:[#allocation7 + $0xc8] sm:$0xff] }
 0x326   :  { %v632_v48 = vsel %vm601_vm3, %v579_v51, 0.0  ;;  %v546_v51 = vpop.permute.xlu1 %545  ;;  %v635_v56 = vsel %vm601_vm3, %v580_v44, 0.0  ;;  %v656_v57 = vsel %vm601_vm3, %v587_v41, 0.0  ;;  %7002 = vst [vmem:[#allocation42_spill] sm:$0xff] %v5345_v55 }
 0x327   :  { %654 = vadd.xlane.f32.xlu0 %v653_v53  ;;  %v534_v60 = vpop.permute.xlu0 %533  ;;  %633 = vadd.xlane.f32.xlu1 %v632_v48  ;;  %v5321_v53 = vld [vmem:[#allocation7 + $0x68] sm:$0xff]  ;;  %v5323_v48 = vld [vmem:[#allocation7 + $0xa0] sm:$0xff]  ;;  %v594_v46 = vmul.f32 %v546_v51, %v5345_v55 }
 0x328   :  { %v581_v4 = vmul.f32 %v534_v60, %v5307_v45  ;;  %6996 = vst [vmem:[#allocation36_spill] sm:$0xff] %v5321_v53  ;;  %6997 = vst [vmem:[#allocation37_spill] sm:$0xff] %v5323_v48  ;;  %v582_v45 = vmul.f32 %v534_v60, %v5321_v53  ;;  %v589_v54 = vmul.f32 %v542_v52, %v5323_v48  ;;  %v5337_v60 = vld [vmem:[#allocation7 + $0xa8] sm:$0xff] }
 0x329   :  { %7000 = vst [vmem:[#allocation40_spill] sm:$0xff] %v5337_v60  ;;  %v590_v48 = vmul.f32 %v542_v52, %v5337_v60  ;;  %v5353_v52 = vld [vmem:[#allocation7 + $0x78] sm:$0xff] }
 0x32a   :  { %v638_v59 = vsel %vm601_vm3, %v581_v4, 0.0  ;;  %v5331_v4 = vld [vmem:[#allocation7 + $0xc0] sm:$0xff]  ;;  %v662_v42 = vsel %vm601_vm3, %v589_v54, 0.0  ;;  %7004 = vst [vmem:[#allocation44_spill] sm:$0xff] %v5353_v52 }
 0x32b   :  { %624 = vadd.xlane.f32.xlu0 %v623_v62  ;;  %639 = vadd.xlane.f32.xlu1 %v638_v59  ;;  %6999 = vst [vmem:[#allocation39_spill] sm:$0xff] %v5331_v4  ;;  %v544_v62 = vpop.permute.xlu1 %543  ;;  %v641_v59 = vsel %vm601_vm3, %v582_v45, 0.0  ;;  %v593_v44 = vmul.f32 %v546_v51, %v5331_v4  ;;  %v536_v41 = vpop.permute.xlu0 %535  ;;  %v5347_v4 = vld [vmem:[#allocation7 + $0xb0] sm:$0xff]  ;;  %v5361_v51 = vld [vmem:[#allocation7 + $0xb8] sm:$0xff] }
 0x32c   :  { %7003 = vst [vmem:[#allocation43_spill] sm:$0xff] %v5347_v4  ;;  %v584_v60 = vmul.f32 %v536_v41, %v5353_v52  ;;  %7006 = vst [vmem:[#allocation46_spill] sm:$0xff] %v5361_v51  ;;  %v592_v55 = vmul.f32 %v544_v62, %v5361_v51  ;;  %v1088_v51 = vrot.slane %v5219_v11, %v5073_v26 }
 0x32d   :  { %v674_v53 = vsel %vm601_vm3, %v593_v44, 0.0  ;;  %v5355_v44 = vld [vmem:[#allocation7 + $0xd0] sm:$0xff]  ;;  %v1066_v11 = vrot.slane %v5199_v63, %v5070_v24 }
 0x32e   :  { %7005 = vst [vmem:[#allocation45_spill] sm:$0xff] %v5355_v44  ;;  %v1089_v37 = vsel %vm869_vm4, %v1088_v51, %v1084_v49 }
 0x32f   :  { %636 = vadd.xlane.f32.xlu0 %v635_v56  ;;  %657 = vadd.xlane.f32.xlu1 %v656_v57  ;;  %v5339_v56 = vld [vmem:[#allocation7 + $0x70] sm:$0xff]  ;;  %v659_v57 = vsel %vm601_vm3, %v588_v40, 0.0  ;;  %v548_v54 = vpop.permute.xlu1 %547  ;;  %v591_v40 = vmul.f32 %v544_v62, %v5347_v4  ;;  %v5377_v62 = vld [vmem:[#allocation7 + $0xe8] sm:$0xff]  ;;  %v1071_v12 = vsel %vm869_vm4, %v1070_v61, %v1066_v11  ;;  %v1097_v61 = vrot.slane %v5227_v17, %v5073_v26 }
 0x330   :  { %7001 = vst [vmem:[#allocation41_spill] sm:$0xff] %v5339_v56  ;;  %v583_v45 = vmul.f32 %v536_v41, %v5339_v56  ;;  %v5369_v41 = vld [vmem:[#allocation7 + $0xd8] sm:$0xff]  ;;  %7010 = vst [vmem:[#allocation50_spill] sm:$0xff] %v5377_v62 }
 0x331   :  { %v668_v56 = vsel %vm601_vm3, %v591_v40, 0.0  ;;  %7008 = vst [vmem:[#allocation48_spill] sm:$0xff] %v5369_v41  ;;  %v5371_v40 = vld [vmem:[#allocation7 + $0xf0] sm:$0xff]  ;;  %v596_v52 = vmul.f32 %v548_v54, %v5369_v41  ;;  %v1079_v41 = vrot.slane %v5207_v3, %v5073_v26 }
 0x332   :  { %7009 = vst [vmem:[#allocation49_spill] sm:$0xff] %v5371_v40 }
 0x333   :  { %642 = vadd.xlane.f32.xlu0 %v641_v59  ;;  %663 = vadd.xlane.f32.xlu1 %v662_v42  ;;  %v665_v42 = vsel %vm601_vm3, %v590_v48, 0.0  ;;  %v644_v59 = vsel %vm601_vm3, %v583_v45, 0.0  ;;  %v595_v48 = vmul.f32 %v548_v54, %v5355_v44  ;;  %v5363_v45 = vld [vmem:[#allocation7 + $0xe0] sm:$0xff]  ;;  %v1080_v0 = vsel %vm869_vm4, %v1079_v41, %v1075_v47 }
 0x334   :  { %7007 = vst [vmem:[#allocation47_spill] sm:$0xff] %v5363_v45  ;;  %v1207_v49 = vsel %vm1006_vm5, %v1080_v0, %v1071_v12  ;;  %v1133_v0 = vrot.slane %v5261_v39, %v5073_v26 }
 0x337   :  { %660 = vadd.xlane.f32.xlu0 %v659_v57  ;;  %675 = vadd.xlane.f32.xlu1 %v674_v53  ;;  %v550_v57 = vpop.permute.xlu1 %549  ;;  %v677_v53 = vsel %vm601_vm3, %v594_v46, 0.0 }
 0x338   :  { %v597_v46 = vmul.f32 %v550_v57, %v5363_v45  ;;  %v598_v45 = vmul.f32 %v550_v57, %v5377_v62 }
 0x33a   :  { %v689_v54 = vsel %vm601_vm3, %v598_v45, 0.0 }
 0x33b   :  { %666 = vadd.xlane.f32.xlu0 %v665_v42  ;;  %645 = vadd.xlane.f32.xlu1 %v644_v59  ;;  %v647_v42 = vsel %vm601_vm3, %v584_v60, 0.0  ;;  %v680_v59 = vsel %vm601_vm3, %v595_v48, 0.0  ;;  %v552_v4 = vpop.permute.xlu1 %551  ;;  %v254_v48 = vld [vmem:[#allocation8 + $0xf0] sm:$0xff] }
 0x33c   :  { %v599_v60 = vmul.f32 %v552_v4, %v5371_v40  ;;  %v728_v44 = vmul.f32 %v5075_v28, %v254_v48 }
 0x33f   :  { %678 = vadd.xlane.f32.xlu0 %v677_v53  ;;  %669 = vadd.xlane.f32.xlu1 %v668_v56  ;;  %v671_v56 = vsel %vm601_vm3, %v592_v55, 0.0  ;;  %v686_v53 = vsel %vm601_vm3, %v597_v46, 0.0  ;;  %v5383_v55 = vld [vmem:[#allocation7 + $0xf8] sm:$0xff]  ;;  %v820_v46 = vsel %vm601_vm3, %v728_v44, 0.0 }
 0x340   :  { %7011 = vst [vmem:[#allocation51_spill] sm:$0xff] %v5383_v55 }
 0x343   :  { %648 = vadd.xlane.f32.xlu0 %v647_v42  ;;  %681 = vadd.xlane.f32.xlu1 %v680_v59  ;;  %v683_v42 = vsel %vm601_vm3, %v596_v52, 0.0  ;;  %v692_v59 = vsel %vm601_vm3, %v599_v60, 0.0 }
 0x347   :  { %672 = vadd.xlane.f32.xlu0 %v671_v56  ;;  %687 = vadd.xlane.f32.xlu1 %v686_v53  ;;  %v600_v56 = vmul.f32 %v552_v4, %v5383_v55  ;;  %v255_v53 = vld [vmem:[#allocation8 + $0xf8] sm:$0xff] }
 0x348   :  { %v729_v60 = vmul.f32 %v5080_v35, %v255_v53 }
 0x349   :  { %v695_v52 = vsel %vm601_vm3, %v600_v56, 0.0 }
 0x34a   :  { %v823_v28 = vsel %vm601_vm3, %v729_v60, 0.0 }
 0x34b   :  { %684 = vadd.xlane.f32.xlu0 %v683_v42  ;;  %693 = vadd.xlane.f32.xlu1 %v692_v59 }
 0x34f   :  { %690 = vadd.xlane.f32.xlu0 %v689_v54  ;;  %821 = vadd.xlane.f32.xlu1 %v820_v46 }
 0x353   :  { %696 = vadd.xlane.f32.xlu0 %v695_v52 }
 0x357   :  { %824 = vadd.xlane.f32.xlu0 %v823_v28 }
 0x39c   :  { %v604_v57 = vpop.xlane.xlu0 %603  ;;  %v607_v48 = vpop.xlane.xlu1 %606 }
 0x39d   :  { %v863_v7 = vrot.slane %v604_v57, %v5070_v24  ;;  %v868_v18 = vrot.slane %v607_v48, %v5073_v26  ;;  %v1208_v57 = vsel %vm1008_vm6, %v1089_v37, %v1207_v49  ;;  %v1093_v48 = vrot.slane %v5221_v13, %v5070_v24 }
 0x39e   :  { %v1115_v37 = vrot.slane %v5243_v22, %v5073_v26  ;;  %v1129_v49 = vrot.slane %v5253_v34, %v5070_v24 }
 0x39f   :  { %v870_v12 = vsel %vm869_vm4, %v868_v18, %v863_v7  ;;  %v1111_v18 = vrot.slane %v5237_v25, %v5070_v24 }
 0x3a0   :  { %v610_v42 = vpop.xlane.xlu0 %609  ;;  %v616_v59 = vpop.xlane.xlu1 %615 }
 0x3a1   :  { %v874_v10 = vrot.slane %v610_v42, %v5070_v24  ;;  %v883_v63 = vrot.slane %v616_v59, %v5070_v24  ;;  %v1106_v59 = vrot.slane %v5235_v23, %v5073_v26 }
 0x3a4   :  { %v613_v45 = vpop.xlane.xlu0 %612  ;;  %v5391_v40 = vpop.xlane.xlu1 %627 }
 0x3a5   :  { %v878_v3 = vrot.slane %v613_v45, %v5073_v26 }
 0x3a7   :  { %v879_v51 = vsel %vm869_vm4, %v878_v3, %v874_v10 }
 0x3a8   :  { %v619_v44 = vpop.xlane.xlu0 %618  ;;  %v5393_v4 = vpop.xlane.xlu1 %651  ;;  %v1007_v13 = vsel %vm1006_vm5, %v879_v51, %v870_v12 }
 0x3a9   :  { %v887_v1 = vrot.slane %v619_v44, %v5073_v26 }
 0x3ab   :  { %v888_v42 = vsel %vm869_vm4, %v887_v1, %v883_v63  ;;  %v1116_v1 = vsel %vm869_vm4, %v1115_v37, %v1111_v18 }
 0x3ac   :  { %v5395_v54 = vpop.xlane.xlu0 %630  ;;  %v622_v46 = vpop.xlane.xlu1 %621  ;;  %v1009_v22 = vsel %vm1008_vm6, %v888_v42, %v1007_v13 }
 0x3ad   :  { %v892_v41 = vrot.slane %v622_v46, %v5070_v24  ;;  %v905_v17 = vrot.slane %v5395_v54, %v5073_v26  ;;  %v1124_v54 = vrot.slane %v5251_v33, %v5073_v26  ;;  %v1120_v33 = vrot.slane %v5245_v30, %v5070_v24 }
 0x3af   :  { %v1125_v30 = vsel %vm869_vm4, %v1124_v54, %v1120_v33 }
 0x3b0   :  { %v5397_v56 = vpop.xlane.xlu0 %654  ;;  %v5399_v35 = vpop.xlane.xlu1 %633 }
 0x3b4   :  { %v625_v53 = vpop.xlane.xlu0 %624  ;;  %v5401_v52 = vpop.xlane.xlu1 %639 }
 0x3b5   :  { %v896_v16 = vrot.slane %v625_v53, %v5073_v26  ;;  %v919_v11 = vrot.slane %v5401_v52, %v5070_v24 }
 0x3b7   :  { %v897_v10 = vsel %vm869_vm4, %v896_v16, %v892_v41  ;;  %v1102_v16 = vrot.slane %v5229_v19, %v5070_v24  ;;  %v1098_v19 = vsel %vm869_vm4, %v1097_v61, %v1093_v48 }
 0x3b8   :  { %v637_v60 = vpop.xlane.xlu0 %636  ;;  %v5403_v28 = vpop.xlane.xlu1 %657  ;;  %v1011_v3 = vsel %vm1010_vm7, %v897_v10, %v1009_v22  ;;  %v1209_v48 = vsel %vm1010_vm7, %v1098_v19, %v1208_v57 }
 0x3b9   :  { %v914_v44 = vrot.slane %v637_v60, %v5073_v26  ;;  %v910_v60 = vrot.slane %v5399_v35, %v5070_v24  ;;  %v1107_v25 = vsel %vm869_vm4, %v1106_v59, %v1102_v16  ;;  %v1134_v59 = vsel %vm869_vm4, %v1133_v0, %v1129_v49 }
 0x3ba   :  { %v1210_v42 = vsel %vm1012_vm8, %v1107_v25, %v1209_v48  ;;  %v1151_v16 = vrot.slane %v5215_v8, %v5073_v26 }
 0x3bb   :  { %v915_v35 = vsel %vm869_vm4, %v914_v44, %v910_v60  ;;  %v1211_v10 = vsel %vm1014_vm9, %v1116_v1, %v1210_v42  ;;  %v941_v60 = vrot.slane %v5397_v56, %v5073_v26  ;;  %v937_v56 = vrot.slane %v5393_v4, %v5070_v24 }
 0x3bc   :  { %v5405_v55 = vpop.xlane.xlu0 %642  ;;  %v5407_v62 = vpop.xlane.xlu1 %663 }
 0x3bd   :  { %v923_v46 = vrot.slane %v5405_v55, %v5073_v26  ;;  %v901_v55 = vrot.slane %v5391_v40, %v5070_v24 }
 0x3bf   :  { %v906_v40 = vsel %vm869_vm4, %v905_v17, %v901_v55  ;;  %v924_v7 = vsel %vm869_vm4, %v923_v46, %v919_v11  ;;  %v1212_v17 = vsel %vm1016_vm10, %v1125_v30, %v1211_v10  ;;  %v1138_v46 = vrot.slane %v5205_v2, %v5070_v24 }
 0x3c0   :  { %v5419_v43 = vpop.xlane.xlu0 %660  ;;  %v5421_v38 = vpop.xlane.xlu1 %675  ;;  %v1013_v51 = vsel %vm1012_vm8, %v906_v40, %v1011_v3  ;;  %v1213_v22 = vsel %vm1018_vm11, %v1134_v59, %v1212_v17  ;;  %v1147_v2 = vrot.slane %v5209_v5, %v5070_v24  ;;  %v5525_v3 = vld [vmem:[#allocation10] sm:$0xff]  ;;  %v1160_v5 = vrot.slane %v5223_v14, %v5073_v26 }
 0x3c1   :  { %v1015_v61 = vsel %vm1014_vm9, %v915_v35, %v1013_v51  ;;  %v950_v37 = vrot.slane %v5419_v43, %v5073_v26  ;;  %7012 = vst [vmem:[#allocation52_spill] sm:$0xff] %v5525_v3  ;;  %v942_v35 = vsel %vm869_vm4, %v941_v60, %v937_v56  ;;  %v1165_v14 = vrot.slane %v5225_v15, %v5070_v24 }
 0x3c2   :  { %v1017_v12 = vsel %vm1016_vm10, %v924_v7, %v1015_v61  ;;  %v1152_v25 = vsel %vm869_vm4, %v1151_v16, %v1147_v2  ;;  %v1178_v15 = vrot.slane %v5239_v27, %v5073_v26  ;;  %v1187_v61 = vrot.slane %v5247_v31, %v5073_v26 }
 0x3c3   :  { %v1174_v27 = vrot.slane %v5233_v21, %v5070_v24  ;;  %vm190_vm12 = vcmp.lt.f32.partialorder %v5525_v3, -1.0 }
 0x3c4   :  { %v5435_v45 = vpop.xlane.xlu0 %666  ;;  %v646_v47 = vpop.xlane.xlu1 %645 }
 0x3c5   :  { %v928_v39 = vrot.slane %v646_v47, %v5070_v24  ;;  %v1142_v47 = vrot.slane %v5211_v6, %v5073_v26  ;;  %v959_v6 = vrot.slane %v5435_v45, %v5073_v26  ;;  %v955_v45 = vrot.slane %v5407_v62, %v5070_v24 }
 0x3c6   :  { %v1169_v62 = vrot.slane %v5231_v20, %v5073_v26  ;;  %v1179_v21 = vsel %vm869_vm4, %v1178_v15, %v1174_v27 }
 0x3c7   :  { %v1143_v8 = vsel %vm869_vm4, %v1142_v47, %v1138_v46  ;;  %v960_v0 = vsel %vm869_vm4, %v959_v6, %v955_v45  ;;  %v1183_v47 = vrot.slane %v5241_v29, %v5070_v24 }
 0x3c8   :  { %v5458_v53 = vpop.xlane.xlu0 %678  ;;  %v5460_v23 = vpop.xlane.xlu1 %669 }
 0x3c9   :  { %v977_v20 = vrot.slane %v5458_v53, %v5073_v26  ;;  %v1188_v29 = vsel %vm869_vm4, %v1187_v61, %v1183_v47  ;;  %v7017_v47 = vld [vmem:[#allocation18_spill] sm:$0xff] }
 0x3cc   :  { %v649_v63 = vpop.xlane.xlu0 %648  ;;  %v5486_v52 = vpop.xlane.xlu1 %681 }
 0x3cd   :  { %v932_v41 = vrot.slane %v649_v63, %v5073_v26  ;;  %v982_v51 = vrot.slane %v5486_v52, %v5070_v24  ;;  %v1170_v52 = vsel %vm869_vm4, %v1169_v62, %v1165_v14  ;;  %v7015_v62 = vld [vmem:[#allocation17_spill] sm:$0xff] }
 0x3cf   :  { %v933_v34 = vsel %vm869_vm4, %v932_v41, %v928_v39  ;;  %v973_v41 = vrot.slane %v5421_v38, %v5070_v24  ;;  %v1196_v38 = vrot.slane %v5255_v36, %v5073_v26  ;;  %v1192_v36 = vrot.slane %v5249_v32, %v5070_v24 }
 0x3d0   :  { %v673_v44 = vpop.xlane.xlu0 %672  ;;  %v1019_v57 = vsel %vm1018_vm11, %v933_v34, %v1017_v12  ;;  %v688_v18 = vpop.xlane.xlu1 %687 }
 0x3d1   :  { %v1029_v13 = vadd.f32 %v1019_v57, %v5091_v50  ;;  %v946_v50 = vrot.slane %v5403_v28, %v5070_v24  ;;  %v968_v43 = vrot.slane %v673_v44, %v5073_v26  ;;  %v964_v28 = vrot.slane %v5460_v23, %v5070_v24 }
 0x3d2   :  { %v1156_v23 = vrot.slane %v5217_v9, %v5070_v24  ;;  %v991_v48 = vrot.slane %v688_v18, %v5070_v24  ;;  %v978_v59 = vsel %vm869_vm4, %v977_v20, %v973_v41  ;;  %v1214_v57 = vsel %vm1006_vm5, %v1152_v25, %v1143_v8  ;;  %v7014_v25 = vld [vmem:[#allocation16_spill] sm:$0xff] }
 0x3d3   :  { %v1223_v54 = vadd.f32 %v1213_v22, %v1029_v13  ;;  %v951_v11 = vsel %vm869_vm4, %v950_v37, %v946_v50  ;;  %v969_v4 = vsel %vm869_vm4, %v968_v43, %v964_v28  ;;  %v1197_v18 = vsel %vm869_vm4, %v1196_v38, %v1192_v36 }
 0x3d4   :  { %v685_v55 = vpop.xlane.xlu0 %684  ;;  %v1020_v40 = vsel %vm1006_vm5, %v951_v11, %v942_v35  ;;  %v694_v7 = vpop.xlane.xlu1 %693  ;;  %v1161_v30 = vsel %vm869_vm4, %v1160_v5, %v1156_v23  ;;  %v5599_v11 = vld [vmem:[#allocation10 + $0x8] sm:$0xff]  ;;  %v7016_v23 = vmov 0.0  }
 0x3d5   :  { %v1225_v19 = vmul.f32 0.20412415, %v1223_v54  ;;  %v986_v1 = vrot.slane %v685_v55, %v5073_v26  ;;  %v1021_v49 = vsel %vm1008_vm6, %v960_v0, %v1020_v40  ;;  %v1000_v31 = vrot.slane %v694_v7, %v5070_v24  ;;  %7013 = vst [vmem:[#allocation53_spill] sm:$0xff] %v5599_v11 }
 0x3d6   :  { %v1022_v53 = vsel %vm1010_vm7, %v969_v4, %v1021_v49  ;;  %v1215_v17 = vsel %vm1008_vm6, %v1161_v30, %v1214_v57  ;;  %vm191_vm13 = vcmp.lt.f32.partialorder %v5599_v11, -1.0 }
 0x3d7   :  { %v5542_v33 = vadd.f32 %v1225_v19, %v5525_v3  ;;  %v987_v42 = vsel %vm869_vm4, %v986_v1, %v982_v51  ;;  %v1023_v10 = vsel %vm1012_vm8, %v978_v59, %v1022_v53  ;;  %v1216_v6 = vsel %vm1010_vm7, %v1170_v52, %v1215_v17 }
 0x3d8   :  { %v691_v63 = vpop.xlane.xlu0 %690  ;;  %v1024_v37 = vsel %vm1014_vm9, %v987_v42, %v1023_v10  ;;  %v822_v13 = vpop.xlane.xlu1 %821  ;;  %v1217_v32 = vsel %vm1012_vm8, %v1179_v21, %v1216_v6 }
 0x3d9   :  { %v995_v39 = vrot.slane %v691_v63, %v5073_v26  ;;  %v1229_v9 = vsel %vm601_vm3, %v5542_v33, -inf  ;;  %v1201_v50 = vrot.slane %v822_v13, %v5070_v24  ;;  %v1218_v54 = vsel %vm1014_vm9, %v1188_v29, %v1217_v32  ;;  %v7018_v13 = vld [vmem:[#allocation19_spill] sm:$0xff] }
 0x3da   :  { %1230 = vmax.xlane.f32.xlu1 %v1229_v9  ;;  %v1219_v45 = vsel %vm1016_vm10, %v1197_v18, %v1218_v54 }
 0x3db   :  { %v996_v12 = vsel %vm869_vm4, %v995_v39, %v991_v48 }
 0x3dc   :  { %v697_v34 = vpop.xlane.xlu0 %696  ;;  %v1025_v46 = vsel %vm1016_vm10, %v996_v12, %v1024_v37 }
 0x3dd   :  { %v1004_v44 = vrot.slane %v697_v34, %v5073_v26 }
 0x3df   :  { %v1005_v16 = vsel %vm869_vm4, %v1004_v44, %v1000_v31 }
 0x3e0   :  { %v825_v22 = vpop.xlane.xlu0 %824  ;;  %v1026_v60 = vsel %vm1018_vm11, %v1005_v16, %v1025_v46 }
 0x3e1   :  { %v1205_v43 = vrot.slane %v825_v22, %v5073_v26  ;;  %v1030_v8 = vadd.f32 %v1026_v60, %v5097_v58 }
 0x3e3   :  { %v1206_v2 = vsel %vm869_vm4, %v1205_v43, %v1201_v50 }
 0x3e4   :  { %v1220_v55 = vsel %vm1018_vm11, %v1206_v2, %v1219_v45 }
 0x3e5   :  { %v1224_v56 = vadd.f32 %v1220_v55, %v1030_v8 }
 0x3e7   :  { %v1226_v28 = vmul.f32 0.20412415, %v1224_v56 }
 0x3e9   :  { %v1228_v19 = vadd.f32 %v1226_v28, %v5599_v11 }
 0x3eb   :  { %1307 = vrot.lane.b32.xlu1 %v7014_v25, %s4964_s25  ;;  %v1232_v5 = vsel %vm601_vm3, %v1228_v19, -inf }
 0x3ec   :  { %1233 = vmax.xlane.f32.xlu0 %v1232_v5 }
 0x3ef   :  { %1303 = vrot.lane.b32.xlu1 %v7015_v62, %s4965_s26 }
 0x402   :  { %1305 = vrot.lane.b32.xlu0 %v7015_v62, %s4964_s25 }
 0x463   :  { %v1231_v58 = vpop.xlane.xlu1 %1230 }
 0x464   :  { %v1235_v0 = vsub.f32 %v5542_v33, %v1231_v58 }
 0x466   :  { %v1237_v35 = vmul.f32 1.442695, %v1235_v0 }
 0x467   :  { %v1308_v4 = vpop.permute.xlu1 %1307 }
 0x468   :  { %4624 = vpow2.f32 %v1237_v35  ;;  %v1316_v1 = vsel %vm262_vm2, %v1308_v4, 0 }
 0x469   :  { %4536 = vmatpush3.bf16.xpose.msra.mxu1 %v1316_v1 }
 0x46a   :  { %4537 = vmatprep.subr.bf16.mxu1 %v7016_v23 }
 0x46b   :  { %v1304_v33 = vpop.permute.xlu1 %1303 }
 0x475   :  { %v4625_v14 = vpop.eup %4624  ;;  %v1234_v40 = vpop.xlane.xlu0 %1233 }
 0x476   :  { %v1236_v20 = vsub.f32 %v1228_v19, %v1234_v40  ;;  %v1241_v7 = vsel %vm601_vm3, %v4625_v14, 0.0 }
 0x477   :  { %1242 = vadd.xlane.f32.xlu1 %v1241_v7 }
 0x478   :  { %v1239_v63 = vmul.f32 1.442695, %v1236_v20 }
 0x479   :  { %v1306_v49 = vpop.permute.xlu0 %1305 }
 0x47a   :  { %4626 = vpow2.f32 %v1239_v63  ;;  %v1313_v51 = vsel %vm262_vm2, %v1306_v49, 0 }
 0x47b   :  { %4538 = vmatpush3.bf16.xpose.msra.mxu1 %v1313_v51 }
 0x47c   :  { %4555 = vmatprep.subr.bf16.mxu1 %v7016_v23 }
 0x482   :  { %4540 = vmatmul.mubr.msk.bf16.vlgmr.msra.gmra.mxu1 %vm262_vm2, %v1304_v33 }
 0x483   :  { %4559 = vmatprep.mubr.msk.bf16.mxu1 %vm4960_vm1, %v7016_v23 }
 0x487   :  { %v4627_v39 = vpop.eup %4626 }
 0x488   :  { %1359 = vrot.lane.b32.xlu1 %v7014_v25, %s4965_s26  ;;  %v1244_v9 = vsel %vm601_vm3, %v4627_v39, 0.0 }
 0x489   :  { %1245 = vadd.xlane.f32.xlu0 %v1244_v9 }
 0x49f   :  { %1254 = vrot.lane.b32.xlu0 %v7015_v62, %s4951_s24  ;;  %s4966_s24 = smov 80  }
 0x500   :  { %v1243_v15 = vpop.xlane.xlu1 %1242 }
 0x501   :  { %4628 = vrcp.f32 %v1243_v15 }
 0x504   :  { %v1360_v42 = vpop.permute.xlu1 %1359 }
 0x505   :  { %v1362_v12 = vsel %vm262_vm2, %v1360_v42, 0 }
 0x50e   :  { %v4629_v48 = vpop.eup %4628 }
 0x50f   :  { %v1249_v30 = vmul.f32 %v4629_v48, %v4625_v14 }
 0x511   :  { %v1251_v27 = vsel %vm190_vm12, 0.0, %v1249_v30  ;;  %v7019_v30 = vld [vmem:[#allocation20_spill] sm:$0xff] }
 0x512   :  { %v1246_v41 = vpop.xlane.xlu0 %1245 }
 0x513   :  { %4630 = vrcp.f32 %v1246_v41 }
 0x516   :  { %v1255_v53 = vpop.permute.xlu0 %1254 }
 0x517   :  { %4530 = vmatpush3.bf16.msra.mxu0 %v1255_v53 }
 0x518   :  { %4543 = vmatprep.subr.bf16.mxu0 %v7016_v23 }
 0x520   :  { %v4631_v52 = vpop.eup %4630 }
 0x521   :  { %v1250_v61 = vmul.f32 %v4631_v52, %v4627_v39 }
 0x523   :  { %v1252_v38 = vsel %vm191_vm13, 0.0, %v1250_v61  ;;  %v7020_v61 = vld [vmem:[#allocation21_spill] sm:$0xff] }
 0x524   :  { %v1253_v59 = vpack.c.bf16 %v1252_v38, %v1251_v27  ;;  %v7021_v38 = vld [vmem:[#allocation22_spill] sm:$0xff] }
 0x526   :  { %4532 = vmatmul.mubr.msk.bf16.vlgmr.msra.gmra.mxu0 %vm601_vm3, %v1253_v59 }
 0x527   :  { %4544 = vmatpush3.bf16.xpose.msra.mxu0 %v1362_v12  ;;  %4545 = vmatprep.mubr.msk.bf16.mxu0 %vm4960_vm1, %v7016_v23  ;;  %v7022_v12 = vld [vmem:[#allocation24_spill] sm:$0xff] }
 0x528   :  { %4549 = vmatprep.subr.bf16.mxu0 %v7016_v23 }
 0x52e   :  { %4546 = vmatmul.mubr.msk.bf16.vlgmr.msra.gmra.mxu0 %vm262_vm2, %v1306_v49 }
 0x52f   :  { %4551 = vmatprep.mubr.msk.bf16.mxu0 %vm4960_vm1, %v7016_v23 }
 0x542   :  { %v5634_v34 = vpop.f32.mrf.mxu1 }
 0x543   :  { %v1414_v10 = vrot.slane %v5634_v34, %v7017_v47  ;;  %v1407_v60 = vcombine.high %v5634_v34, %v5634_v34 }
 0x544   :  { %v4541_v31 = vpop.f32.mrf.mxu1 }
 0x545   :  { %v1422_v44 = vcombine.high %v1414_v10, %v1414_v10  ;;  %v1430_v57 = vrot.slane %v1414_v10, %v7017_v47  ;;  %v1421_v2 = vrot.slane %v1407_v60, %v7017_v47  ;;  %v7026_v60 = vld [vmem:[#allocation38_spill] sm:$0xff] }
 0x546   :  { %v5639_v21 = vpop.f32.mrf.mxu1 }
 0x547   :  { %v1463_v36 = vrot.slane %v5639_v21, %v7017_v47  ;;  %v1508_v17 = vrot.slane %v1430_v57, %v7018_v13  ;;  %v1444_v29 = vrot.slane %v1422_v44, %v7017_v47  ;;  %v1452_v32 = vcombine.high %v1430_v57, %v1430_v57 }
 0x548   :  { %v4542_v37 = vpop.f32.mrf.mxu1  ;;  %v1456_v43 = vcombine.high %v5639_v21, %v5639_v21  ;;  %v1423_v19 = vcombine.high %v1421_v2, %v1421_v2  ;;  %v1437_v5 = vrot.slane %v1421_v2, %v7017_v47  ;;  %v7027_v2 = vld [vmem:[#allocation23_spill] sm:$0xff] }
 0x549   :  { %v1471_v46 = vcombine.high %v1463_v36, %v1463_v36  ;;  %v1479_v16 = vrot.slane %v1463_v36, %v7017_v47  ;;  %1569 = vrot.lane.b32.xlu1 %v1508_v17, %s4963_s2  ;;  %v1512_v6 = vrot.slane %v1444_v29, %v7018_v13  ;;  %v1516_v8 = vrot.slane %v1452_v32, %v7018_v13  ;;  %v7023_v36 = vld [vmem:[#allocation27_spill] sm:$0xff]  ;;  %v7024_v17 = vld [vmem:[#allocation30_spill] sm:$0xff] }
 0x54a   :  { %v1454_v45 = vcombine.high %v1444_v29, %v1444_v29  ;;  %v1470_v55 = vrot.slane %v1456_v43, %v7017_v47  ;;  %v1524_v1 = vrot.slane %v1437_v5, %v7018_v13  ;;  %v1451_v14 = vrot.slane %v1423_v19, %v7017_v47 }
 0x54b   :  { %v1540_v18 = vrot.slane %v1479_v16, %v7018_v13  ;;  %v1493_v22 = vrot.slane %v1471_v46, %v7017_v47  ;;  %1571 = vrot.lane.b32.xlu0 %v1512_v6, %s4963_s2  ;;  %v1501_v54 = vcombine.high %v1479_v16, %v1479_v16  ;;  %v1453_v63 = vcombine.high %v1437_v5, %v1437_v5  ;;  %v7029_v5 = vld [vmem:[#allocation37_spill] sm:$0xff] }
 0x54c   :  { %v1520_v58 = vrot.slane %v1454_v45, %v7018_v13  ;;  %v1472_v0 = vcombine.high %v1470_v55, %v1470_v55  ;;  %v1486_v35 = vrot.slane %v1470_v55, %v7017_v47  ;;  %v1528_v7 = vrot.slane %v1451_v14, %v7018_v13  ;;  %v7028_v45 = vld [vmem:[#allocation26_spill] sm:$0xff] }
 0x54d   :  { %v1544_v50 = vrot.slane %v1493_v22, %v7018_v13  ;;  %1585 = vrot.lane.b32.xlu1 %v1540_v18, %s4963_s2  ;;  %v1503_v56 = vcombine.high %v1493_v22, %v1493_v22  ;;  %v1548_v28 = vrot.slane %v1501_v54, %v7018_v13  ;;  %v1532_v33 = vrot.slane %v1453_v63, %v7018_v13  ;;  %v7025_v18 = vld [vmem:[#allocation35_spill] sm:$0xff] }
 0x54e   :  { %v1556_v40 = vrot.slane %v1486_v35, %v7018_v13  ;;  %v1500_v20 = vrot.slane %v1472_v0, %v7017_v47  ;;  %v1502_v51 = vcombine.high %v1486_v35, %v1486_v35  ;;  %v1455_v39 = vcombine.high %v1451_v14, %v1451_v14  ;;  %v7030_v0 = vld [vmem:[#allocation40_spill] sm:$0xff] }
 0x54f   :  { %1587 = vrot.lane.b32.xlu0 %v1544_v50, %s4963_s2  ;;  %v1552_v4 = vrot.slane %v1503_v56, %v7018_v13 }
 0x550   :  { %v1560_v49 = vrot.slane %v1500_v20, %v7018_v13  ;;  %v1564_v9 = vrot.slane %v1502_v51, %v7018_v13  ;;  %v1504_v15 = vcombine.high %v1500_v20, %v1500_v20  ;;  %v1536_v41 = vrot.slane %v1455_v39, %v7018_v13  ;;  %v7033_v39 = vld [vmem:[#allocation43_spill] sm:$0xff] }
 0x551   :  { %1573 = vrot.lane.b32.xlu1 %v1516_v8, %s4963_s2 }
 0x552   :  { %v1568_v53 = vrot.slane %v1504_v15, %v7018_v13  ;;  %v7034_v15 = vld [vmem:[#allocation46_spill] sm:$0xff] }
 0x553   :  { %1589 = vrot.lane.b32.xlu0 %v1548_v28, %s4963_s2 }
 0x555   :  { %1575 = vrot.lane.b32.xlu1 %v1520_v58, %s4963_s2 }
 0x557   :  { %1591 = vrot.lane.b32.xlu0 %v1552_v4, %s4963_s2 }
 0x559   :  { %1577 = vrot.lane.b32.xlu1 %v1524_v1, %s4963_s2 }
 0x55b   :  { %1593 = vrot.lane.b32.xlu0 %v1556_v40, %s4963_s2  ;;  %v7031_v40 = vld [vmem:[#allocation29_spill] sm:$0xff] }
 0x55d   :  { %1579 = vrot.lane.b32.xlu1 %v1528_v7, %s4963_s2  ;;  %v7032_v7 = vld [vmem:[#allocation32_spill] sm:$0xff] }
 0x55f   :  { %1595 = vrot.lane.b32.xlu0 %v1560_v49, %s4963_s2 }
 0x561   :  { %1581 = vrot.lane.b32.xlu1 %v1532_v33, %s4963_s2 }
 0x563   :  { %1597 = vrot.lane.b32.xlu0 %v1564_v9, %s4963_s2 }
 0x565   :  { %1583 = vrot.lane.b32.xlu1 %v1536_v41, %s4963_s2 }
 0x567   :  { %1599 = vrot.lane.b32.xlu0 %v1568_v53, %s4963_s2 }
 0x5bb   :  { %v1570_v48 = vpop.permute.xlu1 %1569 }
 0x5bc   :  { %v1617_v52 = vmul.f32 %v1570_v48, %v7019_v30  ;;  %v1618_v42 = vmul.f32 %v1570_v48, %v7020_v61 }
 0x5bd   :  { %v1572_v27 = vpop.permute.xlu0 %1571 }
 0x5be   :  { %v1619_v59 = vmul.f32 %v1572_v27, %v7021_v38  ;;  %v1620_v10 = vmul.f32 %v1572_v27, %v7022_v12  ;;  %v1649_v31 = vsel %vm601_vm3, %v1617_v52, 0.0  ;;  %v1652_v44 = vsel %vm601_vm3, %v1618_v42, 0.0  ;;  %v7035_v52 = vld [vmem:[#allocation25_spill] sm:$0xff]  ;;  %v7036_v42 = vld [vmem:[#allocation28_spill] sm:$0xff] }
 0x5bf   :  { %1650 = vadd.xlane.f32.xlu1 %v1649_v31  ;;  %v1586_v57 = vpop.permute.xlu1 %1585  ;;  %1653 = vadd.xlane.f32.xlu0 %v1652_v44  ;;  %v7038_v44 = vld [vmem:[#allocation42_spill] sm:$0xff] }
 0x5c0   :  { %v1633_v37 = vmul.f32 %v1586_v57, %v7023_v36  ;;  %v1634_v29 = vmul.f32 %v1586_v57, %v7024_v17  ;;  %v1658_v46 = vsel %vm601_vm3, %v1620_v10, 0.0  ;;  %v1655_v16 = vsel %vm601_vm3, %v1619_v59, 0.0  ;;  %v7037_v10 = vld [vmem:[#allocation39_spill] sm:$0xff] }
 0x5c1   :  { %v1588_v6 = vpop.permute.xlu0 %1587 }
 0x5c2   :  { %v1635_v22 = vmul.f32 %v1588_v6, %v7025_v18  ;;  %v1636_v32 = vmul.f32 %v1588_v6, %v7026_v60  ;;  %v1700_v50 = vsel %vm601_vm3, %v1634_v29, 0.0  ;;  %v1697_v43 = vsel %vm601_vm3, %v1633_v37, 0.0  ;;  %v7039_v29 = vld [vmem:[#allocation31_spill] sm:$0xff] }
 0x5c3   :  { %1659 = vadd.xlane.f32.xlu1 %v1658_v46  ;;  %1656 = vadd.xlane.f32.xlu0 %v1655_v16  ;;  %v1574_v54 = vpop.permute.xlu1 %1573  ;;  %v7040_v16 = vld [vmem:[#allocation34_spill] sm:$0xff] }
 0x5c4   :  { %v1621_v8 = vmul.f32 %v1574_v54, %v7027_v2  ;;  %v1622_v55 = vmul.f32 %v1574_v54, %v7028_v45  ;;  %v1706_v56 = vsel %vm601_vm3, %v1636_v32, 0.0  ;;  %v1703_v28 = vsel %vm601_vm3, %v1635_v22, 0.0  ;;  %v7042_v54 = vld [vmem:[#allocation48_spill] sm:$0xff] }
 0x5c5   :  { %v1590_v19 = vpop.permute.xlu0 %1589 }
 0x5c6   :  { %v1637_v58 = vmul.f32 %v1590_v19, %v7029_v5  ;;  %v1638_v35 = vmul.f32 %v1590_v19, %v7030_v0  ;;  %v1664_v4 = vsel %vm601_vm3, %v1622_v55, 0.0  ;;  %v1661_v1 = vsel %vm601_vm3, %v1621_v8, 0.0  ;;  %v7043_v19 = vld [vmem:[#allocation33_spill] sm:$0xff] }
 0x5c7   :  { %1701 = vadd.xlane.f32.xlu1 %v1700_v50  ;;  %1698 = vadd.xlane.f32.xlu0 %v1697_v43  ;;  %v1576_v14 = vpop.permute.xlu1 %1575  ;;  %v7041_v50 = vld [vmem:[#allocation45_spill] sm:$0xff] }
 0x5c8   :  { %v1623_v20 = vmul.f32 %v1576_v14, %v7031_v40  ;;  %v1624_v63 = vmul.f32 %v1576_v14, %v7032_v7  ;;  %v1712_v49 = vsel %vm601_vm3, %v1638_v35, 0.0  ;;  %v1709_v51 = vsel %vm601_vm3, %v1637_v58, 0.0  ;;  %v7044_v58 = vld [vmem:[#allocation36_spill] sm:$0xff] }
 0x5c9   :  { %v1592_v33 = vpop.permute.xlu0 %1591 }
 0x5ca   :  { %v1639_v9 = vmul.f32 %v1592_v33, %v7033_v39  ;;  %v1640_v41 = vmul.f32 %v1592_v33, %v7034_v15  ;;  %v1670_v53 = vsel %vm601_vm3, %v1624_v63, 0.0  ;;  %v1667_v48 = vsel %vm601_vm3, %v1623_v20, 0.0  ;;  %v7045_v20 = vld [vmem:[#allocation47_spill] sm:$0xff]  ;;  %v7046_v63 = vld [vmem:[#allocation50_spill] sm:$0xff] }
 0x5cb   :  { %1707 = vadd.xlane.f32.xlu1 %v1706_v56  ;;  %1704 = vadd.xlane.f32.xlu0 %v1703_v28  ;;  %v1578_v30 = vpop.permute.xlu1 %1577 }
 0x5cc   :  { %v1625_v61 = vmul.f32 %v1578_v30, %v7035_v52  ;;  %v1626_v27 = vmul.f32 %v1578_v30, %v7036_v42  ;;  %v1718_v38 = vsel %vm601_vm3, %v1640_v41, 0.0  ;;  %v1715_v59 = vsel %vm601_vm3, %v1639_v9, 0.0  ;;  %v7047_v41 = vld [vmem:[#allocation41_spill] sm:$0xff] }
 0x5cd   :  { %v1594_v12 = vpop.permute.xlu0 %1593 }
 0x5ce   :  { %v1641_v31 = vmul.f32 %v1594_v12, %v7037_v10  ;;  %v1642_v57 = vmul.f32 %v1594_v12, %v7038_v44  ;;  %v1676_v36 = vsel %vm601_vm3, %v1626_v27, 0.0  ;;  %v1673_v37 = vsel %vm601_vm3, %v1625_v61, 0.0  ;;  %v7050_v12 = vld [vmem:[#allocation51_spill] sm:$0xff] }
 0x5cf   :  { %1665 = vadd.xlane.f32.xlu1 %v1664_v4  ;;  %1662 = vadd.xlane.f32.xlu0 %v1661_v1  ;;  %v1580_v17 = vpop.permute.xlu1 %1579 }
 0x5d0   :  { %v1627_v46 = vmul.f32 %v1580_v17, %v7039_v29  ;;  %v1628_v6 = vmul.f32 %v1580_v17, %v7040_v16  ;;  %v1724_v18 = vsel %vm601_vm3, %v1642_v57, 0.0  ;;  %v1721_v22 = vsel %vm601_vm3, %v1641_v31, 0.0  ;;  %v4657_v29 = vld [vmem:[#allocation8] sm:$0xff] }
 0x5d1   :  { %v1596_v60 = vpop.permute.xlu0 %1595 }
 0x5d2   :  { %v1643_v43 = vmul.f32 %v1596_v60, %v7041_v50  ;;  %v1644_v2 = vmul.f32 %v1596_v60, %v7042_v54  ;;  %v1682_v8 = vsel %vm601_vm3, %v1628_v6, 0.0  ;;  %v1679_v45 = vsel %vm601_vm3, %v1627_v46, 0.0  ;;  %v4659_v60 = vld [vmem:[#allocation8 + $0x10] sm:$0xff]  ;;  %v4660_v54 = vld [vmem:[#allocation8 + $0x88] sm:$0xff] }
 0x5d3   :  { %1713 = vadd.xlane.f32.xlu1 %v1712_v49  ;;  %1710 = vadd.xlane.f32.xlu0 %v1709_v51  ;;  %v1582_v55 = vpop.permute.xlu1 %1581 }
 0x5d4   :  { %v1629_v5 = vmul.f32 %v1582_v55, %v7043_v19  ;;  %v1630_v0 = vmul.f32 %v1582_v55, %v7044_v58  ;;  %v1730_v35 = vsel %vm601_vm3, %v1644_v2, 0.0  ;;  %v1727_v4 = vsel %vm601_vm3, %v1643_v43, 0.0 }
 0x5d5   :  { %v1598_v1 = vpop.permute.xlu0 %1597 }
 0x5d6   :  { %v1645_v7 = vmul.f32 %v1598_v1, %v7045_v20  ;;  %v1646_v49 = vmul.f32 %v1598_v1, %v7046_v63  ;;  %v1688_v51 = vsel %vm601_vm3, %v1630_v0, 0.0  ;;  %v1685_v33 = vsel %vm601_vm3, %v1629_v5, 0.0  ;;  %v4663_v5 = vld [vmem:[#allocation8 + $0x90] sm:$0xff] }
 0x5d7   :  { %1671 = vadd.xlane.f32.xlu1 %v1670_v53  ;;  %1668 = vadd.xlane.f32.xlu0 %v1667_v48  ;;  %v1584_v39 = vpop.permute.xlu1 %1583  ;;  %v7048_v48 = vld [vmem:[#allocation44_spill] sm:$0xff] }
 0x5d8   :  { %v1631_v53 = vmul.f32 %v1584_v39, %v7047_v41  ;;  %v1632_v30 = vmul.f32 %v1584_v39, %v7048_v48  ;;  %v1736_v52 = vsel %vm601_vm3, %v1646_v49, 0.0  ;;  %v1733_v61 = vsel %vm601_vm3, %v1645_v7, 0.0  ;;  %v4666_v49 = vld [vmem:[#allocation8 + $0xa8] sm:$0xff] }
 0x5d9   :  { %v1600_v42 = vpop.permute.xlu0 %1599 }
 0x5da   :  { %v1648_v10 = vmul.f32 %v1600_v42, %v7050_v12  ;;  %v1694_v31 = vsel %vm601_vm3, %v1632_v30, 0.0  ;;  %v1691_v44 = vsel %vm601_vm3, %v1631_v53, 0.0  ;;  %v4668_v53 = vld [vmem:[#allocation8 + $0x38] sm:$0xff]  ;;  %v4669_v30 = vld [vmem:[#allocation8 + $0x30] sm:$0xff] }
 0x5db   :  { %1719 = vadd.xlane.f32.xlu1 %v1718_v38  ;;  %1716 = vadd.xlane.f32.xlu0 %v1715_v59  ;;  %v7049_v38 = vld [vmem:[#allocation49_spill] sm:$0xff] }
 0x5dc   :  { %v1647_v59 = vmul.f32 %v1600_v42, %v7049_v38  ;;  %v1742_v57 = vsel %vm601_vm3, %v1648_v10, 0.0 }
 0x5df   :  { %1677 = vadd.xlane.f32.xlu1 %v1676_v36  ;;  %1674 = vadd.xlane.f32.xlu0 %v1673_v37  ;;  %v1739_v36 = vsel %vm601_vm3, %v1647_v59, 0.0  ;;  %v4656_v37 = vld [vmem:[#allocation8 + $0x8] sm:$0xff]  ;;  %v4671_v59 = vld [vmem:[#allocation8 + $0xb0] sm:$0xff] }
 0x5e3   :  { %1725 = vadd.xlane.f32.xlu1 %v1724_v18  ;;  %1722 = vadd.xlane.f32.xlu0 %v1721_v22  ;;  %v4658_v18 = vld [vmem:[#allocation8 + $0x18] sm:$0xff] }
 0x5e6   :  { %v1294_v32 = vpop.f32.mrf.mxu0 }
 0x5e7   :  { %1301 = vst.msk [vmem:[#allocation11] sm:$0xff] %vm262_vm2, %v1294_v32  ;;  %1683 = vadd.xlane.f32.xlu1 %v1682_v8  ;;  %1680 = vadd.xlane.f32.xlu0 %v1679_v45  ;;  %v4661_v8 = vld [vmem:[#allocation8 + $0x80] sm:$0xff] }
 0x5e8   :  { %v4533_v56 = vpop.f32.mrf.mxu0 }
 0x5ea   :  { %v1297_v28 = vpop.f32.mrf.mxu0 }
 0x5eb   :  { %1302 = vst.msk [vmem:[#allocation11 + $0x8] sm:$0xff] %vm262_vm2, %v1297_v28  ;;  %1731 = vadd.xlane.f32.xlu1 %v1730_v35  ;;  %1728 = vadd.xlane.f32.xlu0 %v1727_v4  ;;  %v4662_v28 = vld [vmem:[#allocation8 + $0x98] sm:$0xff]  ;;  %v4664_v4 = vld [vmem:[#allocation8 + $0x28] sm:$0xff] }
 0x5ec   :  { %v4534_v14 = vpop.f32.mrf.mxu0 }
 0x5ed   :  { %v4665_v14 = vld [vmem:[#allocation8 + $0x20] sm:$0xff] }
 0x5ee   :  { %v5740_v40 = vpop.f32.mrf.mxu0 }
 0x5ef   :  { %1689 = vadd.xlane.f32.xlu1 %v1688_v51  ;;  %1686 = vadd.xlane.f32.xlu0 %v1685_v33  ;;  %v1745_v46 = vmul.f32 %v4657_v29, %v5740_v40  ;;  %v1747_v32 = vmul.f32 %v4659_v60, %v5740_v40  ;;  %v1761_v45 = vmul.f32 %v4661_v8, %v5740_v40  ;;  %v4667_v33 = vld [vmem:[#allocation8 + $0xa0] sm:$0xff] }
 0x5f0   :  { %v4547_v9 = vpop.f32.mrf.mxu0  ;;  %v1763_v58 = vmul.f32 %v4663_v5, %v5740_v40  ;;  %v1749_v20 = vmul.f32 %v4665_v14, %v5740_v40  ;;  %v1765_v39 = vmul.f32 %v4667_v33, %v5740_v40  ;;  %v1767_v12 = vmul.f32 %v4671_v59, %v5740_v40 }
 0x5f1   :  { %v1777_v6 = vsel %vm601_vm3, %v1745_v46, 0.0  ;;  %v1783_v43 = vsel %vm601_vm3, %v1747_v32, 0.0  ;;  %v1825_v56 = vsel %vm601_vm3, %v1761_v45, 0.0  ;;  %v4674_v46 = vld [vmem:[#allocation8 + $0xc8] sm:$0xff]  ;;  %v4676_v32 = vld [vmem:[#allocation8 + $0x58] sm:$0xff] }
 0x5f2   :  { %v5746_v15 = vpop.f32.mrf.mxu0  ;;  %v1831_v35 = vsel %vm601_vm3, %v1763_v58, 0.0  ;;  %v1789_v63 = vsel %vm601_vm3, %v1749_v20, 0.0  ;;  %v1837_v41 = vsel %vm601_vm3, %v1765_v39, 0.0  ;;  %v4678_v45 = vld [vmem:[#allocation8 + $0xd8] sm:$0xff]  ;;  %v4680_v58 = vld [vmem:[#allocation8 + $0x68] sm:$0xff] }
 0x5f3   :  { %1737 = vadd.xlane.f32.xlu1 %v1736_v52  ;;  %1734 = vadd.xlane.f32.xlu0 %v1733_v61  ;;  %v1746_v17 = vmul.f32 %v4656_v37, %v5746_v15  ;;  %v1748_v22 = vmul.f32 %v4658_v18, %v5746_v15  ;;  %v1762_v2 = vmul.f32 %v4660_v54, %v5746_v15  ;;  %v4682_v20 = vld [vmem:[#allocation8 + $0xe8] sm:$0xff]  ;;  %v4684_v39 = vld [vmem:[#allocation8 + $0x78] sm:$0xff] }
 0x5f4   :  { %v4548_v27 = vpop.f32.mrf.mxu0  ;;  %v1764_v19 = vmul.f32 %v4662_v28, %v5746_v15  ;;  %v1750_v1 = vmul.f32 %v4664_v4, %v5746_v15  ;;  %v1766_v51 = vmul.f32 %v4666_v49, %v5746_v15  ;;  %v1752_v48 = vmul.f32 %v4668_v53, %v5746_v15 }
 0x5f5   :  { %v1780_v16 = vsel %vm601_vm3, %v1746_v17, 0.0  ;;  %v1786_v50 = vsel %vm601_vm3, %v1748_v22, 0.0  ;;  %v1828_v55 = vsel %vm601_vm3, %v1762_v2, 0.0  ;;  %v1751_v52 = vmul.f32 %v4669_v30, %v5740_v40  ;;  %v4670_v27 = vld [vmem:[#allocation8 + $0xb8] sm:$0xff] }
 0x5f6   :  { %v1834_v0 = vsel %vm601_vm3, %v1764_v19, 0.0  ;;  %v1792_v7 = vsel %vm601_vm3, %v1750_v1, 0.0  ;;  %v1840_v9 = vsel %vm601_vm3, %v1766_v51, 0.0  ;;  %v1798_v61 = vsel %vm601_vm3, %v1752_v48, 0.0 }
 0x5f7   :  { %1695 = vadd.xlane.f32.xlu1 %v1694_v31  ;;  %1692 = vadd.xlane.f32.xlu0 %v1691_v44  ;;  %v1795_v42 = vsel %vm601_vm3, %v1751_v52, 0.0  ;;  %v1768_v38 = vmul.f32 %v4670_v27, %v5746_v15  ;;  %v1843_v31 = vsel %vm601_vm3, %v1767_v12, 0.0  ;;  %v4672_v44 = vld [vmem:[#allocation8 + $0x48] sm:$0xff]  ;;  %v4686_v52 = vld [vmem:[#allocation8 + $0xf8] sm:$0xff] }
 0x5f9   :  { %v1846_v10 = vsel %vm601_vm3, %v1768_v38, 0.0 }
 0x5fb   :  { %1743 = vadd.xlane.f32.xlu1 %v1742_v57  ;;  %1740 = vadd.xlane.f32.xlu0 %v1739_v36  ;;  %v1754_v57 = vmul.f32 %v4672_v44, %v5746_v15  ;;  %v4673_v36 = vld [vmem:[#allocation8 + $0x40] sm:$0xff] }
 0x5fc   :  { %v1753_v37 = vmul.f32 %v4673_v36, %v5740_v40 }
 0x5fd   :  { %v1804_v17 = vsel %vm601_vm3, %v1754_v57, 0.0 }
 0x5fe   :  { %v1801_v29 = vsel %vm601_vm3, %v1753_v37, 0.0 }
 0x5ff   :  { %1781 = vadd.xlane.f32.xlu1 %v1780_v16  ;;  %1778 = vadd.xlane.f32.xlu0 %v1777_v6  ;;  %v1770_v16 = vmul.f32 %v4674_v46, %v5746_v15  ;;  %v4675_v6 = vld [vmem:[#allocation8 + $0xc0] sm:$0xff] }
 0x600   :  { %v1769_v18 = vmul.f32 %v4675_v6, %v5740_v40 }
 0x601   :  { %v1852_v22 = vsel %vm601_vm3, %v1770_v16, 0.0 }
 0x602   :  { %v1849_v60 = vsel %vm601_vm3, %v1769_v18, 0.0 }
 0x603   :  { %1787 = vadd.xlane.f32.xlu1 %v1786_v50  ;;  %1784 = vadd.xlane.f32.xlu0 %v1783_v43  ;;  %v1756_v50 = vmul.f32 %v4676_v32, %v5746_v15  ;;  %v4677_v43 = vld [vmem:[#allocation8 + $0x50] sm:$0xff] }
 0x604   :  { %v1755_v54 = vmul.f32 %v4677_v43, %v5740_v40 }
 0x605   :  { %v1810_v2 = vsel %vm601_vm3, %v1756_v50, 0.0 }
 0x606   :  { %v1807_v8 = vsel %vm601_vm3, %v1755_v54, 0.0 }
 0x607   :  { %1829 = vadd.xlane.f32.xlu1 %v1828_v55  ;;  %1826 = vadd.xlane.f32.xlu0 %v1825_v56  ;;  %v1772_v55 = vmul.f32 %v4678_v45, %v5746_v15  ;;  %v4679_v56 = vld [vmem:[#allocation8 + $0xd0] sm:$0xff] }
 0x608   :  { %v1771_v28 = vmul.f32 %v4679_v56, %v5740_v40 }
 0x609   :  { %v1858_v19 = vsel %vm601_vm3, %v1772_v55, 0.0 }
 0x60a   :  { %v1855_v5 = vsel %vm601_vm3, %v1771_v28, 0.0 }
 0x60b   :  { %1835 = vadd.xlane.f32.xlu1 %v1834_v0  ;;  %1832 = vadd.xlane.f32.xlu0 %v1831_v35  ;;  %v1758_v0 = vmul.f32 %v4680_v58, %v5746_v15  ;;  %v4681_v35 = vld [vmem:[#allocation8 + $0x60] sm:$0xff] }
 0x60c   :  { %v1757_v4 = vmul.f32 %v4681_v35, %v5740_v40 }
 0x60d   :  { %v1816_v1 = vsel %vm601_vm3, %v1758_v0, 0.0 }
 0x60e   :  { %v1813_v14 = vsel %vm601_vm3, %v1757_v4, 0.0 }
 0x60f   :  { %1793 = vadd.xlane.f32.xlu1 %v1792_v7  ;;  %1790 = vadd.xlane.f32.xlu0 %v1789_v63  ;;  %v1774_v7 = vmul.f32 %v4682_v20, %v5746_v15  ;;  %v4683_v63 = vld [vmem:[#allocation8 + $0xe0] sm:$0xff] }
 0x610   :  { %v1773_v49 = vmul.f32 %v4683_v63, %v5740_v40 }
 0x611   :  { %v1864_v51 = vsel %vm601_vm3, %v1774_v7, 0.0 }
 0x612   :  { %v1861_v33 = vsel %vm601_vm3, %v1773_v49, 0.0 }
 0x613   :  { %1841 = vadd.xlane.f32.xlu1 %v1840_v9  ;;  %1838 = vadd.xlane.f32.xlu0 %v1837_v41  ;;  %v1760_v9 = vmul.f32 %v4684_v39, %v5746_v15  ;;  %v4685_v41 = vld [vmem:[#allocation8 + $0x70] sm:$0xff] }
 0x614   :  { %v1759_v53 = vmul.f32 %v4685_v41, %v5740_v40 }
 0x615   :  { %v1822_v48 = vsel %vm601_vm3, %v1760_v9, 0.0 }
 0x616   :  { %v1819_v30 = vsel %vm601_vm3, %v1759_v53, 0.0 }
 0x617   :  { %1799 = vadd.xlane.f32.xlu1 %v1798_v61  ;;  %1796 = vadd.xlane.f32.xlu0 %v1795_v42  ;;  %v1776_v61 = vmul.f32 %v4686_v52, %v5746_v15  ;;  %v4687_v42 = vld [vmem:[#allocation8 + $0xf0] sm:$0xff] }
 0x618   :  { %v1775_v27 = vmul.f32 %v4687_v42, %v5740_v40 }
 0x619   :  { %v1870_v38 = vsel %vm601_vm3, %v1776_v61, 0.0 }
 0x61a   :  { %v1867_v59 = vsel %vm601_vm3, %v1775_v27, 0.0 }
 0x61b   :  { %1847 = vadd.xlane.f32.xlu1 %v1846_v10  ;;  %1844 = vadd.xlane.f32.xlu0 %v1843_v31 }
 0x61f   :  { %1805 = vadd.xlane.f32.xlu1 %v1804_v17  ;;  %1802 = vadd.xlane.f32.xlu0 %v1801_v29 }
 0x623   :  { %1853 = vadd.xlane.f32.xlu1 %v1852_v22  ;;  %1850 = vadd.xlane.f32.xlu0 %v1849_v60 }
 0x627   :  { %1811 = vadd.xlane.f32.xlu1 %v1810_v2  ;;  %1808 = vadd.xlane.f32.xlu0 %v1807_v8 }
 0x62b   :  { %1859 = vadd.xlane.f32.xlu1 %v1858_v19  ;;  %1856 = vadd.xlane.f32.xlu0 %v1855_v5 }
 0x62f   :  { %1817 = vadd.xlane.f32.xlu1 %v1816_v1  ;;  %1814 = vadd.xlane.f32.xlu0 %v1813_v14 }
 0x633   :  { %1865 = vadd.xlane.f32.xlu1 %v1864_v51  ;;  %1862 = vadd.xlane.f32.xlu0 %v1861_v33 }
 0x637   :  { %1823 = vadd.xlane.f32.xlu1 %v1822_v48  ;;  %1820 = vadd.xlane.f32.xlu0 %v1819_v30 }
 0x63b   :  { %1871 = vadd.xlane.f32.xlu1 %v1870_v38  ;;  %1868 = vadd.xlane.f32.xlu0 %v1867_v59 }
 0x648   :  { %v5822_v12 = vpop.xlane.xlu1 %1650  ;;  %v5824_v10 = vpop.xlane.xlu0 %1653 }
 0x649   :  { %v1908_v27 = vrot.slane %v5822_v12, %v5070_v24  ;;  %v1912_v38 = vrot.slane %v5824_v10, %v5073_v26 }
 0x64c   :  { %v1660_v31 = vpop.xlane.xlu1 %1659  ;;  %v1657_v44 = vpop.xlane.xlu0 %1656 }
 0x64d   :  { %v1921_v30 = vrot.slane %v1660_v31, %v5073_v26  ;;  %v1917_v52 = vrot.slane %v1657_v44, %v5070_v24 }
 0x64f   :  { %v1922_v59 = vsel %vm869_vm4, %v1921_v30, %v1917_v52 }
 0x650   :  { %v5826_v57 = vpop.xlane.xlu1 %1701  ;;  %v5828_v15 = vpop.xlane.xlu0 %1698 }
 0x651   :  { %v1984_v13 = vrot.slane %v5826_v57, %v5073_v26  ;;  %v1980_v31 = vrot.slane %v5828_v15, %v5070_v24 }
 0x653   :  { %v1985_v11 = vsel %vm869_vm4, %v1984_v13, %v1980_v31 }
 0x654   :  { %v5830_v36 = vpop.xlane.xlu1 %1707  ;;  %v5832_v40 = vpop.xlane.xlu0 %1704 }
 0x655   :  { %v1993_v44 = vrot.slane %v5830_v36, %v5073_v26  ;;  %v1989_v47 = vrot.slane %v5832_v40, %v5070_v24 }
 0x657   :  { %v1994_v3 = vsel %vm869_vm4, %v1993_v44, %v1989_v47 }
 0x658   :  { %v5834_v37 = vpop.xlane.xlu1 %1665  ;;  %v5836_v17 = vpop.xlane.xlu0 %1662 }
 0x659   :  { %v1930_v12 = vrot.slane %v5834_v37, %v5073_v26  ;;  %v1926_v10 = vrot.slane %v5836_v17, %v5070_v24 }
 0x65b   :  { %v1931_v23 = vsel %vm869_vm4, %v1930_v12, %v1926_v10 }
 0x65c   :  { %v5838_v29 = vpop.xlane.xlu1 %1713  ;;  %v5840_v46 = vpop.xlane.xlu0 %1710 }
 0x65d   :  { %v2002_v30 = vrot.slane %v5838_v29, %v5073_v26  ;;  %v1998_v57 = vrot.slane %v5840_v46, %v5070_v24 }
 0x65f   :  { %v2003_v47 = vsel %vm869_vm4, %v2002_v30, %v1998_v57 }
 0x660   :  { %v5842_v16 = vpop.xlane.xlu1 %1671  ;;  %v5844_v6 = vpop.xlane.xlu0 %1668 }
 0x661   :  { %v1939_v15 = vrot.slane %v5842_v16, %v5073_v26  ;;  %v1935_v36 = vrot.slane %v5844_v6, %v5070_v24  ;;  %v1913_v16 = vsel %vm869_vm4, %v1912_v38, %v1908_v27 }
 0x662   :  { %v2049_v6 = vsel %vm1006_vm5, %v1922_v59, %v1913_v16 }
 0x663   :  { %v1940_v13 = vsel %vm869_vm4, %v1939_v15, %v1935_v36  ;;  %v2050_v30 = vsel %vm1008_vm6, %v1931_v23, %v2049_v6 }
 0x664   :  { %v5846_v18 = vpop.xlane.xlu1 %1719  ;;  %v5848_v22 = vpop.xlane.xlu0 %1716 }
 0x665   :  { %v2011_v37 = vrot.slane %v5846_v18, %v5073_v26  ;;  %v2007_v17 = vrot.slane %v5848_v22, %v5070_v24 }
 0x667   :  { %v2012_v59 = vsel %vm869_vm4, %v2011_v37, %v2007_v17 }
 0x668   :  { %v5850_v60 = vpop.xlane.xlu1 %1677  ;;  %v5852_v32 = vpop.xlane.xlu0 %1674 }
 0x669   :  { %v1948_v29 = vrot.slane %v5850_v60, %v5073_v26  ;;  %v1944_v46 = vrot.slane %v5852_v32, %v5070_v24 }
 0x66c   :  { %v5854_v50 = vpop.xlane.xlu1 %1725  ;;  %v5856_v43 = vpop.xlane.xlu0 %1722 }
 0x66d   :  { %v2020_v18 = vrot.slane %v5854_v50, %v5073_v26  ;;  %v2016_v22 = vrot.slane %v5856_v43, %v5070_v24  ;;  %v1949_v50 = vsel %vm869_vm4, %v1948_v29, %v1944_v46 }
 0x670   :  { %v5858_v54 = vpop.xlane.xlu1 %1683  ;;  %v5860_v2 = vpop.xlane.xlu0 %1680 }
 0x671   :  { %v1957_v60 = vrot.slane %v5858_v54, %v5073_v26  ;;  %v1953_v32 = vrot.slane %v5860_v2, %v5070_v24 }
 0x674   :  { %v5862_v8 = vpop.xlane.xlu1 %1731  ;;  %v5864_v45 = vpop.xlane.xlu0 %1728 }
 0x675   :  { %v2029_v43 = vrot.slane %v5862_v8, %v5073_v26  ;;  %v2025_v54 = vrot.slane %v5864_v45, %v5070_v24  ;;  %v2056_v45 = vsel %vm1006_vm5, %v1994_v3, %v1985_v11 }
 0x678   :  { %v5866_v55 = vpop.xlane.xlu1 %1689  ;;  %v5868_v56 = vpop.xlane.xlu0 %1686 }
 0x679   :  { %v1966_v2 = vrot.slane %v5866_v55, %v5073_v26  ;;  %v1962_v31 = vrot.slane %v5868_v56, %v5070_v24  ;;  %v2021_v55 = vsel %vm869_vm4, %v2020_v18, %v2016_v22  ;;  %v1958_v56 = vsel %vm869_vm4, %v1957_v60, %v1953_v32 }
 0x67b   :  { %v1967_v3 = vsel %vm869_vm4, %v1966_v2, %v1962_v31 }
 0x67c   :  { %v5870_v28 = vpop.xlane.xlu1 %1737  ;;  %v5872_v19 = vpop.xlane.xlu0 %1734 }
 0x67d   :  { %v2038_v44 = vrot.slane %v5870_v28, %v5073_v26  ;;  %v2034_v12 = vrot.slane %v5872_v19, %v5070_v24  ;;  %v2057_v28 = vsel %vm1008_vm6, %v2003_v47, %v2056_v45  ;;  %v2051_v19 = vsel %vm1010_vm7, %v1940_v13, %v2050_v30 }
 0x67e   :  { %v2058_v36 = vsel %vm1010_vm7, %v2012_v59, %v2057_v28 }
 0x67f   :  { %v2059_v11 = vsel %vm1012_vm8, %v2021_v55, %v2058_v36  ;;  %v2039_v37 = vsel %vm869_vm4, %v2038_v44, %v2034_v12 }
 0x680   :  { %v5874_v5 = vpop.xlane.xlu1 %1695  ;;  %v5876_v58 = vpop.xlane.xlu0 %1692 }
 0x681   :  { %v1975_v10 = vrot.slane %v5874_v5, %v5073_v26  ;;  %v1971_v8 = vrot.slane %v5876_v58, %v5070_v24  ;;  %v2052_v5 = vsel %vm1012_vm8, %v1949_v50, %v2051_v19  ;;  %v2030_v58 = vsel %vm869_vm4, %v2029_v43, %v2025_v54 }
 0x682   :  { %v2053_v23 = vsel %vm1014_vm9, %v1958_v56, %v2052_v5  ;;  %v2060_v60 = vsel %vm1014_vm9, %v2030_v58, %v2059_v11 }
 0x683   :  { %v1976_v17 = vsel %vm869_vm4, %v1975_v10, %v1971_v8  ;;  %v2054_v32 = vsel %vm1016_vm10, %v1967_v3, %v2053_v23 }
 0x684   :  { %v5878_v0 = vpop.xlane.xlu1 %1743  ;;  %v5880_v35 = vpop.xlane.xlu0 %1740  ;;  %v2055_v13 = vsel %vm1018_vm11, %v1976_v17, %v2054_v32 }
 0x685   :  { %v2047_v29 = vrot.slane %v5878_v0, %v5073_v26  ;;  %v2043_v46 = vrot.slane %v5880_v35, %v5070_v24 }
 0x687   :  { %v2048_v59 = vsel %vm869_vm4, %v2047_v29, %v2043_v46 }
 0x688   :  { %v5882_v4 = vpop.xlane.xlu1 %1781  ;;  %v5884_v1 = vpop.xlane.xlu0 %1778 }
 0x689   :  { %v2106_v47 = vrot.slane %v5882_v4, %v5073_v26  ;;  %v2102_v0 = vrot.slane %v5884_v1, %v5070_v24 }
 0x68b   :  { %v2107_v44 = vsel %vm869_vm4, %v2106_v47, %v2102_v0 }
 0x68c   :  { %v5886_v14 = vpop.xlane.xlu1 %1787  ;;  %v5888_v20 = vpop.xlane.xlu0 %1784 }
 0x68d   :  { %v2115_v16 = vrot.slane %v5886_v14, %v5073_v26  ;;  %v2111_v6 = vrot.slane %v5888_v20, %v5070_v24  ;;  %v2061_v20 = vsel %vm1016_vm10, %v2039_v37, %v2060_v60 }
 0x68f   :  { %v2116_v50 = vsel %vm869_vm4, %v2115_v16, %v2111_v6 }
 0x690   :  { %v5890_v7 = vpop.xlane.xlu1 %1829  ;;  %v5892_v63 = vpop.xlane.xlu0 %1826  ;;  %v2243_v10 = vsel %vm1006_vm5, %v2116_v50, %v2107_v44 }
 0x691   :  { %v2178_v4 = vrot.slane %v5890_v7, %v5073_v26  ;;  %v2174_v1 = vrot.slane %v5892_v63, %v5070_v24 }
 0x693   :  { %v2179_v8 = vsel %vm869_vm4, %v2178_v4, %v2174_v1 }
 0x694   :  { %v5894_v49 = vpop.xlane.xlu1 %1835  ;;  %v5896_v51 = vpop.xlane.xlu0 %1832 }
 0x698   :  { %v5898_v33 = vpop.xlane.xlu1 %1793  ;;  %v5900_v39 = vpop.xlane.xlu0 %1790 }
 0x699   :  { %v2124_v35 = vrot.slane %v5898_v33, %v5073_v26  ;;  %v2120_v14 = vrot.slane %v5900_v39, %v5070_v24  ;;  %v2187_v33 = vrot.slane %v5894_v49, %v5073_v26  ;;  %v2183_v39 = vrot.slane %v5896_v51, %v5070_v24 }
 0x69b   :  { %v2125_v7 = vsel %vm869_vm4, %v2124_v35, %v2120_v14  ;;  %v2188_v55 = vsel %vm869_vm4, %v2187_v33, %v2183_v39  ;;  %v2062_v35 = vsel %vm1018_vm11, %v2048_v59, %v2061_v20 }
 0x69c   :  { %v5902_v9 = vpop.xlane.xlu1 %1841  ;;  %v5904_v41 = vpop.xlane.xlu0 %1838  ;;  %v2250_v16 = vsel %vm1006_vm5, %v2188_v55, %v2179_v8 }
 0x69d   :  { %v2196_v49 = vrot.slane %v5902_v9, %v5073_v26  ;;  %v2192_v51 = vrot.slane %v5904_v41, %v5070_v24 }
 0x69f   :  { %v2197_v36 = vsel %vm869_vm4, %v2196_v49, %v2192_v51 }
 0x6a0   :  { %v5906_v53 = vpop.xlane.xlu1 %1799  ;;  %v5908_v48 = vpop.xlane.xlu0 %1796  ;;  %v2251_v60 = vsel %vm1008_vm6, %v2197_v36, %v2250_v16 }
 0x6a1   :  { %v2133_v2 = vrot.slane %v5906_v53, %v5073_v26  ;;  %v2129_v31 = vrot.slane %v5908_v48, %v5070_v24 }
 0x6a3   :  { %v2134_v9 = vsel %vm869_vm4, %v2133_v2, %v2129_v31  ;;  %v2066_v31 = vadd.f32 %v2062_v35, %v5639_v21 }
 0x6a4   :  { %v5912_v61 = vpop.xlane.xlu1 %1847  ;;  %v5914_v42 = vpop.xlane.xlu0 %1844 }
 0x6a5   :  { %v2205_v41 = vrot.slane %v5912_v61, %v5073_v26  ;;  %v2201_v56 = vrot.slane %v5914_v42, %v5070_v24 }
 0x6a8   :  { %v5941_v52 = vpop.xlane.xlu1 %1805  ;;  %v5943_v40 = vpop.xlane.xlu0 %1802 }
 0x6a9   :  { %v2142_v63 = vrot.slane %v5941_v52, %v5073_v26  ;;  %v2138_v12 = vrot.slane %v5943_v40, %v5070_v24 }
 0x6ac   :  { %v5966_v27 = vpop.xlane.xlu1 %1853  ;;  %v5968_v38 = vpop.xlane.xlu0 %1850 }
 0x6ad   :  { %v2214_v28 = vrot.slane %v5966_v27, %v5073_v26  ;;  %v2210_v19 = vrot.slane %v5968_v38, %v5070_v24  ;;  %v2206_v38 = vsel %vm869_vm4, %v2205_v41, %v2201_v56  ;;  %v7051_v41 = vmov 0.0  }
 0x6ae   :  { %v2252_v14 = vsel %vm1010_vm7, %v2206_v38, %v2251_v60 }
 0x6af   :  { %v2215_v6 = vsel %vm869_vm4, %v2214_v28, %v2210_v19 }
 0x6b0   :  { %v1812_v57 = vpop.xlane.xlu1 %1811  ;;  %v1809_v15 = vpop.xlane.xlu0 %1808 }
 0x6b1   :  { %v2151_v53 = vrot.slane %v1812_v57, %v5073_v26  ;;  %v2147_v48 = vrot.slane %v1809_v15, %v5070_v24  ;;  %v2244_v57 = vsel %vm1008_vm6, %v2125_v7, %v2243_v10  ;;  %v2143_v15 = vsel %vm869_vm4, %v2142_v63, %v2138_v12  ;;  %v4688_v7 = vld [vmem:[#allocation10] sm:$0xff] }
 0x6b2   :  { %v2245_v42 = vsel %vm1010_vm7, %v2134_v9, %v2244_v57 }
 0x6b3   :  { %v2152_v5 = vsel %vm869_vm4, %v2151_v53, %v2147_v48  ;;  %v2246_v17 = vsel %vm1012_vm8, %v2143_v15, %v2245_v42  ;;  %v4689_v53 = vld [vmem:[#allocation10 + $0x8] sm:$0xff] }
 0x6b4   :  { %v6012_v18 = vpop.xlane.xlu1 %1859  ;;  %v1857_v22 = vpop.xlane.xlu0 %1856 }
 0x6b5   :  { %v2223_v61 = vrot.slane %v6012_v18, %v5073_v26  ;;  %v2219_v58 = vrot.slane %v1857_v22, %v5070_v24  ;;  %v2247_v18 = vsel %vm1014_vm9, %v2152_v5, %v2246_v17  ;;  %v2065_v22 = vadd.f32 %v2055_v13, %v5634_v34 }
 0x6b6   :  { %v2253_v34 = vsel %vm1012_vm8, %v2215_v6, %v2252_v14 }
 0x6b7   :  { %v2224_v32 = vsel %vm869_vm4, %v2223_v61, %v2219_v58 }
 0x6b8   :  { %v1818_v43 = vpop.xlane.xlu1 %1817  ;;  %v1815_v54 = vpop.xlane.xlu0 %1814  ;;  %v2254_v39 = vsel %vm1014_vm9, %v2224_v32, %v2253_v34 }
 0x6b9   :  { %v2160_v45 = vrot.slane %v1818_v43, %v5073_v26  ;;  %v2156_v52 = vrot.slane %v1815_v54, %v5070_v24 }
 0x6bb   :  { %v2161_v3 = vsel %vm869_vm4, %v2160_v45, %v2156_v52 }
 0x6bc   :  { %v1866_v30 = vpop.xlane.xlu1 %1865  ;;  %v1863_v40 = vpop.xlane.xlu0 %1862  ;;  %v2248_v47 = vsel %vm1016_vm10, %v2161_v3, %v2247_v18 }
 0x6bd   :  { %v2232_v11 = vrot.slane %v1866_v30, %v5073_v26  ;;  %v2228_v27 = vrot.slane %v1863_v40, %v5070_v24 }
 0x6bf   :  { %v2233_v50 = vsel %vm869_vm4, %v2232_v11, %v2228_v27 }
 0x6c0   :  { %v1824_v23 = vpop.xlane.xlu1 %1823  ;;  %v1821_v37 = vpop.xlane.xlu0 %1820  ;;  %v2255_v2 = vsel %vm1016_vm10, %v2233_v50, %v2254_v39 }
 0x6c1   :  { %v2169_v29 = vrot.slane %v1824_v23, %v5073_v26  ;;  %v2165_v46 = vrot.slane %v1821_v37, %v5070_v24 }
 0x6c3   :  { %v2170_v0 = vsel %vm869_vm4, %v2169_v29, %v2165_v46 }
 0x6c4   :  { %v1872_v4 = vpop.xlane.xlu1 %1871  ;;  %v1869_v1 = vpop.xlane.xlu0 %1868  ;;  %v2249_v43 = vsel %vm1018_vm11, %v2170_v0, %v2248_v47 }
 0x6c5   :  { %v2241_v13 = vrot.slane %v1872_v4, %v5073_v26  ;;  %v2237_v54 = vrot.slane %v1869_v1, %v5070_v24  ;;  %v2259_v33 = vadd.f32 %v2249_v43, %v2065_v22  ;;  %v7054_v22 = vld [vmem:[#allocation18_spill] sm:$0xff]  ;;  %v7055_v1 = vld [vmem:[#allocation19_spill] sm:$0xff] }
 0x6c7   :  { %v2242_v20 = vsel %vm869_vm4, %v2241_v13, %v2237_v54  ;;  %v2261_v59 = vmul.f32 0.20412415, %v2259_v33 }
 0x6c8   :  { %v2256_v44 = vsel %vm1018_vm11, %v2242_v20, %v2255_v2 }
 0x6c9   :  { %v2263_v63 = vadd.f32 %v4688_v7, %v2261_v59  ;;  %v2260_v12 = vadd.f32 %v2256_v44, %v2066_v31 }
 0x6cb   :  { %v2265_v49 = vsel %vm601_vm3, %v2263_v63, -inf  ;;  %v2262_v51 = vmul.f32 0.20412415, %v2260_v12 }
 0x6cc   :  { %2266 = vmax.xlane.f32.xlu0 %v2265_v49 }
 0x6cd   :  { %v2264_v48 = vadd.f32 %v4689_v53, %v2262_v51 }
 0x6cf   :  { %v2268_v10 = vsel %vm601_vm3, %v2264_v48, -inf }
 0x6d0   :  { %2269 = vmax.xlane.f32.xlu1 %v2268_v10 }
 0x6e1   :  { %2349 = vrot.lane.b32.xlu1 %v7015_v62, %s4966_s24 }
 0x6e2   :  { %2351 = vrot.lane.b32.xlu0 %v7014_v25, %s4966_s24 }
 0x6e5   :  { %2347 = vrot.lane.b32.xlu1 %v7015_v62, %s4963_s2 }
 0x755   :  { %v2267_v21 = vpop.xlane.xlu0 %2266 }
 0x756   :  { %v2271_v8 = vsub.f32 %v2263_v63, %v2267_v21 }
 0x758   :  { %v2273_v45 = vmul.f32 1.442695, %v2271_v8 }
 0x759   :  { %v2270_v52 = vpop.xlane.xlu1 %2269  ;;  %v2352_v30 = vpop.permute.xlu0 %2351 }
 0x75a   :  { %4632 = vpow2.f32 %v2273_v45  ;;  %v2272_v40 = vsub.f32 %v2264_v48, %v2270_v52  ;;  %v2360_v55 = vsel %vm262_vm2, %v2352_v30, 0 }
 0x75b   :  { %4556 = vmatpush3.bf16.xpose.msra.mxu1 %v2360_v55 }
 0x75c   :  { %v2275_v9 = vmul.f32 1.442695, %v2272_v40  ;;  %4557 = vmatprep.subr.bf16.mxu1 %v7051_v41 }
 0x75d   :  { %v2350_v56 = vpop.permute.xlu1 %2349 }
 0x75e   :  { %4634 = vpow2.f32 %v2275_v9  ;;  %v2357_v57 = vsel %vm262_vm2, %v2350_v56, 0 }
 0x761   :  { %v2348_v19 = vpop.permute.xlu1 %2347 }
 0x763   :  { %4558 = vmatpush3.bf16.xpose.msra.mxu1 %v2357_v57 }
 0x764   :  { %4575 = vmatprep.subr.bf16.mxu1 %v7051_v41 }
 0x767   :  { %v4633_v15 = vpop.eup %4632 }
 0x768   :  { %v2277_v28 = vsel %vm601_vm3, %v4633_v15, 0.0 }
 0x769   :  { %2278 = vadd.xlane.f32.xlu0 %v2277_v28 }
 0x76a   :  { %4560 = vmatmul.mubr.msk.bf16.vlgmr.msra.gmra.mxu1 %vm262_vm2, %v2348_v19 }
 0x76b   :  { %v4635_v36 = vpop.eup %4634  ;;  %4579 = vmatprep.mubr.msk.bf16.mxu1 %vm4960_vm1, %v7051_v41 }
 0x76c   :  { %v2280_v5 = vsel %vm601_vm3, %v4635_v36, 0.0 }
 0x76d   :  { %2281 = vadd.xlane.f32.xlu1 %v2280_v5 }
 0x77e   :  { %2403 = vrot.lane.b32.xlu1 %v7014_v25, %s4963_s2 }
 0x77f   :  { %2290 = vrot.lane.b32.xlu0 %v7015_v62, %s4967_s27 }
 0x7f2   :  { %v2279_v61 = vpop.xlane.xlu0 %2278 }
 0x7f3   :  { %4636 = vrcp.f32 %v2279_v61 }
 0x7f6   :  { %v2282_v58 = vpop.xlane.xlu1 %2281  ;;  %v2291_v42 = vpop.permute.xlu0 %2290 }
 0x7f7   :  { %4638 = vrcp.f32 %v2282_v58  ;;  %4550 = vmatpush3.bf16.msra.mxu0 %v2291_v42 }
 0x7f8   :  { %4563 = vmatprep.subr.bf16.mxu0 %v7051_v41 }
 0x7fa   :  { %v2404_v37 = vpop.permute.xlu1 %2403 }
 0x7fb   :  { %v2406_v6 = vsel %vm262_vm2, %v2404_v37, 0 }
 0x800   :  { %v4637_v3 = vpop.eup %4636 }
 0x801   :  { %v2285_v11 = vmul.f32 %v4637_v3, %v4633_v15 }
 0x803   :  { %v2287_v17 = vsel %vm190_vm12, 0.0, %v2285_v11  ;;  %v4690_v11 = vld [vmem:[#allocation7] sm:$0xff] }
 0x804   :  { %v4639_v27 = vpop.eup %4638 }
 0x805   :  { %v2286_v23 = vmul.f32 %v4639_v27, %v4635_v36 }
 0x807   :  { %v2288_v46 = vsel %vm191_vm13, 0.0, %v2286_v23  ;;  %v4691_v23 = vld [vmem:[#allocation7 + $0x8] sm:$0xff] }
 0x808   :  { %v2289_v16 = vpack.c.bf16 %v2288_v46, %v2287_v17  ;;  %v4692_v46 = vld [vmem:[#allocation7 + $0x10] sm:$0xff] }
 0x80a   :  { %4552 = vmatmul.mubr.msk.bf16.vlgmr.msra.gmra.mxu0 %vm601_vm3, %v2289_v16 }
 0x80b   :  { %4564 = vmatpush3.bf16.xpose.msra.mxu0 %v2406_v6  ;;  %4565 = vmatprep.mubr.msk.bf16.mxu0 %vm4960_vm1, %v7051_v41 }
 0x80c   :  { %4569 = vmatprep.subr.bf16.mxu0 %v7051_v41 }
 0x812   :  { %4566 = vmatmul.mubr.msk.bf16.vlgmr.msra.gmra.mxu0 %vm262_vm2, %v2350_v56 }
 0x813   :  { %4571 = vmatprep.mubr.msk.bf16.mxu0 %vm4960_vm1, %v7051_v41 }
 0x82a   :  { %v6132_v18 = vpop.f32.mrf.mxu1 }
 0x82b   :  { %v2458_v60 = vrot.slane %v6132_v18, %v7054_v22  ;;  %v2451_v39 = vcombine.high %v6132_v18, %v6132_v18 }
 0x82c   :  { %v4561_v32 = vpop.f32.mrf.mxu1 }
 0x82d   :  { %v2466_v47 = vcombine.high %v2458_v60, %v2458_v60  ;;  %v2474_v0 = vrot.slane %v2458_v60, %v7054_v22  ;;  %v2465_v7 = vrot.slane %v2451_v39, %v7054_v22  ;;  %v4696_v39 = vld [vmem:[#allocation7 + $0x88] sm:$0xff] }
 0x82e   :  { %v6137_v35 = vpop.f32.mrf.mxu1 }
 0x82f   :  { %v2488_v14 = vrot.slane %v2466_v47, %v7054_v22  ;;  %v2507_v50 = vrot.slane %v6137_v35, %v7054_v22  ;;  %v2552_v43 = vrot.slane %v2474_v0, %v7055_v1  ;;  %v2496_v2 = vcombine.high %v2474_v0, %v2474_v0  ;;  %v4693_v47 = vld [vmem:[#allocation7 + $0x80] sm:$0xff] }
 0x830   :  { %v4562_v4 = vpop.f32.mrf.mxu1  ;;  %v2500_v59 = vcombine.high %v6137_v35, %v6137_v35  ;;  %v2467_v48 = vcombine.high %v2465_v7, %v2465_v7  ;;  %v2481_v10 = vrot.slane %v2465_v7, %v7054_v22 }
 0x831   :  { %v2556_v34 = vrot.slane %v2488_v14, %v7055_v1  ;;  %v2515_v13 = vcombine.high %v2507_v50, %v2507_v50  ;;  %v2523_v54 = vrot.slane %v2507_v50, %v7054_v22  ;;  %2613 = vrot.lane.b32.xlu0 %v2552_v43, %s4963_s2  ;;  %v2560_v63 = vrot.slane %v2496_v2, %v7055_v1  ;;  %v4694_v50 = vld [vmem:[#allocation7 + $0x18] sm:$0xff] }
 0x832   :  { %v2498_v12 = vcombine.high %v2488_v14, %v2488_v14  ;;  %v2514_v49 = vrot.slane %v2500_v59, %v7054_v22  ;;  %v2568_v30 = vrot.slane %v2481_v10, %v7055_v1  ;;  %v2495_v40 = vrot.slane %v2467_v48, %v7054_v22  ;;  %v4697_v59 = vld [vmem:[#allocation7 + $0x20] sm:$0xff] }
 0x833   :  { %2615 = vrot.lane.b32.xlu1 %v2556_v34, %s4963_s2  ;;  %v2537_v33 = vrot.slane %v2515_v13, %v7054_v22  ;;  %v2584_v20 = vrot.slane %v2523_v54, %v7055_v1  ;;  %v2545_v31 = vcombine.high %v2523_v54, %v2523_v54  ;;  %v2497_v57 = vcombine.high %v2481_v10, %v2481_v10  ;;  %v4695_v34 = vld [vmem:[#allocation7 + $0x90] sm:$0xff] }
 0x834   :  { %v2564_v21 = vrot.slane %v2498_v12, %v7055_v1  ;;  %v2516_v8 = vcombine.high %v2514_v49, %v2514_v49  ;;  %v2530_v45 = vrot.slane %v2514_v49, %v7054_v22  ;;  %v2572_v56 = vrot.slane %v2495_v40, %v7055_v1 }
 0x835   :  { %v2588_v44 = vrot.slane %v2537_v33, %v7055_v1  ;;  %2629 = vrot.lane.b32.xlu0 %v2584_v20, %s4963_s2  ;;  %v2592_v51 = vrot.slane %v2545_v31, %v7055_v1  ;;  %v2547_v53 = vcombine.high %v2537_v33, %v2537_v33  ;;  %v2576_v19 = vrot.slane %v2497_v57, %v7055_v1 }
 0x836   :  { %v2600_v55 = vrot.slane %v2530_v45, %v7055_v1  ;;  %v2544_v9 = vrot.slane %v2516_v8, %v7054_v22  ;;  %v2546_v28 = vcombine.high %v2530_v45, %v2530_v45  ;;  %v2499_v36 = vcombine.high %v2495_v40, %v2495_v40 }
 0x837   :  { %2631 = vrot.lane.b32.xlu1 %v2588_v44, %s4963_s2  ;;  %v2596_v52 = vrot.slane %v2547_v53, %v7055_v1 }
 0x838   :  { %v2604_v15 = vrot.slane %v2544_v9, %v7055_v1  ;;  %v2608_v5 = vrot.slane %v2546_v28, %v7055_v1  ;;  %v2548_v61 = vcombine.high %v2544_v9, %v2544_v9  ;;  %v2580_v58 = vrot.slane %v2499_v36, %v7055_v1  ;;  %v4702_v9 = vld [vmem:[#allocation7 + $0xa8] sm:$0xff] }
 0x839   :  { %2617 = vrot.lane.b32.xlu0 %v2560_v63, %s4963_s2  ;;  %v4698_v63 = vld [vmem:[#allocation7 + $0x98] sm:$0xff] }
 0x83a   :  { %v2612_v42 = vrot.slane %v2548_v61, %v7055_v1 }
 0x83b   :  { %2633 = vrot.lane.b32.xlu1 %v2592_v51, %s4963_s2  ;;  %v4699_v51 = vld [vmem:[#allocation7 + $0xa0] sm:$0xff] }
 0x83d   :  { %2619 = vrot.lane.b32.xlu0 %v2564_v21, %s4963_s2  ;;  %v4700_v21 = vld [vmem:[#allocation7 + $0x28] sm:$0xff] }
 0x83f   :  { %2635 = vrot.lane.b32.xlu1 %v2596_v52, %s4963_s2  ;;  %v4701_v52 = vld [vmem:[#allocation7 + $0x30] sm:$0xff] }
 0x841   :  { %2621 = vrot.lane.b32.xlu0 %v2568_v30, %s4963_s2 }
 0x843   :  { %2637 = vrot.lane.b32.xlu1 %v2600_v55, %s4963_s2 }
 0x845   :  { %2623 = vrot.lane.b32.xlu0 %v2572_v56, %s4963_s2 }
 0x847   :  { %2639 = vrot.lane.b32.xlu1 %v2604_v15, %s4963_s2  ;;  %v4703_v15 = vld [vmem:[#allocation7 + $0xb0] sm:$0xff] }
 0x849   :  { %2625 = vrot.lane.b32.xlu0 %v2576_v19, %s4963_s2 }
 0x84b   :  { %2641 = vrot.lane.b32.xlu1 %v2608_v5, %s4963_s2  ;;  %v4704_v5 = vld [vmem:[#allocation7 + $0x38] sm:$0xff] }
 0x84d   :  { %2627 = vrot.lane.b32.xlu0 %v2580_v58, %s4963_s2 }
 0x84f   :  { %2643 = vrot.lane.b32.xlu1 %v2612_v42, %s4963_s2  ;;  %v4705_v42 = vld [vmem:[#allocation7 + $0x40] sm:$0xff] }
 0x8a3   :  { %v2614_v3 = vpop.permute.xlu0 %2613 }
 0x8a4   :  { %v2661_v27 = vmul.f32 %v4690_v11, %v2614_v3  ;;  %v2662_v37 = vmul.f32 %v4691_v23, %v2614_v3  ;;  %v4706_v23 = vld [vmem:[#allocation7 + $0xb8] sm:$0xff] }
 0x8a5   :  { %v2616_v17 = vpop.permute.xlu1 %2615 }
 0x8a6   :  { %v2663_v16 = vmul.f32 %v4692_v46, %v2616_v17  ;;  %v2693_v6 = vsel %vm601_vm3, %v2661_v27, 0.0  ;;  %v2696_v60 = vsel %vm601_vm3, %v2662_v37, 0.0  ;;  %v2664_v4 = vmul.f32 %v4694_v50, %v2616_v17  ;;  %v4707_v46 = vld [vmem:[#allocation7 + $0xc0] sm:$0xff] }
 0x8a7   :  { %2694 = vadd.xlane.f32.xlu0 %v2693_v6  ;;  %2697 = vadd.xlane.f32.xlu1 %v2696_v60  ;;  %v2630_v32 = vpop.permute.xlu0 %2629 }
 0x8a8   :  { %v2677_v0 = vmul.f32 %v4693_v47, %v2630_v32  ;;  %v2699_v43 = vsel %vm601_vm3, %v2663_v16, 0.0  ;;  %v2678_v2 = vmul.f32 %v4696_v39, %v2630_v32  ;;  %v2702_v20 = vsel %vm601_vm3, %v2664_v4, 0.0  ;;  %v4708_v32 = vld [vmem:[#allocation7 + $0x48] sm:$0xff]  ;;  %v4711_v39 = vld [vmem:[#allocation7 + $0xd0] sm:$0xff] }
 0x8a9   :  { %v2632_v14 = vpop.permute.xlu1 %2631 }
 0x8aa   :  { %v2679_v13 = vmul.f32 %v4695_v34, %v2632_v14  ;;  %v2741_v54 = vsel %vm601_vm3, %v2677_v0, 0.0  ;;  %v2680_v12 = vmul.f32 %v4698_v63, %v2632_v14  ;;  %v2744_v49 = vsel %vm601_vm3, %v2678_v2, 0.0  ;;  %v4709_v14 = vld [vmem:[#allocation7 + $0x50] sm:$0xff] }
 0x8ab   :  { %2700 = vadd.xlane.f32.xlu0 %v2699_v43  ;;  %v2618_v33 = vpop.permute.xlu0 %2617  ;;  %2742 = vadd.xlane.f32.xlu1 %v2741_v54 }
 0x8ac   :  { %v2665_v31 = vmul.f32 %v4697_v59, %v2618_v33  ;;  %v2747_v44 = vsel %vm601_vm3, %v2679_v13, 0.0  ;;  %v2666_v8 = vmul.f32 %v4700_v21, %v2618_v33  ;;  %v2750_v45 = vsel %vm601_vm3, %v2680_v12, 0.0  ;;  %v4710_v13 = vld [vmem:[#allocation7 + $0xc8] sm:$0xff] }
 0x8ad   :  { %v2634_v7 = vpop.permute.xlu1 %2633 }
 0x8ae   :  { %v2681_v53 = vmul.f32 %v4699_v51, %v2634_v7  ;;  %v2705_v48 = vsel %vm601_vm3, %v2665_v31, 0.0  ;;  %v2682_v56 = vmul.f32 %v4702_v9, %v2634_v7  ;;  %v2708_v57 = vsel %vm601_vm3, %v2666_v8, 0.0  ;;  %v4712_v7 = vld [vmem:[#allocation7 + $0x58] sm:$0xff] }
 0x8af   :  { %2703 = vadd.xlane.f32.xlu0 %v2702_v20  ;;  %2748 = vadd.xlane.f32.xlu1 %v2747_v44  ;;  %v2620_v10 = vpop.permute.xlu0 %2619  ;;  %v4714_v8 = vld [vmem:[#allocation7 + $0xd8] sm:$0xff] }
 0x8b0   :  { %v2667_v30 = vmul.f32 %v4701_v52, %v2620_v10  ;;  %v2753_v40 = vsel %vm601_vm3, %v2681_v53, 0.0  ;;  %v2668_v61 = vmul.f32 %v4704_v5, %v2620_v10  ;;  %v2756_v58 = vsel %vm601_vm3, %v2682_v56, 0.0 }
 0x8b1   :  { %v2636_v55 = vpop.permute.xlu1 %2635 }
 0x8b2   :  { %v2683_v28 = vmul.f32 %v4703_v15, %v2636_v55  ;;  %v2711_v19 = vsel %vm601_vm3, %v2667_v30, 0.0  ;;  %v2684_v37 = vmul.f32 %v4706_v23, %v2636_v55  ;;  %v2714_v17 = vsel %vm601_vm3, %v2668_v61, 0.0  ;;  %v4715_v30 = vld [vmem:[#allocation7 + $0xe0] sm:$0xff]  ;;  %v4716_v15 = vld [vmem:[#allocation7 + $0x68] sm:$0xff]  ;;  %v4719_v23 = vld [vmem:[#allocation7 + $0xf0] sm:$0xff] }
 0x8b3   :  { %2745 = vadd.xlane.f32.xlu0 %v2744_v49  ;;  %2706 = vadd.xlane.f32.xlu1 %v2705_v48  ;;  %v2622_v36 = vpop.permute.xlu0 %2621  ;;  %v4713_v49 = vld [vmem:[#allocation7 + $0x60] sm:$0xff] }
 0x8b4   :  { %v2669_v3 = vmul.f32 %v4705_v42, %v2622_v36  ;;  %v2759_v11 = vsel %vm601_vm3, %v2683_v28, 0.0  ;;  %v2670_v47 = vmul.f32 %v4708_v32, %v2622_v36  ;;  %v2762_v0 = vsel %vm601_vm3, %v2684_v37, 0.0  ;;  %v4717_v36 = vld [vmem:[#allocation7 + $0x70] sm:$0xff]  ;;  %v4721_v32 = vld [vmem:[#allocation8] sm:$0xff] }
 0x8b5   :  { %v2638_v27 = vpop.permute.xlu1 %2637 }
 0x8b6   :  { %v2685_v16 = vmul.f32 %v4707_v46, %v2638_v27  ;;  %v2717_v6 = vsel %vm601_vm3, %v2669_v3, 0.0  ;;  %v2686_v54 = vmul.f32 %v4710_v13, %v2638_v27  ;;  %v2720_v33 = vsel %vm601_vm3, %v2670_v47, 0.0  ;;  %v4718_v3 = vld [vmem:[#allocation7 + $0xe8] sm:$0xff]  ;;  %v4720_v46 = vld [vmem:[#allocation7 + $0x78] sm:$0xff] }
 0x8b7   :  { %2751 = vadd.xlane.f32.xlu0 %v2750_v45  ;;  %2754 = vadd.xlane.f32.xlu1 %v2753_v40  ;;  %v2624_v60 = vpop.permute.xlu0 %2623 }
 0x8b8   :  { %v2671_v50 = vmul.f32 %v4709_v14, %v2624_v60  ;;  %v2765_v4 = vsel %vm601_vm3, %v2685_v16, 0.0  ;;  %v2672_v63 = vmul.f32 %v4712_v7, %v2624_v60  ;;  %v2768_v12 = vsel %vm601_vm3, %v2686_v54, 0.0  ;;  %v4726_v7 = vld [vmem:[#allocation8 + $0x18] sm:$0xff] }
 0x8b9   :  { %v2640_v43 = vpop.permute.xlu1 %2639 }
 0x8ba   :  { %v2687_v2 = vmul.f32 %v4711_v39, %v2640_v43  ;;  %v2723_v20 = vsel %vm601_vm3, %v2671_v50, 0.0  ;;  %v2688_v45 = vmul.f32 %v4714_v8, %v2640_v43  ;;  %v2726_v52 = vsel %vm601_vm3, %v2672_v63, 0.0  ;;  %v4723_v43 = vld [vmem:[#allocation8 + $0x10] sm:$0xff] }
 0x8bb   :  { %2709 = vadd.xlane.f32.xlu0 %v2708_v57  ;;  %2712 = vadd.xlane.f32.xlu1 %v2711_v19  ;;  %v2626_v31 = vpop.permute.xlu0 %2625 }
 0x8bc   :  { %v2673_v51 = vmul.f32 %v4713_v49, %v2626_v31  ;;  %v2771_v53 = vsel %vm601_vm3, %v2687_v2, 0.0  ;;  %v2674_v28 = vmul.f32 %v4716_v15, %v2626_v31  ;;  %v2774_v19 = vsel %vm601_vm3, %v2688_v45, 0.0  ;;  %v4727_v49 = vld [vmem:[#allocation8 + $0x90] sm:$0xff]  ;;  %v4729_v45 = vld [vmem:[#allocation8 + $0x20] sm:$0xff] }
 0x8bd   :  { %v2642_v10 = vpop.permute.xlu1 %2641 }
 0x8be   :  { %v2689_v40 = vmul.f32 %v4715_v30, %v2642_v10  ;;  %v2729_v55 = vsel %vm601_vm3, %v2673_v51, 0.0  ;;  %v2732_v27 = vsel %vm601_vm3, %v2674_v28, 0.0 }
 0x8bf   :  { %2757 = vadd.xlane.f32.xlu0 %v2756_v58  ;;  %2760 = vadd.xlane.f32.xlu1 %v2759_v11  ;;  %v2628_v56 = vpop.permute.xlu0 %2627  ;;  %v2690_v11 = vmul.f32 %v4718_v3, %v2642_v10  ;;  %v4734_v3 = vld [vmem:[#allocation8 + $0xa8] sm:$0xff] }
 0x8c0   :  { %v2675_v5 = vmul.f32 %v4717_v36, %v2628_v56  ;;  %v2777_v61 = vsel %vm601_vm3, %v2689_v40, 0.0  ;;  %v2676_v16 = vmul.f32 %v4720_v46, %v2628_v56  ;;  %v4730_v40 = vld [vmem:[#allocation8 + $0x98] sm:$0xff]  ;;  %v4731_v56 = vld [vmem:[#allocation8 + $0xa0] sm:$0xff] }
 0x8c1   :  { %v2644_v42 = vpop.permute.xlu1 %2643  ;;  %v4736_v46 = vld [vmem:[#allocation8 + $0x38] sm:$0xff] }
 0x8c2   :  { %v2691_v37 = vmul.f32 %v4719_v23, %v2644_v42  ;;  %v2738_v50 = vsel %vm601_vm3, %v2676_v16, 0.0  ;;  %v4735_v23 = vld [vmem:[#allocation8 + $0xb0] sm:$0xff] }
 0x8c3   :  { %2715 = vadd.xlane.f32.xlu0 %v2714_v17  ;;  %2718 = vadd.xlane.f32.xlu1 %v2717_v6  ;;  %v2735_v17 = vsel %vm601_vm3, %v2675_v5, 0.0  ;;  %v2780_v6 = vsel %vm601_vm3, %v2690_v11, 0.0 }
 0x8c4   :  { %v2783_v60 = vsel %vm601_vm3, %v2691_v37, 0.0 }
 0x8c7   :  { %2763 = vadd.xlane.f32.xlu0 %v2762_v0  ;;  %2766 = vadd.xlane.f32.xlu1 %v2765_v4  ;;  %v4722_v0 = vld [vmem:[#allocation7 + $0xf8] sm:$0xff] }
 0x8c8   :  { %v2692_v14 = vmul.f32 %v4722_v0, %v2644_v42  ;;  %v4738_v0 = vld [vmem:[#allocation8 + $0xb8] sm:$0xff] }
 0x8ca   :  { %v6204_v34 = vpop.f32.mrf.mxu0  ;;  %v2786_v54 = vsel %vm601_vm3, %v2692_v14, 0.0 }
 0x8cb   :  { %7056 = vst [vmem:[#allocation20_spill] sm:$0xff] %v6204_v34  ;;  %2721 = vadd.xlane.f32.xlu0 %v2720_v33  ;;  %2724 = vadd.xlane.f32.xlu1 %v2723_v20  ;;  %v4724_v33 = vld [vmem:[#allocation8 + $0x8] sm:$0xff]  ;;  %v4725_v20 = vld [vmem:[#allocation8 + $0x80] sm:$0xff] }
 0x8cc   :  { %v4553_v59 = vpop.f32.mrf.mxu0 }
 0x8ce   :  { %v6208_v44 = vpop.f32.mrf.mxu0 }
 0x8cf   :  { %7057 = vst [vmem:[#allocation21_spill] sm:$0xff] %v6208_v44  ;;  %2769 = vadd.xlane.f32.xlu0 %v2768_v12  ;;  %2772 = vadd.xlane.f32.xlu1 %v2771_v53 }
 0x8d0   :  { %v4554_v48 = vpop.f32.mrf.mxu0 }
 0x8d1   :  { %v4728_v48 = vld [vmem:[#allocation8 + $0x88] sm:$0xff] }
 0x8d2   :  { %v6212_v21 = vpop.f32.mrf.mxu0 }
 0x8d3   :  { %2727 = vadd.xlane.f32.xlu0 %v2726_v52  ;;  %2730 = vadd.xlane.f32.xlu1 %v2729_v55  ;;  %v2789_v47 = vmul.f32 %v4721_v32, %v6212_v21  ;;  %v2791_v13 = vmul.f32 %v4723_v43, %v6212_v21  ;;  %v2805_v59 = vmul.f32 %v4725_v20, %v6212_v21 }
 0x8d4   :  { %v4567_v9 = vpop.f32.mrf.mxu0  ;;  %v2807_v51 = vmul.f32 %v4727_v49, %v6212_v21  ;;  %v2793_v52 = vmul.f32 %v4729_v45, %v6212_v21  ;;  %v2809_v15 = vmul.f32 %v4731_v56, %v6212_v21  ;;  %v2811_v37 = vmul.f32 %v4735_v23, %v6212_v21 }
 0x8d5   :  { %v2821_v4 = vsel %vm601_vm3, %v2789_v47, 0.0  ;;  %v2827_v2 = vsel %vm601_vm3, %v2791_v13, 0.0  ;;  %v2869_v12 = vsel %vm601_vm3, %v2805_v59, 0.0 }
 0x8d6   :  { %v6216_v57 = vpop.f32.mrf.mxu0  ;;  %v2875_v8 = vsel %vm601_vm3, %v2807_v51, 0.0  ;;  %v2833_v9 = vsel %vm601_vm3, %v2793_v52, 0.0  ;;  %v2881_v5 = vsel %vm601_vm3, %v2809_v15, 0.0 }
 0x8d7   :  { %2775 = vadd.xlane.f32.xlu0 %v2774_v19  ;;  %2778 = vadd.xlane.f32.xlu1 %v2777_v61  ;;  %v2790_v39 = vmul.f32 %v4724_v33, %v6216_v57  ;;  %v2792_v63 = vmul.f32 %v4726_v7, %v6216_v57  ;;  %v2806_v10 = vmul.f32 %v4728_v48, %v6216_v57  ;;  %v4732_v19 = vld [vmem:[#allocation8 + $0x28] sm:$0xff]  ;;  %v4733_v61 = vld [vmem:[#allocation8 + $0x30] sm:$0xff] }
 0x8d8   :  { %v4568_v58 = vpop.f32.mrf.mxu0  ;;  %v2808_v55 = vmul.f32 %v4730_v40, %v6216_v57  ;;  %v2794_v36 = vmul.f32 %v4732_v19, %v6216_v57  ;;  %v2810_v11 = vmul.f32 %v4734_v3, %v6216_v57  ;;  %v2796_v16 = vmul.f32 %v4736_v46, %v6216_v57 }
 0x8d9   :  { %v2824_v31 = vsel %vm601_vm3, %v2790_v39, 0.0  ;;  %v2830_v53 = vsel %vm601_vm3, %v2792_v63, 0.0  ;;  %v2872_v30 = vsel %vm601_vm3, %v2806_v10, 0.0  ;;  %v2795_v58 = vmul.f32 %v4733_v61, %v6212_v21 }
 0x8da   :  { %v2878_v28 = vsel %vm601_vm3, %v2808_v55, 0.0  ;;  %v2836_v42 = vsel %vm601_vm3, %v2794_v36, 0.0  ;;  %v2842_v47 = vsel %vm601_vm3, %v2796_v16, 0.0  ;;  %v2812_v14 = vmul.f32 %v4738_v0, %v6216_v57 }
 0x8db   :  { %2733 = vadd.xlane.f32.xlu0 %v2732_v27  ;;  %2736 = vadd.xlane.f32.xlu1 %v2735_v17  ;;  %v2839_v27 = vsel %vm601_vm3, %v2795_v58, 0.0  ;;  %v2884_v17 = vsel %vm601_vm3, %v2810_v11, 0.0 }
 0x8dc   :  { %v2890_v13 = vsel %vm601_vm3, %v2812_v14, 0.0 }
 0x8df   :  { %2781 = vadd.xlane.f32.xlu0 %v2780_v6  ;;  %2784 = vadd.xlane.f32.xlu1 %v2783_v60  ;;  %v2887_v6 = vsel %vm601_vm3, %v2811_v37, 0.0  ;;  %v4737_v60 = vld [vmem:[#allocation8 + $0x40] sm:$0xff] }
 0x8e0   :  { %v2797_v32 = vmul.f32 %v4737_v60, %v6212_v21  ;;  %v4753_v60 = vld [vmem:[#allocation8 + $0xf8] sm:$0xff] }
 0x8e3   :  { %2739 = vadd.xlane.f32.xlu0 %v2738_v50  ;;  %2822 = vadd.xlane.f32.xlu1 %v2821_v4  ;;  %v2845_v50 = vsel %vm601_vm3, %v2797_v32, 0.0  ;;  %v4739_v4 = vld [vmem:[#allocation8 + $0xc0] sm:$0xff]  ;;  %v2820_v32 = vmul.f32 %v4753_v60, %v6216_v57 }
 0x8e4   :  { %v2813_v43 = vmul.f32 %v4739_v4, %v6212_v21 }
 0x8e6   :  { %v2893_v39 = vsel %vm601_vm3, %v2813_v43, 0.0 }
 0x8e7   :  { %2787 = vadd.xlane.f32.xlu0 %v2786_v54  ;;  %2828 = vadd.xlane.f32.xlu1 %v2827_v2  ;;  %v4740_v54 = vld [vmem:[#allocation8 + $0x48] sm:$0xff]  ;;  %v4741_v2 = vld [vmem:[#allocation8 + $0x50] sm:$0xff] }
 0x8e8   :  { %v2798_v33 = vmul.f32 %v4740_v54, %v6216_v57  ;;  %v2799_v20 = vmul.f32 %v4741_v2, %v6212_v21 }
 0x8ea   :  { %v2848_v59 = vsel %vm601_vm3, %v2798_v33, 0.0  ;;  %v2851_v63 = vsel %vm601_vm3, %v2799_v20, 0.0 }
 0x8eb   :  { %2825 = vadd.xlane.f32.xlu0 %v2824_v31  ;;  %2870 = vadd.xlane.f32.xlu1 %v2869_v12  ;;  %v4742_v31 = vld [vmem:[#allocation8 + $0xc8] sm:$0xff]  ;;  %v4743_v12 = vld [vmem:[#allocation8 + $0xd0] sm:$0xff] }
 0x8ec   :  { %v2814_v7 = vmul.f32 %v4742_v31, %v6216_v57  ;;  %v2815_v49 = vmul.f32 %v4743_v12, %v6212_v21 }
 0x8ee   :  { %v2896_v51 = vsel %vm601_vm3, %v2814_v7, 0.0  ;;  %v2899_v10 = vsel %vm601_vm3, %v2815_v49, 0.0 }
 0x8ef   :  { %2831 = vadd.xlane.f32.xlu0 %v2830_v53  ;;  %2876 = vadd.xlane.f32.xlu1 %v2875_v8  ;;  %v4744_v53 = vld [vmem:[#allocation8 + $0x58] sm:$0xff]  ;;  %v4745_v8 = vld [vmem:[#allocation8 + $0x60] sm:$0xff] }
 0x8f0   :  { %v2800_v48 = vmul.f32 %v4744_v53, %v6216_v57  ;;  %v2801_v45 = vmul.f32 %v4745_v8, %v6212_v21 }
 0x8f2   :  { %v2854_v52 = vsel %vm601_vm3, %v2800_v48, 0.0  ;;  %v2857_v55 = vsel %vm601_vm3, %v2801_v45, 0.0 }
 0x8f3   :  { %2873 = vadd.xlane.f32.xlu0 %v2872_v30  ;;  %2834 = vadd.xlane.f32.xlu1 %v2833_v9  ;;  %v4746_v30 = vld [vmem:[#allocation8 + $0xd8] sm:$0xff]  ;;  %v4747_v9 = vld [vmem:[#allocation8 + $0xe0] sm:$0xff] }
 0x8f4   :  { %v2816_v40 = vmul.f32 %v4746_v30, %v6216_v57  ;;  %v2817_v56 = vmul.f32 %v4747_v9, %v6212_v21 }
 0x8f6   :  { %v2902_v15 = vsel %vm601_vm3, %v2816_v40, 0.0  ;;  %v2905_v36 = vsel %vm601_vm3, %v2817_v56, 0.0 }
 0x8f7   :  { %2879 = vadd.xlane.f32.xlu0 %v2878_v28  ;;  %2882 = vadd.xlane.f32.xlu1 %v2881_v5  ;;  %v4748_v28 = vld [vmem:[#allocation8 + $0x68] sm:$0xff]  ;;  %v4749_v5 = vld [vmem:[#allocation8 + $0x70] sm:$0xff] }
 0x8f8   :  { %v2802_v19 = vmul.f32 %v4748_v28, %v6216_v57  ;;  %v2803_v61 = vmul.f32 %v4749_v5, %v6212_v21 }
 0x8fa   :  { %v2860_v58 = vsel %vm601_vm3, %v2802_v19, 0.0  ;;  %v2863_v11 = vsel %vm601_vm3, %v2803_v61, 0.0 }
 0x8fb   :  { %2837 = vadd.xlane.f32.xlu0 %v2836_v42  ;;  %2840 = vadd.xlane.f32.xlu1 %v2839_v27  ;;  %v4750_v42 = vld [vmem:[#allocation8 + $0xe8] sm:$0xff]  ;;  %v4751_v27 = vld [vmem:[#allocation8 + $0xf0] sm:$0xff] }
 0x8fc   :  { %v2818_v3 = vmul.f32 %v4750_v42, %v6216_v57  ;;  %v2819_v23 = vmul.f32 %v4751_v27, %v6212_v21 }
 0x8fe   :  { %v2908_v37 = vsel %vm601_vm3, %v2818_v3, 0.0  ;;  %v2911_v16 = vsel %vm601_vm3, %v2819_v23, 0.0 }
 0x8ff   :  { %2885 = vadd.xlane.f32.xlu0 %v2884_v17  ;;  %2888 = vadd.xlane.f32.xlu1 %v2887_v6  ;;  %v4752_v17 = vld [vmem:[#allocation8 + $0x78] sm:$0xff] }
 0x900   :  { %v2804_v46 = vmul.f32 %v4752_v17, %v6216_v57 }
 0x902   :  { %v2866_v6 = vsel %vm601_vm3, %v2804_v46, 0.0 }
 0x903   :  { %2843 = vadd.xlane.f32.xlu0 %v2842_v47  ;;  %2846 = vadd.xlane.f32.xlu1 %v2845_v50  ;;  %v2914_v47 = vsel %vm601_vm3, %v2820_v32, 0.0 }
 0x907   :  { %2891 = vadd.xlane.f32.xlu0 %v2890_v13  ;;  %2894 = vadd.xlane.f32.xlu1 %v2893_v39 }
 0x90b   :  { %2849 = vadd.xlane.f32.xlu0 %v2848_v59  ;;  %2852 = vadd.xlane.f32.xlu1 %v2851_v63 }
 0x90f   :  { %2897 = vadd.xlane.f32.xlu0 %v2896_v51  ;;  %2900 = vadd.xlane.f32.xlu1 %v2899_v10 }
 0x913   :  { %2855 = vadd.xlane.f32.xlu0 %v2854_v52  ;;  %2858 = vadd.xlane.f32.xlu1 %v2857_v55 }
 0x917   :  { %2903 = vadd.xlane.f32.xlu0 %v2902_v15  ;;  %2906 = vadd.xlane.f32.xlu1 %v2905_v36 }
 0x91b   :  { %2861 = vadd.xlane.f32.xlu0 %v2860_v58  ;;  %2864 = vadd.xlane.f32.xlu1 %v2863_v11 }
 0x91f   :  { %2909 = vadd.xlane.f32.xlu0 %v2908_v37  ;;  %2912 = vadd.xlane.f32.xlu1 %v2911_v16 }
 0x923   :  { %2867 = vadd.xlane.f32.xlu0 %v2866_v6 }
 0x927   :  { %2915 = vadd.xlane.f32.xlu0 %v2914_v47 }
 0x930   :  { %v6290_v21 = vpop.xlane.xlu0 %2694  ;;  %v2698_v0 = vpop.xlane.xlu1 %2697 }
 0x931   :  { %v2952_v32 = vrot.slane %v6290_v21, %v5070_v24  ;;  %v2956_v44 = vrot.slane %v2698_v0, %v5073_v26 }
 0x933   :  { %v2957_v0 = vsel %vm869_vm4, %v2956_v44, %v2952_v32 }
 0x934   :  { %v2701_v14 = vpop.xlane.xlu0 %2700  ;;  %v6292_v50 = vpop.xlane.xlu1 %2742 }
 0x935   :  { %v2961_v34 = vrot.slane %v2701_v14, %v5070_v24  ;;  %v3024_v14 = vrot.slane %v6292_v50, %v5070_v24 }
 0x938   :  { %v2704_v4 = vpop.xlane.xlu0 %2703  ;;  %v2749_v43 = vpop.xlane.xlu1 %2748 }
 0x939   :  { %v2965_v60 = vrot.slane %v2704_v4, %v5073_v26  ;;  %v3033_v41 = vrot.slane %v2749_v43, %v5070_v24 }
 0x93b   :  { %v2966_v38 = vsel %vm869_vm4, %v2965_v60, %v2961_v34 }
 0x93c   :  { %v6294_v13 = vpop.xlane.xlu0 %2745  ;;  %v2707_v54 = vpop.xlane.xlu1 %2706  ;;  %v3093_v34 = vsel %vm1006_vm5, %v2966_v38, %v2957_v0 }
 0x93d   :  { %v3028_v4 = vrot.slane %v6294_v13, %v5073_v26  ;;  %v2970_v21 = vrot.slane %v2707_v54, %v5070_v24 }
 0x93f   :  { %v3029_v13 = vsel %vm869_vm4, %v3028_v4, %v3024_v14 }
 0x940   :  { %v2752_v33 = vpop.xlane.xlu0 %2751  ;;  %v6296_v39 = vpop.xlane.xlu1 %2754 }
 0x941   :  { %v3037_v1 = vrot.slane %v2752_v33, %v5073_v26  ;;  %v3042_v54 = vrot.slane %v6296_v39, %v5070_v24 }
 0x943   :  { %v3038_v33 = vsel %vm869_vm4, %v3037_v1, %v3033_v41 }
 0x944   :  { %v2710_v2 = vpop.xlane.xlu0 %2709  ;;  %v6298_v57 = vpop.xlane.xlu1 %2712 }
 0x945   :  { %v2974_v22 = vrot.slane %v2710_v2, %v5073_v26  ;;  %v2979_v38 = vrot.slane %v6298_v57, %v5070_v24 }
 0x947   :  { %v2975_v2 = vsel %vm869_vm4, %v2974_v22, %v2970_v21  ;;  %v3100_v22 = vsel %vm1006_vm5, %v3038_v33, %v3029_v13 }
 0x948   :  { %v6300_v20 = vpop.xlane.xlu0 %2757  ;;  %v6302_v59 = vpop.xlane.xlu1 %2760  ;;  %v3094_v1 = vsel %vm1008_vm6, %v2975_v2, %v3093_v34 }
 0x949   :  { %v3046_v44 = vrot.slane %v6300_v20, %v5073_v26  ;;  %v3051_v39 = vrot.slane %v6302_v59, %v5070_v24 }
 0x94c   :  { %v6304_v31 = vpop.xlane.xlu0 %2715  ;;  %v6306_v7 = vpop.xlane.xlu1 %2718 }
 0x94d   :  { %v2983_v43 = vrot.slane %v6304_v31, %v5073_v26  ;;  %v2988_v20 = vrot.slane %v6306_v7, %v5070_v24  ;;  %v3047_v7 = vsel %vm869_vm4, %v3046_v44, %v3042_v54 }
 0x94e   :  { %v3101_v13 = vsel %vm1008_vm6, %v3047_v7, %v3100_v22 }
 0x94f   :  { %v2984_v57 = vsel %vm869_vm4, %v2983_v43, %v2979_v38 }
 0x950   :  { %v6308_v63 = vpop.xlane.xlu0 %2763  ;;  %v6310_v12 = vpop.xlane.xlu1 %2766  ;;  %v3095_v33 = vsel %vm1010_vm7, %v2984_v57, %v3094_v1 }
 0x951   :  { %v3060_v0 = vrot.slane %v6310_v12, %v5070_v24 }
 0x954   :  { %v6312_v49 = vpop.xlane.xlu0 %2721  ;;  %v6314_v51 = vpop.xlane.xlu1 %2724 }
 0x955   :  { %v2992_v41 = vrot.slane %v6312_v49, %v5073_v26  ;;  %v3055_v49 = vrot.slane %v6308_v63, %v5073_v26 }
 0x957   :  { %v2993_v63 = vsel %vm869_vm4, %v2992_v41, %v2988_v20 }
 0x958   :  { %v6316_v53 = vpop.xlane.xlu0 %2769  ;;  %v6318_v48 = vpop.xlane.xlu1 %2772  ;;  %v3096_v34 = vsel %vm1012_vm8, %v2993_v63, %v3095_v33 }
 0x959   :  { %v3064_v4 = vrot.slane %v6316_v53, %v5073_v26 }
 0x95c   :  { %v6320_v10 = vpop.xlane.xlu0 %2727  ;;  %v6322_v8 = vpop.xlane.xlu1 %2730 }
 0x95d   :  { %v3001_v50 = vrot.slane %v6320_v10, %v5073_v26  ;;  %v2997_v10 = vrot.slane %v6314_v51, %v5070_v24 }
 0x95f   :  { %v3002_v51 = vsel %vm869_vm4, %v3001_v50, %v2997_v10 }
 0x960   :  { %v6324_v45 = vpop.xlane.xlu0 %2775  ;;  %v6326_v52 = vpop.xlane.xlu1 %2778  ;;  %v3097_v54 = vsel %vm1014_vm9, %v3002_v51, %v3096_v34 }
 0x961   :  { %v3073_v21 = vrot.slane %v6324_v45, %v5073_v26  ;;  %v3069_v45 = vrot.slane %v6318_v48, %v5070_v24 }
 0x963   :  { %v3074_v44 = vsel %vm869_vm4, %v3073_v21, %v3069_v45 }
 0x964   :  { %v6328_v30 = vpop.xlane.xlu0 %2733  ;;  %v6330_v40 = vpop.xlane.xlu1 %2736 }
 0x965   :  { %v3010_v60 = vrot.slane %v6328_v30, %v5073_v26  ;;  %v3006_v30 = vrot.slane %v6322_v8, %v5070_v24  ;;  %v3015_v53 = vrot.slane %v6330_v40, %v5070_v24  ;;  %v3056_v8 = vsel %vm869_vm4, %v3055_v49, %v3051_v39 }
 0x966   :  { %v3065_v40 = vsel %vm869_vm4, %v3064_v4, %v3060_v0  ;;  %v3102_v48 = vsel %vm1010_vm7, %v3056_v8, %v3101_v13 }
 0x967   :  { %v3011_v2 = vsel %vm869_vm4, %v3010_v60, %v3006_v30 }
 0x968   :  { %v6332_v55 = vpop.xlane.xlu0 %2781  ;;  %v6334_v9 = vpop.xlane.xlu1 %2784  ;;  %v3098_v41 = vsel %vm1016_vm10, %v3011_v2, %v3097_v54 }
 0x969   :  { %v3087_v4 = vrot.slane %v6334_v9, %v5070_v24 }
 0x96c   :  { %v6336_v56 = vpop.xlane.xlu0 %2739  ;;  %v6338_v15 = vpop.xlane.xlu1 %2822 }
 0x96d   :  { %v3019_v59 = vrot.slane %v6336_v56, %v5073_v26  ;;  %v3082_v56 = vrot.slane %v6332_v55, %v5073_v26  ;;  %v3078_v55 = vrot.slane %v6326_v52, %v5070_v24  ;;  %v3103_v52 = vsel %vm1012_vm8, %v3065_v40, %v3102_v48 }
 0x96e   :  { %v3104_v49 = vsel %vm1014_vm9, %v3074_v44, %v3103_v52 }
 0x96f   :  { %v3020_v43 = vsel %vm869_vm4, %v3019_v59, %v3015_v53  ;;  %v3083_v1 = vsel %vm869_vm4, %v3082_v56, %v3078_v55 }
 0x970   :  { %v6340_v28 = vpop.xlane.xlu0 %2787  ;;  %v6342_v19 = vpop.xlane.xlu1 %2828  ;;  %v3099_v39 = vsel %vm1018_vm11, %v3020_v43, %v3098_v41  ;;  %v3105_v10 = vsel %vm1016_vm10, %v3083_v1, %v3104_v49 }
 0x971   :  { %v3091_v22 = vrot.slane %v6340_v28, %v5073_v26  ;;  %v3155_v60 = vrot.slane %v6342_v19, %v5070_v24  ;;  %v3146_v28 = vrot.slane %v6338_v15, %v5070_v24  ;;  %v3109_v63 = vadd.f32 %v3099_v39, %v6132_v18 }
 0x973   :  { %v3092_v30 = vsel %vm869_vm4, %v3091_v22, %v3087_v4 }
 0x974   :  { %v6344_v36 = vpop.xlane.xlu0 %2825  ;;  %v6346_v5 = vpop.xlane.xlu1 %2870  ;;  %v3106_v49 = vsel %vm1018_vm11, %v3092_v30, %v3105_v10 }
 0x975   :  { %v3150_v20 = vrot.slane %v6344_v36, %v5073_v26  ;;  %v3218_v15 = vrot.slane %v6346_v5, %v5070_v24 }
 0x977   :  { %v3151_v9 = vsel %vm869_vm4, %v3150_v20, %v3146_v28 }
 0x978   :  { %v6348_v61 = vpop.xlane.xlu0 %2831  ;;  %v6350_v58 = vpop.xlane.xlu1 %2876 }
 0x979   :  { %v3159_v38 = vrot.slane %v6348_v61, %v5073_v26  ;;  %v3227_v21 = vrot.slane %v6350_v58, %v5070_v24 }
 0x97b   :  { %v3160_v59 = vsel %vm869_vm4, %v3159_v38, %v3155_v60 }
 0x97c   :  { %v6352_v42 = vpop.xlane.xlu0 %2873  ;;  %v6354_v3 = vpop.xlane.xlu1 %2834  ;;  %v3287_v0 = vsel %vm1006_vm5, %v3160_v59, %v3151_v9  ;;  %v3110_v9 = vadd.f32 %v3106_v49, %v6137_v35 }
 0x97d   :  { %v3222_v36 = vrot.slane %v6352_v42, %v5073_v26  ;;  %v3164_v19 = vrot.slane %v6354_v3, %v5070_v24 }
 0x97f   :  { %v3223_v51 = vsel %vm869_vm4, %v3222_v36, %v3218_v15 }
 0x980   :  { %v6356_v11 = vpop.xlane.xlu0 %2879  ;;  %v6358_v27 = vpop.xlane.xlu1 %2882 }
 0x981   :  { %v3231_v42 = vrot.slane %v6356_v11, %v5073_v26 }
 0x983   :  { %v3232_v8 = vsel %vm869_vm4, %v3231_v42, %v3227_v21  ;;  %v4754_v42 = vld [vmem:[#allocation10] sm:$0xff] }
 0x984   :  { %v6360_v23 = vpop.xlane.xlu0 %2837  ;;  %v6362_v37 = vpop.xlane.xlu1 %2840  ;;  %v3294_v1 = vsel %vm1006_vm5, %v3232_v8, %v3223_v51 }
 0x985   :  { %v3168_v61 = vrot.slane %v6360_v23, %v5073_v26 }
 0x987   :  { %v3169_v3 = vsel %vm869_vm4, %v3168_v61, %v3164_v19 }
 0x988   :  { %v6364_v17 = vpop.xlane.xlu0 %2885  ;;  %v6366_v46 = vpop.xlane.xlu1 %2888  ;;  %v3288_v45 = vsel %vm1008_vm6, %v3169_v3, %v3287_v0  ;;  %v4755_v0 = vld [vmem:[#allocation10 + $0x8] sm:$0xff] }
 0x989   :  { %v3240_v5 = vrot.slane %v6364_v17, %v5073_v26  ;;  %v3236_v17 = vrot.slane %v6358_v27, %v5070_v24 }
 0x98b   :  { %v3241_v40 = vsel %vm869_vm4, %v3240_v5, %v3236_v17  ;;  %v7058_v5 = vld [vmem:[#allocation16_spill] sm:$0xff]  ;;  %v7060_v17 = vmov 0.0  }
 0x98c   :  { %v6368_v16 = vpop.xlane.xlu0 %2843  ;;  %v6370_v6 = vpop.xlane.xlu1 %2846  ;;  %v3295_v39 = vsel %vm1008_vm6, %v3241_v40, %v3294_v1 }
 0x98d   :  { %v3177_v23 = vrot.slane %v6368_v16, %v5073_v26  ;;  %v3173_v16 = vrot.slane %v6362_v37, %v5070_v24  ;;  %v3182_v53 = vrot.slane %v6370_v6, %v5070_v24  ;;  %v3245_v6 = vrot.slane %v6366_v46, %v5070_v24 }
 0x98f   :  { %v3178_v58 = vsel %vm869_vm4, %v3177_v23, %v3173_v16 }
 0x990   :  { %v6375_v47 = vpop.xlane.xlu0 %2891  ;;  %v6381_v29 = vpop.xlane.xlu1 %2894  ;;  %v3289_v27 = vsel %vm1010_vm7, %v3178_v58, %v3288_v45 }
 0x991   :  { %v3249_v37 = vrot.slane %v6375_v47, %v5073_v26  ;;  %v3254_v46 = vrot.slane %v6381_v29, %v5070_v24 }
 0x993   :  { %v3250_v43 = vsel %vm869_vm4, %v3249_v37, %v3245_v6 }
 0x994   :  { %v6388_v62 = vpop.xlane.xlu0 %2849  ;;  %v6395_v25 = vpop.xlane.xlu1 %2852  ;;  %v3296_v60 = vsel %vm1010_vm7, %v3250_v43, %v3295_v39 }
 0x995   :  { %v3186_v18 = vrot.slane %v6388_v62, %v5073_v26 }
 0x997   :  { %v3187_v2 = vsel %vm869_vm4, %v3186_v18, %v3182_v53 }
 0x998   :  { %v6413_v31 = vpop.xlane.xlu0 %2897  ;;  %v6423_v32 = vpop.xlane.xlu1 %2900 }
 0x999   :  { %v3258_v47 = vrot.slane %v6413_v31, %v5073_v26  ;;  %v3263_v44 = vrot.slane %v6423_v32, %v5070_v24 }
 0x99b   :  { %v3259_v38 = vsel %vm869_vm4, %v3258_v47, %v3254_v46 }
 0x99c   :  { %v6445_v14 = vpop.xlane.xlu0 %2855  ;;  %v6452_v12 = vpop.xlane.xlu1 %2858 }
 0x99d   :  { %v3195_v11 = vrot.slane %v6445_v14, %v5073_v26  ;;  %v3191_v14 = vrot.slane %v6395_v25, %v5070_v24  ;;  %v3200_v34 = vrot.slane %v6452_v12, %v5070_v24  ;;  %v3290_v12 = vsel %vm1012_vm8, %v3187_v2, %v3289_v27 }
 0x99f   :  { %v3196_v55 = vsel %vm869_vm4, %v3195_v11, %v3191_v14  ;;  %v7059_v11 = vld [vmem:[#allocation17_spill] sm:$0xff] }
 0x9a0   :  { %v6467_v50 = vpop.xlane.xlu0 %2903  ;;  %v2907_v57 = vpop.xlane.xlu1 %2906  ;;  %v3291_v29 = vsel %vm1014_vm9, %v3196_v55, %v3290_v12 }
 0x9a1   :  { %v3267_v25 = vrot.slane %v6467_v50, %v5073_v26  ;;  %v3272_v50 = vrot.slane %v2907_v57, %v5070_v24  ;;  %v3297_v57 = vsel %vm1012_vm8, %v3259_v38, %v3296_v60 }
 0x9a3   :  { %v3268_v22 = vsel %vm869_vm4, %v3267_v25, %v3263_v44 }
 0x9a4   :  { %v2862_v7 = vpop.xlane.xlu0 %2861  ;;  %v2865_v56 = vpop.xlane.xlu1 %2864  ;;  %v3298_v23 = vsel %vm1014_vm9, %v3268_v22, %v3297_v57 }
 0x9a5   :  { %v3204_v62 = vrot.slane %v2862_v7, %v5073_v26  ;;  %v3209_v48 = vrot.slane %v2865_v56, %v5070_v24 }
 0x9a7   :  { %v3205_v13 = vsel %vm869_vm4, %v3204_v62, %v3200_v34 }
 0x9a8   :  { %v2910_v33 = vpop.xlane.xlu0 %2909  ;;  %v2913_v52 = vpop.xlane.xlu1 %2912  ;;  %v3292_v20 = vsel %vm1016_vm10, %v3205_v13, %v3291_v29 }
 0x9a9   :  { %v3276_v31 = vrot.slane %v2910_v33, %v5073_v26  ;;  %v3281_v36 = vrot.slane %v2913_v52, %v5070_v24 }
 0x9ab   :  { %v3277_v61 = vsel %vm869_vm4, %v3276_v31, %v3272_v50  ;;  %v7063_v50 = vld [vmem:[#allocation18_spill] sm:$0xff] }
 0x9ac   :  { %v2868_v54 = vpop.xlane.xlu0 %2867  ;;  %v3299_v7 = vsel %vm1016_vm10, %v3277_v61, %v3298_v23 }
 0x9ad   :  { %v3213_v41 = vrot.slane %v2868_v54, %v5073_v26 }
 0x9af   :  { %v3214_v32 = vsel %vm869_vm4, %v3213_v41, %v3209_v48 }
 0x9b0   :  { %v2916_v4 = vpop.xlane.xlu0 %2915  ;;  %v3293_v28 = vsel %vm1018_vm11, %v3214_v32, %v3292_v20 }
 0x9b1   :  { %v3285_v59 = vrot.slane %v2916_v4, %v5073_v26  ;;  %v3303_v19 = vadd.f32 %v3293_v28, %v3109_v63  ;;  %v7064_v4 = vld [vmem:[#allocation19_spill] sm:$0xff] }
 0x9b3   :  { %v3286_v10 = vsel %vm869_vm4, %v3285_v59, %v3281_v36  ;;  %v3305_v30 = vmul.f32 0.20412415, %v3303_v19 }
 0x9b4   :  { %v3300_v15 = vsel %vm1018_vm11, %v3286_v10, %v3299_v7 }
 0x9b5   :  { %v3307_v21 = vadd.f32 %v4754_v42, %v3305_v30  ;;  %v3304_v3 = vadd.f32 %v3300_v15, %v3110_v9 }
 0x9b7   :  { %v3309_v16 = vsel %vm601_vm3, %v3307_v21, -inf  ;;  %v3306_v18 = vmul.f32 0.20412415, %v3304_v3 }
 0x9b8   :  { %3310 = vmax.xlane.f32.xlu1 %v3309_v16 }
 0x9b9   :  { %v3308_v63 = vadd.f32 %v4755_v0, %v3306_v18 }
 0x9bb   :  { %v3312_v51 = vsel %vm601_vm3, %v3308_v63, -inf }
 0x9bc   :  { %3313 = vmax.xlane.f32.xlu0 %v3312_v51 }
 0x9c9   :  { %3396 = vrot.lane.b32.xlu1 %v7058_v5, %s4968_s28 }
 0x9cd   :  { %3392 = vrot.lane.b32.xlu1 %v7059_v11, %s4969_s29 }
 0x9d2   :  { %3394 = vrot.lane.b32.xlu0 %v7059_v11, %s4968_s28 }
 0xa41   :  { %v3311_v35 = vpop.xlane.xlu1 %3310 }
 0xa42   :  { %v3315_v58 = vsub.f32 %v3307_v21, %v3311_v35 }
 0xa44   :  { %v3317_v53 = vmul.f32 1.442695, %v3315_v58 }
 0xa45   :  { %v3314_v37 = vpop.xlane.xlu0 %3313  ;;  %v3397_v62 = vpop.permute.xlu1 %3396 }
 0xa46   :  { %4640 = vpow2.f32 %v3317_v53  ;;  %v3316_v56 = vsub.f32 %v3308_v63, %v3314_v37  ;;  %v3405_v33 = vsel %vm262_vm2, %v3397_v62, 0 }
 0xa47   :  { %4576 = vmatpush3.bf16.xpose.msra.mxu1 %v3405_v33 }
 0xa48   :  { %v3319_v8 = vmul.f32 1.442695, %v3316_v56  ;;  %4577 = vmatprep.subr.bf16.mxu1 %v7060_v17 }
 0xa49   :  { %v3395_v45 = vpop.permute.xlu0 %3394  ;;  %v3393_v47 = vpop.permute.xlu1 %3392 }
 0xa4a   :  { %4642 = vpow2.f32 %v3319_v8  ;;  %v3402_v14 = vsel %vm262_vm2, %v3395_v45, 0 }
 0xa4f   :  { %4578 = vmatpush3.bf16.xpose.msra.mxu1 %v3402_v14 }
 0xa53   :  { %v4641_v6 = vpop.eup %4640 }
 0xa54   :  { %v3321_v2 = vsel %vm601_vm3, %v4641_v6, 0.0 }
 0xa55   :  { %3322 = vadd.xlane.f32.xlu1 %v3321_v2 }
 0xa56   :  { %4580 = vmatmul.mubr.msk.bf16.vlgmr.msra.gmra.mxu1 %vm262_vm2, %v3393_v47 }
 0xa57   :  { %v4643_v34 = vpop.eup %4642 }
 0xa58   :  { %v3324_v40 = vsel %vm601_vm3, %v4643_v34, 0.0 }
 0xa59   :  { %3325 = vadd.xlane.f32.xlu0 %v3324_v40 }
 0xa66   :  { %3448 = vrot.lane.b32.xlu1 %v7058_v5, %s4969_s29 }
 0xa6f   :  { %3334 = vrot.lane.b32.xlu0 %v7059_v11, %s4970_s30 }
 0xade   :  { %v3323_v27 = vpop.xlane.xlu1 %3322 }
 0xadf   :  { %4644 = vrcp.f32 %v3323_v27 }
 0xae2   :  { %v3326_v55 = vpop.xlane.xlu0 %3325  ;;  %v3449_v54 = vpop.permute.xlu1 %3448 }
 0xae3   :  { %4646 = vrcp.f32 %v3326_v55  ;;  %v3451_v38 = vsel %vm262_vm2, %v3449_v54, 0  ;;  %v4758_v54 = vld [vmem:[#allocation7 + $0x10] sm:$0xff] }
 0xae6   :  { %v3335_v25 = vpop.permute.xlu0 %3334 }
 0xae7   :  { %4570 = vmatpush3.bf16.msra.mxu0 %v3335_v25  ;;  %v4756_v25 = vld [vmem:[#allocation7] sm:$0xff] }
 0xae8   :  { %4583 = vmatprep.subr.bf16.mxu0 %v7060_v17 }
 0xaec   :  { %v4645_v43 = vpop.eup %4644 }
 0xaed   :  { %v3329_v46 = vmul.f32 %v4645_v43, %v4641_v6 }
 0xaef   :  { %v3331_v44 = vsel %vm190_vm12, 0.0, %v3329_v46  ;;  %v4757_v46 = vld [vmem:[#allocation7 + $0x8] sm:$0xff] }
 0xaf0   :  { %v4647_v13 = vpop.eup %4646 }
 0xaf1   :  { %v3330_v31 = vmul.f32 %v4647_v13, %v4643_v34 }
 0xaf3   :  { %v3332_v41 = vsel %vm191_vm13, 0.0, %v3330_v31 }
 0xaf4   :  { %v3333_v1 = vpack.c.bf16 %v3332_v41, %v3331_v44  ;;  %v4759_v41 = vld [vmem:[#allocation7 + $0x18] sm:$0xff] }
 0xaf6   :  { %4572 = vmatmul.mubr.msk.bf16.vlgmr.msra.gmra.mxu0 %vm601_vm3, %v3333_v1 }
 0xaf7   :  { %4584 = vmatpush3.bf16.xpose.msra.mxu0 %v3451_v38  ;;  %4585 = vmatprep.mubr.msk.bf16.mxu0 %vm4960_vm1, %v7060_v17 }
 0xaf8   :  { %4589 = vmatprep.subr.bf16.mxu0 %v7060_v17 }
 0xafe   :  { %4586 = vmatmul.mubr.msk.bf16.vlgmr.msra.gmra.mxu0 %vm262_vm2, %v3395_v45 }
 0xaff   :  { %4591 = vmatprep.mubr.msk.bf16.mxu0 %vm4960_vm1, %v7060_v17 }
 0xb16   :  { %v6592_v29 = vpop.f32.mrf.mxu1 }
 0xb17   :  { %v3503_v52 = vrot.slane %v6592_v29, %v7063_v50  ;;  %v3496_v23 = vcombine.high %v6592_v29, %v6592_v29 }
 0xb18   :  { %v4581_v39 = vpop.f32.mrf.mxu1 }
 0xb19   :  { %v3511_v22 = vcombine.high %v3503_v52, %v3503_v52  ;;  %v3519_v20 = vrot.slane %v3503_v52, %v7063_v50  ;;  %v3510_v42 = vrot.slane %v3496_v23, %v7063_v50  ;;  %v4760_v39 = vld [vmem:[#allocation7 + $0x80] sm:$0xff] }
 0xb1a   :  { %v6597_v32 = vpop.f32.mrf.mxu1 }
 0xb1b   :  { %v3533_v49 = vrot.slane %v3511_v22, %v7063_v50  ;;  %v3552_v60 = vrot.slane %v6597_v32, %v7063_v50  ;;  %v3597_v28 = vrot.slane %v3519_v20, %v7064_v4  ;;  %v3541_v7 = vcombine.high %v3519_v20, %v3519_v20  ;;  %v4761_v20 = vld [vmem:[#allocation7 + $0x88] sm:$0xff] }
 0xb1c   :  { %v4582_v61 = vpop.f32.mrf.mxu1  ;;  %v3545_v30 = vcombine.high %v6597_v32, %v6597_v32  ;;  %v3512_v63 = vcombine.high %v3510_v42, %v3510_v42  ;;  %v3526_v51 = vrot.slane %v3510_v42, %v7063_v50 }
 0xb1d   :  { %v3601_v57 = vrot.slane %v3533_v49, %v7064_v4  ;;  %v3560_v36 = vcombine.high %v3552_v60, %v3552_v60  ;;  %v3568_v59 = vrot.slane %v3552_v60, %v7063_v50  ;;  %3658 = vrot.lane.b32.xlu1 %v3597_v28, %s4963_s2  ;;  %v3605_v21 = vrot.slane %v3541_v7, %v7064_v4  ;;  %v4762_v28 = vld [vmem:[#allocation7 + $0x90] sm:$0xff] }
 0xb1e   :  { %v3543_v3 = vcombine.high %v3533_v49, %v3533_v49  ;;  %v3559_v16 = vrot.slane %v3545_v30, %v7063_v50  ;;  %v3613_v37 = vrot.slane %v3526_v51, %v7064_v4  ;;  %v3540_v62 = vrot.slane %v3512_v63, %v7063_v50 }
 0xb1f   :  { %3660 = vrot.lane.b32.xlu0 %v3601_v57, %s4963_s2  ;;  %v3582_v19 = vrot.slane %v3560_v36, %v7063_v50  ;;  %v3629_v10 = vrot.slane %v3568_v59, %v7064_v4  ;;  %v3590_v9 = vcombine.high %v3568_v59, %v3568_v59  ;;  %v3542_v17 = vcombine.high %v3526_v51, %v3526_v51  ;;  %v4763_v36 = vld [vmem:[#allocation7 + $0x98] sm:$0xff] }
 0xb20   :  { %v3609_v5 = vrot.slane %v3543_v3, %v7064_v4  ;;  %v3561_v35 = vcombine.high %v3559_v16, %v3559_v16  ;;  %v3575_v58 = vrot.slane %v3559_v16, %v7063_v50  ;;  %v3617_v8 = vrot.slane %v3540_v62, %v7064_v4  ;;  %v4766_v16 = vld [vmem:[#allocation7 + $0xa0] sm:$0xff] }
 0xb21   :  { %v3633_v15 = vrot.slane %v3582_v19, %v7064_v4  ;;  %3674 = vrot.lane.b32.xlu1 %v3629_v10, %s4963_s2  ;;  %v3637_v18 = vrot.slane %v3590_v9, %v7064_v4  ;;  %v3592_v0 = vcombine.high %v3582_v19, %v3582_v19  ;;  %v3621_v6 = vrot.slane %v3542_v17, %v7064_v4  ;;  %v4764_v10 = vld [vmem:[#allocation7 + $0x20] sm:$0xff]  ;;  %v4765_v9 = vld [vmem:[#allocation7 + $0x28] sm:$0xff]  ;;  %v4770_v17 = vld [vmem:[#allocation7 + $0xb0] sm:$0xff] }
 0xb22   :  { %v3645_v56 = vrot.slane %v3575_v58, %v7064_v4  ;;  %v3589_v33 = vrot.slane %v3561_v35, %v7063_v50  ;;  %v3591_v14 = vcombine.high %v3575_v58, %v3575_v58  ;;  %v3544_v2 = vcombine.high %v3540_v62, %v3540_v62  ;;  %v4768_v58 = vld [vmem:[#allocation7 + $0x30] sm:$0xff] }
 0xb23   :  { %3676 = vrot.lane.b32.xlu0 %v3633_v15, %s4963_s2  ;;  %v3641_v53 = vrot.slane %v3592_v0, %v7064_v4  ;;  %v4767_v0 = vld [vmem:[#allocation7 + $0xa8] sm:$0xff] }
 0xb24   :  { %v3649_v45 = vrot.slane %v3589_v33, %v7064_v4  ;;  %v3653_v47 = vrot.slane %v3591_v14, %v7064_v4  ;;  %v3593_v34 = vcombine.high %v3589_v33, %v3589_v33  ;;  %v3625_v40 = vrot.slane %v3544_v2, %v7064_v4  ;;  %v4771_v14 = vld [vmem:[#allocation7 + $0xb8] sm:$0xff] }
 0xb25   :  { %3662 = vrot.lane.b32.xlu1 %v3605_v21, %s4963_s2 }
 0xb26   :  { %v3657_v27 = vrot.slane %v3593_v34, %v7064_v4 }
 0xb27   :  { %3678 = vrot.lane.b32.xlu0 %v3637_v18, %s4963_s2 }
 0xb29   :  { %3664 = vrot.lane.b32.xlu1 %v3609_v5, %s4963_s2 }
 0xb2b   :  { %3680 = vrot.lane.b32.xlu0 %v3641_v53, %s4963_s2 }
 0xb2d   :  { %3666 = vrot.lane.b32.xlu1 %v3613_v37, %s4963_s2  ;;  %v4769_v37 = vld [vmem:[#allocation7 + $0x38] sm:$0xff] }
 0xb2f   :  { %3682 = vrot.lane.b32.xlu0 %v3645_v56, %s4963_s2 }
 0xb31   :  { %3668 = vrot.lane.b32.xlu1 %v3617_v8, %s4963_s2 }
 0xb33   :  { %3684 = vrot.lane.b32.xlu0 %v3649_v45, %s4963_s2 }
 0xb35   :  { %3670 = vrot.lane.b32.xlu1 %v3621_v6, %s4963_s2 }
 0xb37   :  { %3686 = vrot.lane.b32.xlu0 %v3653_v47, %s4963_s2 }
 0xb39   :  { %3672 = vrot.lane.b32.xlu1 %v3625_v40, %s4963_s2  ;;  %v4772_v40 = vld [vmem:[#allocation7 + $0x40] sm:$0xff] }
 0xb3b   :  { %3688 = vrot.lane.b32.xlu0 %v3657_v27, %s4963_s2 }
 0xb8f   :  { %v3659_v55 = vpop.permute.xlu1 %3658 }
 0xb90   :  { %v3706_v43 = vmul.f32 %v4756_v25, %v3659_v55  ;;  %v3707_v13 = vmul.f32 %v4757_v46, %v3659_v55  ;;  %v4773_v55 = vld [vmem:[#allocation7 + $0x48] sm:$0xff] }
 0xb91   :  { %v3661_v31 = vpop.permute.xlu0 %3660 }
 0xb92   :  { %v3708_v44 = vmul.f32 %v4758_v54, %v3661_v31  ;;  %v3709_v1 = vmul.f32 %v4759_v41, %v3661_v31  ;;  %v3738_v38 = vsel %vm601_vm3, %v3706_v43, 0.0  ;;  %v3741_v50 = vsel %vm601_vm3, %v3707_v13, 0.0  ;;  %v4774_v31 = vld [vmem:[#allocation7 + $0xc0] sm:$0xff] }
 0xb93   :  { %3739 = vadd.xlane.f32.xlu1 %v3738_v38  ;;  %3742 = vadd.xlane.f32.xlu0 %v3741_v50  ;;  %v3675_v52 = vpop.permute.xlu1 %3674 }
 0xb94   :  { %v3722_v22 = vmul.f32 %v4760_v39, %v3675_v52  ;;  %v3723_v49 = vmul.f32 %v4761_v20, %v3675_v52  ;;  %v3747_v60 = vsel %vm601_vm3, %v3709_v1, 0.0  ;;  %v3744_v61 = vsel %vm601_vm3, %v3708_v44, 0.0  ;;  %v4775_v44 = vld [vmem:[#allocation7 + $0xc8] sm:$0xff]  ;;  %v4776_v39 = vld [vmem:[#allocation7 + $0x50] sm:$0xff]  ;;  %v4777_v20 = vld [vmem:[#allocation7 + $0x58] sm:$0xff] }
 0xb95   :  { %v3677_v4 = vpop.permute.xlu0 %3676 }
 0xb96   :  { %v3724_v57 = vmul.f32 %v4762_v28, %v3677_v4  ;;  %v3725_v59 = vmul.f32 %v4763_v36, %v3677_v4  ;;  %v3789_v19 = vsel %vm601_vm3, %v3723_v49, 0.0  ;;  %v3786_v23 = vsel %vm601_vm3, %v3722_v22, 0.0  ;;  %v4778_v36 = vld [vmem:[#allocation7 + $0xd0] sm:$0xff] }
 0xb97   :  { %3748 = vadd.xlane.f32.xlu1 %v3747_v60  ;;  %3745 = vadd.xlane.f32.xlu0 %v3744_v61  ;;  %v3663_v7 = vpop.permute.xlu1 %3662 }
 0xb98   :  { %v3710_v30 = vmul.f32 %v4764_v10, %v3663_v7  ;;  %v3711_v15 = vmul.f32 %v4765_v9, %v3663_v7  ;;  %v3795_v42 = vsel %vm601_vm3, %v3725_v59, 0.0  ;;  %v3792_v21 = vsel %vm601_vm3, %v3724_v57, 0.0 }
 0xb99   :  { %v3679_v3 = vpop.permute.xlu0 %3678 }
 0xb9a   :  { %v3726_v18 = vmul.f32 %v4766_v16, %v3679_v3  ;;  %v3727_v63 = vmul.f32 %v4767_v0, %v3679_v3  ;;  %v3753_v51 = vsel %vm601_vm3, %v3711_v15, 0.0  ;;  %v3750_v5 = vsel %vm601_vm3, %v3710_v30, 0.0  ;;  %v4781_v3 = vld [vmem:[#allocation7 + $0x68] sm:$0xff] }
 0xb9b   :  { %3790 = vadd.xlane.f32.xlu1 %v3789_v19  ;;  %3787 = vadd.xlane.f32.xlu0 %v3786_v23  ;;  %v3665_v35 = vpop.permute.xlu1 %3664  ;;  %v4779_v19 = vld [vmem:[#allocation7 + $0xd8] sm:$0xff] }
 0xb9c   :  { %v3712_v53 = vmul.f32 %v4768_v58, %v3665_v35  ;;  %v3713_v62 = vmul.f32 %v4769_v37, %v3665_v35  ;;  %v3801_v56 = vsel %vm601_vm3, %v3727_v63, 0.0  ;;  %v3798_v33 = vsel %vm601_vm3, %v3726_v18, 0.0  ;;  %v4782_v35 = vld [vmem:[#allocation7 + $0xe0] sm:$0xff] }
 0xb9d   :  { %v3681_v8 = vpop.permute.xlu0 %3680 }
 0xb9e   :  { %v3728_v45 = vmul.f32 %v4770_v17, %v3681_v8  ;;  %v3729_v6 = vmul.f32 %v4771_v14, %v3681_v8  ;;  %v3759_v2 = vsel %vm601_vm3, %v3713_v62, 0.0  ;;  %v3756_v47 = vsel %vm601_vm3, %v3712_v53, 0.0  ;;  %v4783_v53 = vld [vmem:[#allocation7 + $0xe8] sm:$0xff]  ;;  %v4784_v17 = vld [vmem:[#allocation7 + $0x70] sm:$0xff]  ;;  %v4785_v14 = vld [vmem:[#allocation7 + $0x78] sm:$0xff] }
 0xb9f   :  { %3796 = vadd.xlane.f32.xlu1 %v3795_v42  ;;  %3793 = vadd.xlane.f32.xlu0 %v3792_v21  ;;  %v3667_v34 = vpop.permute.xlu1 %3666  ;;  %v4780_v42 = vld [vmem:[#allocation7 + $0x60] sm:$0xff] }
 0xba0   :  { %v3714_v27 = vmul.f32 %v4772_v40, %v3667_v34  ;;  %v3715_v25 = vmul.f32 %v4773_v55, %v3667_v34  ;;  %v3807_v43 = vsel %vm601_vm3, %v3729_v6, 0.0  ;;  %v3804_v46 = vsel %vm601_vm3, %v3728_v45, 0.0  ;;  %v4786_v40 = vld [vmem:[#allocation7 + $0xf0] sm:$0xff]  ;;  %v4787_v55 = vld [vmem:[#allocation7 + $0xf8] sm:$0xff] }
 0xba1   :  { %v3683_v13 = vpop.permute.xlu0 %3682 }
 0xba2   :  { %v3730_v54 = vmul.f32 %v4774_v31, %v3683_v13  ;;  %v3731_v41 = vmul.f32 %v4775_v44, %v3683_v13  ;;  %v3765_v1 = vsel %vm601_vm3, %v3715_v25, 0.0  ;;  %v3762_v38 = vsel %vm601_vm3, %v3714_v27, 0.0 }
 0xba3   :  { %3754 = vadd.xlane.f32.xlu1 %v3753_v51  ;;  %3751 = vadd.xlane.f32.xlu0 %v3750_v5  ;;  %v3669_v50 = vpop.permute.xlu1 %3668 }
 0xba4   :  { %v3716_v22 = vmul.f32 %v4776_v39, %v3669_v50  ;;  %v3717_v49 = vmul.f32 %v4777_v20, %v3669_v50  ;;  %v3813_v60 = vsel %vm601_vm3, %v3731_v41, 0.0  ;;  %v3810_v61 = vsel %vm601_vm3, %v3730_v54, 0.0  ;;  %v4788_v54 = vld [vmem:[#allocation8 + $0x8] sm:$0xff]  ;;  %v4789_v41 = vld [vmem:[#allocation8] sm:$0xff]  ;;  %v4790_v39 = vld [vmem:[#allocation8 + $0x18] sm:$0xff] }
 0xba5   :  { %v3685_v4 = vpop.permute.xlu0 %3684  ;;  %v4791_v20 = vld [vmem:[#allocation8 + $0x10] sm:$0xff] }
 0xba6   :  { %v3732_v59 = vmul.f32 %v4778_v36, %v3685_v4  ;;  %v3733_v23 = vmul.f32 %v4779_v19, %v3685_v4  ;;  %v3771_v7 = vsel %vm601_vm3, %v3717_v49, 0.0  ;;  %v3768_v10 = vsel %vm601_vm3, %v3716_v22, 0.0  ;;  %v4792_v4 = vld [vmem:[#allocation8 + $0x88] sm:$0xff]  ;;  %v4793_v36 = vld [vmem:[#allocation8 + $0x80] sm:$0xff] }
 0xba7   :  { %3802 = vadd.xlane.f32.xlu1 %v3801_v56  ;;  %3799 = vadd.xlane.f32.xlu0 %v3798_v33  ;;  %v3671_v30 = vpop.permute.xlu1 %3670 }
 0xba8   :  { %v3718_v21 = vmul.f32 %v4780_v42, %v3671_v30  ;;  %v3719_v16 = vmul.f32 %v4781_v3, %v3671_v30  ;;  %v3819_v18 = vsel %vm601_vm3, %v3733_v23, 0.0  ;;  %v3816_v0 = vsel %vm601_vm3, %v3732_v59, 0.0  ;;  %v4795_v30 = vld [vmem:[#allocation8 + $0x90] sm:$0xff]  ;;  %v4796_v3 = vld [vmem:[#allocation8 + $0x28] sm:$0xff] }
 0xba9   :  { %v3687_v63 = vpop.permute.xlu0 %3686 }
 0xbaa   :  { %v3734_v58 = vmul.f32 %v4782_v35, %v3687_v63  ;;  %v3735_v37 = vmul.f32 %v4783_v53, %v3687_v63  ;;  %v3777_v62 = vsel %vm601_vm3, %v3719_v16, 0.0  ;;  %v3774_v56 = vsel %vm601_vm3, %v3718_v21, 0.0  ;;  %v4798_v35 = vld [vmem:[#allocation8 + $0xa8] sm:$0xff]  ;;  %v4799_v53 = vld [vmem:[#allocation8 + $0xa0] sm:$0xff] }
 0xbab   :  { %3760 = vadd.xlane.f32.xlu1 %v3759_v2  ;;  %3757 = vadd.xlane.f32.xlu0 %v3756_v47  ;;  %v3673_v33 = vpop.permute.xlu1 %3672 }
 0xbac   :  { %v3720_v45 = vmul.f32 %v4784_v17, %v3673_v33  ;;  %v3721_v6 = vmul.f32 %v4785_v14, %v3673_v33  ;;  %v3825_v2 = vsel %vm601_vm3, %v3735_v37, 0.0  ;;  %v3822_v47 = vsel %vm601_vm3, %v3734_v58, 0.0  ;;  %v4800_v33 = vld [vmem:[#allocation8 + $0x38] sm:$0xff]  ;;  %v4801_v17 = vld [vmem:[#allocation8 + $0x30] sm:$0xff] }
 0xbad   :  { %v3689_v34 = vpop.permute.xlu0 %3688 }
 0xbae   :  { %v3736_v27 = vmul.f32 %v4786_v40, %v3689_v34  ;;  %v3737_v25 = vmul.f32 %v4787_v55, %v3689_v34  ;;  %v4803_v34 = vld [vmem:[#allocation8 + $0xb0] sm:$0xff] }
 0xbaf   :  { %3808 = vadd.xlane.f32.xlu1 %v3807_v43  ;;  %3805 = vadd.xlane.f32.xlu0 %v3804_v46  ;;  %v3783_v43 = vsel %vm601_vm3, %v3721_v6, 0.0  ;;  %v3780_v46 = vsel %vm601_vm3, %v3720_v45, 0.0 }
 0xbb0   :  { %v3831_v13 = vsel %vm601_vm3, %v3737_v25, 0.0  ;;  %v3828_v31 = vsel %vm601_vm3, %v3736_v27, 0.0  ;;  %v4804_v25 = vld [vmem:[#allocation8 + $0x48] sm:$0xff] }
 0xbb3   :  { %3766 = vadd.xlane.f32.xlu1 %v3765_v1  ;;  %3763 = vadd.xlane.f32.xlu0 %v3762_v38 }
 0xbb6   :  { %v6664_v52 = vpop.f32.mrf.mxu0 }
 0xbb7   :  { %3814 = vadd.xlane.f32.xlu1 %v3813_v60  ;;  %3811 = vadd.xlane.f32.xlu0 %v3810_v61 }
 0xbb8   :  { %v4573_v28 = vpop.f32.mrf.mxu0 }
 0xbba   :  { %v6668_v57 = vpop.f32.mrf.mxu0 }
 0xbbb   :  { %3772 = vadd.xlane.f32.xlu1 %v3771_v7  ;;  %3769 = vadd.xlane.f32.xlu0 %v3768_v10  ;;  %v4794_v7 = vld [vmem:[#allocation8 + $0x98] sm:$0xff] }
 0xbbc   :  { %v4574_v9 = vpop.f32.mrf.mxu0 }
 0xbbe   :  { %v6672_v15 = vpop.f32.mrf.mxu0 }
 0xbbf   :  { %3820 = vadd.xlane.f32.xlu1 %v3819_v18  ;;  %3817 = vadd.xlane.f32.xlu0 %v3816_v0  ;;  %v3834_v1 = vmul.f32 %v4789_v41, %v6672_v15  ;;  %v3836_v49 = vmul.f32 %v4791_v20, %v6672_v15  ;;  %v3850_v59 = vmul.f32 %v4793_v36, %v6672_v15  ;;  %v4797_v18 = vld [vmem:[#allocation8 + $0x20] sm:$0xff] }
 0xbc0   :  { %v4587_v51 = vpop.f32.mrf.mxu0  ;;  %v3852_v9 = vmul.f32 %v4795_v30, %v6672_v15  ;;  %v3838_v0 = vmul.f32 %v4797_v18, %v6672_v15  ;;  %v3854_v37 = vmul.f32 %v4799_v53, %v6672_v15  ;;  %v3840_v45 = vmul.f32 %v4801_v17, %v6672_v15 }
 0xbc1   :  { %v3866_v50 = vsel %vm601_vm3, %v3834_v1, 0.0  ;;  %v3872_v61 = vsel %vm601_vm3, %v3836_v49, 0.0  ;;  %v3914_v23 = vsel %vm601_vm3, %v3850_v59, 0.0  ;;  %v3856_v40 = vmul.f32 %v4803_v34, %v6672_v15  ;;  %v4807_v1 = vld [vmem:[#allocation8 + $0xc0] sm:$0xff]  ;;  %v4809_v49 = vld [vmem:[#allocation8 + $0x50] sm:$0xff] }
 0xbc2   :  { %v6676_v5 = vpop.f32.mrf.mxu0  ;;  %v3920_v21 = vsel %vm601_vm3, %v3852_v9, 0.0  ;;  %v3878_v51 = vsel %vm601_vm3, %v3838_v0, 0.0  ;;  %v3884_v6 = vsel %vm601_vm3, %v3840_v45, 0.0  ;;  %v4811_v59 = vld [vmem:[#allocation8 + $0xd0] sm:$0xff]  ;;  %v4813_v9 = vld [vmem:[#allocation8 + $0x60] sm:$0xff] }
 0xbc3   :  { %3778 = vadd.xlane.f32.xlu1 %v3777_v62  ;;  %3775 = vadd.xlane.f32.xlu0 %v3774_v56  ;;  %v3835_v44 = vmul.f32 %v4788_v54, %v6676_v5  ;;  %v3837_v22 = vmul.f32 %v4790_v39, %v6676_v5  ;;  %v3851_v28 = vmul.f32 %v4792_v4, %v6676_v5  ;;  %v3926_v56 = vsel %vm601_vm3, %v3854_v37, 0.0  ;;  %v4815_v0 = vld [vmem:[#allocation8 + $0xe0] sm:$0xff]  ;;  %v4817_v37 = vld [vmem:[#allocation8 + $0x70] sm:$0xff] }
 0xbc4   :  { %v4588_v8 = vpop.f32.mrf.mxu0  ;;  %v3853_v10 = vmul.f32 %v4794_v7, %v6676_v5  ;;  %v3839_v16 = vmul.f32 %v4796_v3, %v6676_v5  ;;  %v3855_v58 = vmul.f32 %v4798_v35, %v6676_v5  ;;  %v3932_v55 = vsel %vm601_vm3, %v3856_v40, 0.0  ;;  %v4819_v45 = vld [vmem:[#allocation8 + $0xf0] sm:$0xff] }
 0xbc5   :  { %v3869_v38 = vsel %vm601_vm3, %v3835_v44, 0.0  ;;  %v3875_v60 = vsel %vm601_vm3, %v3837_v22, 0.0  ;;  %v3917_v19 = vsel %vm601_vm3, %v3851_v28, 0.0  ;;  %v3841_v8 = vmul.f32 %v4800_v33, %v6676_v5  ;;  %v4806_v44 = vld [vmem:[#allocation8 + $0xc8] sm:$0xff]  ;;  %v4808_v22 = vld [vmem:[#allocation8 + $0x58] sm:$0xff] }
 0xbc6   :  { %v3923_v42 = vsel %vm601_vm3, %v3853_v10, 0.0  ;;  %v3881_v63 = vsel %vm601_vm3, %v3839_v16, 0.0  ;;  %v3929_v62 = vsel %vm601_vm3, %v3855_v58, 0.0  ;;  %v3859_v41 = vmul.f32 %v4806_v44, %v6676_v5  ;;  %v4810_v28 = vld [vmem:[#allocation8 + $0xd8] sm:$0xff]  ;;  %v4812_v10 = vld [vmem:[#allocation8 + $0x68] sm:$0xff] }
 0xbc7   :  { %3826 = vadd.xlane.f32.xlu1 %v3825_v2  ;;  %3823 = vadd.xlane.f32.xlu0 %v3822_v47  ;;  %v3887_v14 = vsel %vm601_vm3, %v3841_v8, 0.0  ;;  %v4802_v2 = vld [vmem:[#allocation8 + $0xb8] sm:$0xff]  ;;  %v3845_v20 = vmul.f32 %v4808_v22, %v6676_v5  ;;  %v3861_v36 = vmul.f32 %v4810_v28, %v6676_v5  ;;  %v3847_v30 = vmul.f32 %v4812_v10, %v6676_v5  ;;  %v4814_v16 = vld [vmem:[#allocation8 + $0xe8] sm:$0xff] }
 0xbc8   :  { %v3857_v47 = vmul.f32 %v4802_v2, %v6676_v5  ;;  %v3863_v18 = vmul.f32 %v4814_v16, %v6676_v5  ;;  %v4816_v58 = vld [vmem:[#allocation8 + $0x78] sm:$0xff] }
 0xbc9   :  { %v3849_v53 = vmul.f32 %v4816_v58, %v6676_v5  ;;  %v4818_v8 = vld [vmem:[#allocation8 + $0xf8] sm:$0xff] }
 0xbca   :  { %v3935_v27 = vsel %vm601_vm3, %v3857_v47, 0.0  ;;  %v3865_v17 = vmul.f32 %v4818_v8, %v6676_v5 }
 0xbcb   :  { %3784 = vadd.xlane.f32.xlu1 %v3783_v43  ;;  %3781 = vadd.xlane.f32.xlu0 %v3780_v46  ;;  %v3843_v43 = vmul.f32 %v4804_v25, %v6676_v5  ;;  %v4805_v46 = vld [vmem:[#allocation8 + $0x40] sm:$0xff] }
 0xbcf   :  { %3832 = vadd.xlane.f32.xlu1 %v3831_v13  ;;  %3829 = vadd.xlane.f32.xlu0 %v3828_v31  ;;  %v3842_v13 = vmul.f32 %v4805_v46, %v6672_v15  ;;  %v3893_v31 = vsel %vm601_vm3, %v3843_v43, 0.0 }
 0xbd1   :  { %v3890_v54 = vsel %vm601_vm3, %v3842_v13, 0.0 }
 0xbd3   :  { %3870 = vadd.xlane.f32.xlu1 %v3869_v38  ;;  %3867 = vadd.xlane.f32.xlu0 %v3866_v50  ;;  %v3858_v38 = vmul.f32 %v4807_v1, %v6672_v15  ;;  %v3941_v50 = vsel %vm601_vm3, %v3859_v41, 0.0 }
 0xbd5   :  { %v3938_v39 = vsel %vm601_vm3, %v3858_v38, 0.0 }
 0xbd7   :  { %3876 = vadd.xlane.f32.xlu1 %v3875_v60  ;;  %3873 = vadd.xlane.f32.xlu0 %v3872_v61  ;;  %v3844_v60 = vmul.f32 %v4809_v49, %v6672_v15  ;;  %v3899_v61 = vsel %vm601_vm3, %v3845_v20, 0.0 }
 0xbd9   :  { %v3896_v4 = vsel %vm601_vm3, %v3844_v60, 0.0 }
 0xbdb   :  { %3918 = vadd.xlane.f32.xlu1 %v3917_v19  ;;  %3915 = vadd.xlane.f32.xlu0 %v3914_v23  ;;  %v3860_v19 = vmul.f32 %v4811_v59, %v6672_v15  ;;  %v3947_v23 = vsel %vm601_vm3, %v3861_v36, 0.0 }
 0xbdd   :  { %v3944_v7 = vsel %vm601_vm3, %v3860_v19, 0.0 }
 0xbdf   :  { %3924 = vadd.xlane.f32.xlu1 %v3923_v42  ;;  %3921 = vadd.xlane.f32.xlu0 %v3920_v21  ;;  %v3846_v42 = vmul.f32 %v4813_v9, %v6672_v15  ;;  %v3905_v21 = vsel %vm601_vm3, %v3847_v30, 0.0 }
 0xbe1   :  { %v3902_v3 = vsel %vm601_vm3, %v3846_v42, 0.0 }
 0xbe3   :  { %3882 = vadd.xlane.f32.xlu1 %v3881_v63  ;;  %3879 = vadd.xlane.f32.xlu0 %v3878_v51  ;;  %v3862_v63 = vmul.f32 %v4815_v0, %v6672_v15  ;;  %v3953_v51 = vsel %vm601_vm3, %v3863_v18, 0.0 }
 0xbe5   :  { %v3950_v35 = vsel %vm601_vm3, %v3862_v63, 0.0 }
 0xbe7   :  { %3930 = vadd.xlane.f32.xlu1 %v3929_v62  ;;  %3927 = vadd.xlane.f32.xlu0 %v3926_v56  ;;  %v3848_v62 = vmul.f32 %v4817_v37, %v6672_v15  ;;  %v3911_v56 = vsel %vm601_vm3, %v3849_v53, 0.0 }
 0xbe9   :  { %v3908_v33 = vsel %vm601_vm3, %v3848_v62, 0.0 }
 0xbeb   :  { %3888 = vadd.xlane.f32.xlu1 %v3887_v14  ;;  %3885 = vadd.xlane.f32.xlu0 %v3884_v6  ;;  %v3864_v14 = vmul.f32 %v4819_v45, %v6672_v15  ;;  %v3959_v6 = vsel %vm601_vm3, %v3865_v17, 0.0 }
 0xbed   :  { %v3956_v2 = vsel %vm601_vm3, %v3864_v14, 0.0 }
 0xbef   :  { %3936 = vadd.xlane.f32.xlu1 %v3935_v27  ;;  %3933 = vadd.xlane.f32.xlu0 %v3932_v55 }
 0xbf3   :  { %3894 = vadd.xlane.f32.xlu1 %v3893_v31  ;;  %3891 = vadd.xlane.f32.xlu0 %v3890_v54 }
 0xbf7   :  { %3942 = vadd.xlane.f32.xlu1 %v3941_v50  ;;  %3939 = vadd.xlane.f32.xlu0 %v3938_v39 }
 0xbfb   :  { %3900 = vadd.xlane.f32.xlu1 %v3899_v61  ;;  %3897 = vadd.xlane.f32.xlu0 %v3896_v4 }
 0xbff   :  { %3948 = vadd.xlane.f32.xlu1 %v3947_v23  ;;  %3945 = vadd.xlane.f32.xlu0 %v3944_v7 }
 0xc03   :  { %3906 = vadd.xlane.f32.xlu1 %v3905_v21  ;;  %3903 = vadd.xlane.f32.xlu0 %v3902_v3 }
 0xc07   :  { %3954 = vadd.xlane.f32.xlu1 %v3953_v51  ;;  %3951 = vadd.xlane.f32.xlu0 %v3950_v35 }
 0xc0b   :  { %3912 = vadd.xlane.f32.xlu1 %v3911_v56  ;;  %3909 = vadd.xlane.f32.xlu0 %v3908_v33 }
 0xc0f   :  { %3960 = vadd.xlane.f32.xlu1 %v3959_v6  ;;  %3957 = vadd.xlane.f32.xlu0 %v3956_v2 }
 0xc1c   :  { %v3740_v47 = vpop.xlane.xlu1 %3739  ;;  %v3743_v34 = vpop.xlane.xlu0 %3742 }
 0xc1d   :  { %v3997_v40 = vrot.slane %v3740_v47, %v5070_v24  ;;  %v4001_v27 = vrot.slane %v3743_v34, %v5073_v26 }
 0xc1f   :  { %v4002_v55 = vsel %vm869_vm4, %v4001_v27, %v3997_v40 }
 0xc20   :  { %v3749_v5 = vpop.xlane.xlu1 %3748  ;;  %v3746_v25 = vpop.xlane.xlu0 %3745 }
 0xc21   :  { %v4010_v15 = vrot.slane %v3749_v5, %v5073_v26  ;;  %v4006_v43 = vrot.slane %v3746_v25, %v5070_v24 }
 0xc23   :  { %v4011_v46 = vsel %vm869_vm4, %v4010_v15, %v4006_v43 }
 0xc24   :  { %v4138_v13 = vsel %vm1006_vm5, %v4011_v46, %v4002_v55  ;;  %v3791_v31 = vpop.xlane.xlu1 %3790  ;;  %v3788_v54 = vpop.xlane.xlu0 %3787 }
 0xc25   :  { %v4073_v44 = vrot.slane %v3791_v31, %v5073_v26  ;;  %v4069_v41 = vrot.slane %v3788_v54, %v5070_v24 }
 0xc27   :  { %v4074_v1 = vsel %vm869_vm4, %v4073_v44, %v4069_v41 }
 0xc28   :  { %v3797_v38 = vpop.xlane.xlu1 %3796  ;;  %v3794_v50 = vpop.xlane.xlu0 %3793 }
 0xc29   :  { %v4082_v39 = vrot.slane %v3797_v38, %v5073_v26  ;;  %v4078_v22 = vrot.slane %v3794_v50, %v5070_v24 }
 0xc2b   :  { %v4083_v20 = vsel %vm869_vm4, %v4082_v39, %v4078_v22 }
 0xc2c   :  { %v4145_v49 = vsel %vm1006_vm5, %v4083_v20, %v4074_v1  ;;  %v3755_v60 = vpop.xlane.xlu1 %3754  ;;  %v3752_v61 = vpop.xlane.xlu0 %3751 }
 0xc2d   :  { %v4019_v4 = vrot.slane %v3755_v60, %v5073_v26  ;;  %v4015_v28 = vrot.slane %v3752_v61, %v5070_v24 }
 0xc2f   :  { %v4020_v36 = vsel %vm869_vm4, %v4019_v4, %v4015_v28 }
 0xc30   :  { %v4139_v59 = vsel %vm1008_vm6, %v4020_v36, %v4138_v13  ;;  %v3803_v19 = vpop.xlane.xlu1 %3802  ;;  %v3800_v23 = vpop.xlane.xlu0 %3799 }
 0xc31   :  { %v4091_v7 = vrot.slane %v3803_v19, %v5073_v26  ;;  %v4087_v10 = vrot.slane %v3800_v23, %v5070_v24 }
 0xc33   :  { %v4092_v30 = vsel %vm869_vm4, %v4091_v7, %v4087_v10 }
 0xc34   :  { %v4146_v9 = vsel %vm1008_vm6, %v4092_v30, %v4145_v49  ;;  %v3761_v42 = vpop.xlane.xlu1 %3760  ;;  %v3758_v21 = vpop.xlane.xlu0 %3757 }
 0xc35   :  { %v4028_v3 = vrot.slane %v3761_v42, %v5073_v26  ;;  %v4024_v16 = vrot.slane %v3758_v21, %v5070_v24 }
 0xc37   :  { %v4029_v18 = vsel %vm869_vm4, %v4028_v3, %v4024_v16 }
 0xc38   :  { %v4140_v0 = vsel %vm1010_vm7, %v4029_v18, %v4139_v59  ;;  %v3809_v63 = vpop.xlane.xlu1 %3808  ;;  %v3806_v51 = vpop.xlane.xlu0 %3805 }
 0xc39   :  { %v4100_v35 = vrot.slane %v3809_v63, %v5073_v26  ;;  %v4096_v58 = vrot.slane %v3806_v51, %v5070_v24 }
 0xc3b   :  { %v4101_v53 = vsel %vm869_vm4, %v4100_v35, %v4096_v58 }
 0xc3c   :  { %v4147_v37 = vsel %vm1010_vm7, %v4101_v53, %v4146_v9  ;;  %v3767_v62 = vpop.xlane.xlu1 %3766  ;;  %v3764_v56 = vpop.xlane.xlu0 %3763 }
 0xc3d   :  { %v4037_v33 = vrot.slane %v3767_v62, %v5073_v26  ;;  %v4033_v8 = vrot.slane %v3764_v56, %v5070_v24 }
 0xc3f   :  { %v4038_v17 = vsel %vm869_vm4, %v4037_v33, %v4033_v8 }
 0xc40   :  { %v4141_v45 = vsel %vm1012_vm8, %v4038_v17, %v4140_v0  ;;  %v3815_v14 = vpop.xlane.xlu1 %3814  ;;  %v3812_v6 = vpop.xlane.xlu0 %3811 }
 0xc41   :  { %v4109_v2 = vrot.slane %v3815_v14, %v5073_v26  ;;  %v4105_v47 = vrot.slane %v3812_v6, %v5070_v24 }
 0xc43   :  { %v4110_v34 = vsel %vm869_vm4, %v4109_v2, %v4105_v47 }
 0xc44   :  { %v4148_v40 = vsel %vm1012_vm8, %v4110_v34, %v4147_v37  ;;  %v3773_v27 = vpop.xlane.xlu1 %3772  ;;  %v3770_v55 = vpop.xlane.xlu0 %3769 }
 0xc45   :  { %v4046_v5 = vrot.slane %v3773_v27, %v5073_v26  ;;  %v4042_v25 = vrot.slane %v3770_v55, %v5070_v24 }
 0xc47   :  { %v4047_v15 = vsel %vm869_vm4, %v4046_v5, %v4042_v25 }
 0xc48   :  { %v4142_v43 = vsel %vm1014_vm9, %v4047_v15, %v4141_v45  ;;  %v3821_v46 = vpop.xlane.xlu1 %3820  ;;  %v3818_v13 = vpop.xlane.xlu0 %3817 }
 0xc49   :  { %v4118_v31 = vrot.slane %v3821_v46, %v5073_v26  ;;  %v4114_v54 = vrot.slane %v3818_v13, %v5070_v24 }
 0xc4b   :  { %v4119_v44 = vsel %vm869_vm4, %v4118_v31, %v4114_v54 }
 0xc4c   :  { %v4149_v41 = vsel %vm1014_vm9, %v4119_v44, %v4148_v40  ;;  %v3779_v1 = vpop.xlane.xlu1 %3778  ;;  %v3776_v38 = vpop.xlane.xlu0 %3775 }
 0xc4d   :  { %v4055_v50 = vrot.slane %v3779_v1, %v5073_v26  ;;  %v4051_v39 = vrot.slane %v3776_v38, %v5070_v24 }
 0xc4f   :  { %v4056_v22 = vsel %vm869_vm4, %v4055_v50, %v4051_v39 }
 0xc50   :  { %v4143_v20 = vsel %vm1016_vm10, %v4056_v22, %v4142_v43  ;;  %v3827_v49 = vpop.xlane.xlu1 %3826  ;;  %v3824_v60 = vpop.xlane.xlu0 %3823 }
 0xc51   :  { %v4127_v61 = vrot.slane %v3827_v49, %v5073_v26  ;;  %v4123_v4 = vrot.slane %v3824_v60, %v5070_v24 }
 0xc53   :  { %v4128_v28 = vsel %vm869_vm4, %v4127_v61, %v4123_v4 }
 0xc54   :  { %v6804_v36 = vsel %vm1016_vm10, %v4128_v28, %v4149_v41  ;;  %v3785_v59 = vpop.xlane.xlu1 %3784  ;;  %v3782_v19 = vpop.xlane.xlu0 %3781 }
 0xc55   :  { %v4064_v45 = vrot.slane %v3785_v59, %v5073_v26  ;;  %v4060_v14 = vrot.slane %v3782_v19, %v5070_v24 }
 0xc57   :  { %v4065_v47 = vsel %vm869_vm4, %v4064_v45, %v4060_v14 }
 0xc58   :  { %v3833_v23 = vpop.xlane.xlu1 %3832  ;;  %v3830_v7 = vpop.xlane.xlu0 %3829  ;;  %v4144_v31 = vsel %vm1018_vm11, %v4065_v47, %v4143_v20 }
 0xc59   :  { %v4136_v34 = vrot.slane %v3833_v23, %v5073_v26  ;;  %v4132_v40 = vrot.slane %v3830_v7, %v5070_v24 }
 0xc5b   :  { %v4137_v54 = vsel %vm869_vm4, %v4136_v34, %v4132_v40 }
 0xc5c   :  { %v3871_v10 = vpop.xlane.xlu1 %3870  ;;  %v3868_v30 = vpop.xlane.xlu0 %3867 }
 0xc5d   :  { %v4195_v15 = vrot.slane %v3871_v10, %v5073_v26  ;;  %v4191_v43 = vrot.slane %v3868_v30, %v5070_v24 }
 0xc5f   :  { %v4196_v20 = vsel %vm869_vm4, %v4195_v15, %v4191_v43  ;;  %v4154_v15 = vadd.f32 %v4144_v31, %v6592_v29 }
 0xc60   :  { %v3877_v9 = vpop.xlane.xlu1 %3876  ;;  %v3874_v42 = vpop.xlane.xlu0 %3873 }
 0xc61   :  { %v4204_v27 = vrot.slane %v3877_v9, %v5073_v26  ;;  %v4200_v55 = vrot.slane %v3874_v42, %v5070_v24 }
 0xc63   :  { %v4205_v44 = vsel %vm869_vm4, %v4204_v27, %v4200_v55 }
 0xc64   :  { %v3919_v21 = vpop.xlane.xlu1 %3918  ;;  %v3916_v3 = vpop.xlane.xlu0 %3915  ;;  %v4332_v10 = vsel %vm1006_vm5, %v4205_v44, %v4196_v20 }
 0xc65   :  { %v4267_v41 = vrot.slane %v3919_v21, %v5073_v26  ;;  %v4263_v1 = vrot.slane %v3916_v3, %v5070_v24 }
 0xc67   :  { %v4268_v30 = vsel %vm869_vm4, %v4267_v41, %v4263_v1  ;;  %v4151_v41 = vsel %vm1018_vm11, %v4137_v54, %v6804_v36 }
 0xc68   :  { %v3925_v16 = vpop.xlane.xlu1 %3924  ;;  %v3922_v18 = vpop.xlane.xlu0 %3921 }
 0xc69   :  { %v4276_v39 = vrot.slane %v3925_v16, %v5073_v26  ;;  %v4272_v22 = vrot.slane %v3922_v18, %v5070_v24 }
 0xc6b   :  { %v4277_v16 = vsel %vm869_vm4, %v4276_v39, %v4272_v22 }
 0xc6c   :  { %v3883_v0 = vpop.xlane.xlu1 %3882  ;;  %v3880_v63 = vpop.xlane.xlu0 %3879  ;;  %v4339_v55 = vsel %vm1006_vm5, %v4277_v16, %v4268_v30 }
 0xc6d   :  { %v4213_v46 = vrot.slane %v3883_v0, %v5073_v26  ;;  %v4209_v13 = vrot.slane %v3880_v63, %v5070_v24 }
 0xc6f   :  { %v4214_v61 = vsel %vm869_vm4, %v4213_v46, %v4209_v13 }
 0xc70   :  { %v3931_v51 = vpop.xlane.xlu1 %3930  ;;  %v3928_v35 = vpop.xlane.xlu0 %3927 }
 0xc71   :  { %v4285_v59 = vrot.slane %v3931_v51, %v5073_v26  ;;  %v4281_v19 = vrot.slane %v3928_v35, %v5070_v24  ;;  %v4333_v51 = vsel %vm1008_vm6, %v4214_v61, %v4332_v10 }
 0xc74   :  { %v3889_v58 = vpop.xlane.xlu1 %3888  ;;  %v3886_v53 = vpop.xlane.xlu0 %3885 }
 0xc75   :  { %v4222_v49 = vrot.slane %v3889_v58, %v5073_v26  ;;  %v4218_v60 = vrot.slane %v3886_v53, %v5070_v24 }
 0xc77   :  { %v4223_v18 = vsel %vm869_vm4, %v4222_v49, %v4218_v60 }
 0xc78   :  { %v6806_v37 = vpop.xlane.xlu1 %3936  ;;  %v6808_v62 = vpop.xlane.xlu0 %3933 }
 0xc79   :  { %v4294_v0 = vrot.slane %v6806_v37, %v5073_v26  ;;  %v4290_v63 = vrot.slane %v6808_v62, %v5070_v24  ;;  %v4334_v62 = vsel %vm1010_vm7, %v4223_v18, %v4333_v51 }
 0xc7c   :  { %v3895_v56 = vpop.xlane.xlu1 %3894  ;;  %v3892_v33 = vpop.xlane.xlu0 %3891 }
 0xc7d   :  { %v4231_v4 = vrot.slane %v3895_v56, %v5073_v26  ;;  %v4227_v28 = vrot.slane %v3892_v33, %v5070_v24  ;;  %v4286_v56 = vsel %vm869_vm4, %v4285_v59, %v4281_v19  ;;  %v4820_v59 = vld [vmem:[#allocation10] sm:$0xff] }
 0xc7e   :  { %v4340_v43 = vsel %vm1008_vm6, %v4286_v56, %v4339_v55 }
 0xc7f   :  { %v4232_v35 = vsel %vm869_vm4, %v4231_v4, %v4227_v28  ;;  %v4155_v4 = vadd.f32 %v4151_v41, %v6597_v32 }
 0xc80   :  { %v6810_v8 = vpop.xlane.xlu1 %3942  ;;  %v6812_v17 = vpop.xlane.xlu0 %3939  ;;  %v4335_v34 = vsel %vm1012_vm8, %v4232_v35, %v4334_v62  ;;  %v7065_v35 = vld [vmem:[#allocation20_spill] sm:$0xff] }
 0xc81   :  { %v4303_v58 = vrot.slane %v6810_v8, %v5073_v26  ;;  %v4299_v53 = vrot.slane %v6812_v17, %v5070_v24  ;;  %v4295_v17 = vsel %vm869_vm4, %v4294_v0, %v4290_v63 }
 0xc82   :  { %v4341_v1 = vsel %vm1010_vm7, %v4295_v17, %v4340_v43 }
 0xc84   :  { %v3901_v6 = vpop.xlane.xlu1 %3900  ;;  %v3898_v2 = vpop.xlane.xlu0 %3897 }
 0xc85   :  { %v4240_v23 = vrot.slane %v3901_v6, %v5073_v26  ;;  %v4236_v7 = vrot.slane %v3898_v2, %v5070_v24 }
 0xc87   :  { %v4241_v33 = vsel %vm869_vm4, %v4240_v23, %v4236_v7 }
 0xc88   :  { %v3949_v5 = vpop.xlane.xlu1 %3948  ;;  %v3946_v25 = vpop.xlane.xlu0 %3945 }
 0xc89   :  { %v4312_v45 = vrot.slane %v3949_v5, %v5073_v26  ;;  %v4308_v37 = vrot.slane %v3946_v25, %v5070_v24  ;;  %v4304_v5 = vsel %vm869_vm4, %v4303_v58, %v4299_v53  ;;  %v4336_v25 = vsel %vm1014_vm9, %v4241_v33, %v4335_v34  ;;  %v7066_v58 = vld [vmem:[#allocation21_spill] sm:$0xff] }
 0xc8a   :  { %v4342_v29 = vsel %vm1012_vm8, %v4304_v5, %v4341_v1 }
 0xc8b   :  { %v4313_v46 = vsel %vm869_vm4, %v4312_v45, %v4308_v37 }
 0xc8c   :  { %v3907_v38 = vpop.xlane.xlu1 %3906  ;;  %v3904_v50 = vpop.xlane.xlu0 %3903  ;;  %v4343_v20 = vsel %vm1014_vm9, %v4313_v46, %v4342_v29 }
 0xc8d   :  { %v4249_v9 = vrot.slane %v3907_v38, %v5073_v26  ;;  %v4245_v42 = vrot.slane %v3904_v50, %v5070_v24 }
 0xc8f   :  { %v4250_v14 = vsel %vm869_vm4, %v4249_v9, %v4245_v42 }
 0xc90   :  { %v3955_v21 = vpop.xlane.xlu1 %3954  ;;  %v3952_v3 = vpop.xlane.xlu0 %3951  ;;  %v4337_v13 = vsel %vm1016_vm10, %v4250_v14, %v4336_v25 }
 0xc91   :  { %v4321_v6 = vrot.slane %v3955_v21, %v5073_v26  ;;  %v4317_v2 = vrot.slane %v3952_v3, %v5070_v24 }
 0xc93   :  { %v4322_v38 = vsel %vm869_vm4, %v4321_v6, %v4317_v2 }
 0xc94   :  { %v3913_v8 = vpop.xlane.xlu1 %3912  ;;  %v3910_v47 = vpop.xlane.xlu0 %3909  ;;  %v4344_v61 = vsel %vm1016_vm10, %v4322_v38, %v4343_v20 }
 0xc95   :  { %v4258_v40 = vrot.slane %v3913_v8, %v5073_v26  ;;  %v4254_v27 = vrot.slane %v3910_v47, %v5070_v24 }
 0xc97   :  { %v4259_v44 = vsel %vm869_vm4, %v4258_v40, %v4254_v27 }
 0xc98   :  { %v3961_v50 = vpop.xlane.xlu1 %3960  ;;  %v3958_v39 = vpop.xlane.xlu0 %3957  ;;  %v4338_v22 = vsel %vm1018_vm11, %v4259_v44, %v4337_v13 }
 0xc99   :  { %v4330_v31 = vrot.slane %v3961_v50, %v5073_v26  ;;  %v4326_v49 = vrot.slane %v3958_v39, %v5070_v24  ;;  %v4348_v60 = vadd.f32 %v4338_v22, %v4154_v15  ;;  %v4821_v24 = vld [vmem:[#allocation10 + $0x8] sm:$0xff] }
 0xc9b   :  { %v4331_v36 = vsel %vm869_vm4, %v4330_v31, %v4326_v49  ;;  %v4350_v54 = vmul.f32 0.20412415, %v4348_v60 }
 0xc9c   :  { %v4345_v28 = vsel %vm1018_vm11, %v4331_v36, %v4344_v61 }
 0xc9d   :  { %v4352_v19 = vadd.f32 %v4820_v59, %v4350_v54  ;;  %v4349_v23 = vadd.f32 %v4345_v28, %v4155_v4 }
 0xc9f   :  { %v4354_v7 = vsel %vm601_vm3, %v4352_v19, -inf  ;;  %v4351_v26 = vmul.f32 0.20412415, %v4349_v23 }
 0xca0   :  { %4355 = vmax.xlane.f32.xlu0 %v4354_v7 }
 0xca1   :  { %v4353_v10 = vadd.f32 %v4821_v24, %v4351_v26 }
 0xca3   :  { %v4357_v30 = vsel %vm601_vm3, %v4353_v10, -inf }
 0xca4   :  { %4358 = vmax.xlane.f32.xlu1 %v4357_v30 }
 0xd29   :  { %v4356_v9 = vpop.xlane.xlu0 %4355 }
 0xd2a   :  { %v4360_v42 = vsub.f32 %v4352_v19, %v4356_v9 }
 0xd2c   :  { %v4362_v21 = vmul.f32 1.442695, %v4360_v42 }
 0xd2d   :  { %v4359_v3 = vpop.xlane.xlu1 %4358 }
 0xd2e   :  { %4648 = vpow2.f32 %v4362_v21  ;;  %v4361_v32 = vsub.f32 %v4353_v10, %v4359_v3 }
 0xd30   :  { %v4364_v16 = vmul.f32 1.442695, %v4361_v32 }
 0xd32   :  { %4650 = vpow2.f32 %v4364_v16 }
 0xd3b   :  { %v4649_v18 = vpop.eup %4648 }
 0xd3c   :  { %v4366_v0 = vsel %vm601_vm3, %v4649_v18, 0.0 }
 0xd3d   :  { %4367 = vadd.xlane.f32.xlu0 %v4366_v0 }
 0xd3f   :  { %v4651_v63 = vpop.eup %4650 }
 0xd40   :  { %v4369_v51 = vsel %vm601_vm3, %v4651_v63, 0.0 }
 0xd41   :  { %4370 = vadd.xlane.f32.xlu1 %v4369_v51 }
 0xd52   :  { %2339 = vrot.lane.b32.xlu1 %v7065_v35, %s4956_s10 }
 0xd53   :  { %4379 = vrot.lane.b32.xlu0 %v7059_v11, %s4971_s7 }
 0xd56   :  { %2341 = vrot.lane.b32.xlu1 %v7066_v58, %s4956_s10 }
 0xd57   :  { %3383 = vrot.lane.b32.xlu0 %v6664_v52, %s4972_s8 }
 0xd5a   :  { %3385 = vrot.lane.b32.xlu1 %v6668_v57, %s4972_s8 }
 0xdc6   :  { %v4368_v53 = vpop.xlane.xlu0 %4367 }
 0xdc7   :  { %4652 = vrcp.f32 %v4368_v53 }
 0xdca   :  { %v4371_v56 = vpop.xlane.xlu1 %4370  ;;  %v4380_v33 = vpop.permute.xlu0 %4379 }
 0xdcb   :  { %4654 = vrcp.f32 %v4371_v56  ;;  %4590 = vmatpush3.bf16.msra.mxu0 %v4380_v33 }
 0xdce   :  { %v2340_v45 = vpop.permute.xlu1 %2339  ;;  %v3384_v37 = vpop.permute.xlu0 %3383 }
 0xdcf   :  { %2345 = vst.msk [vmem:[#allocation11] sm:$0xff] %vm869_vm4, %v2340_v45 }
 0xdd0   :  { %3390 = vst.msk [vmem:[#allocation11] sm:$0xff] %vm3389_vm14, %v3384_v37 }
 0xdd2   :  { %v2342_v11 = vpop.permute.xlu1 %2341 }
 0xdd3   :  { %2346 = vst.msk [vmem:[#allocation11 + $0x8] sm:$0xff] %vm869_vm4, %v2342_v11 }
 0xdd4   :  { %v4653_v62 = vpop.eup %4652 }
 0xdd5   :  { %v4374_v52 = vmul.f32 %v4653_v62, %v4649_v18 }
 0xdd6   :  { %v3386_v14 = vpop.permute.xlu1 %3385 }
 0xdd7   :  { %3391 = vst.msk [vmem:[#allocation11 + $0x8] sm:$0xff] %vm3389_vm14, %v3386_v14  ;;  %v4376_v2 = vsel %vm190_vm12, 0.0, %v4374_v52 }
 0xdd8   :  { %v4655_v57 = vpop.eup %4654 }
 0xdd9   :  { %v4375_v6 = vmul.f32 %v4655_v57, %v4651_v63 }
 0xddb   :  { %v4377_v8 = vsel %vm191_vm13, 0.0, %v4375_v6 }
 0xddc   :  { %v4378_v47 = vpack.c.bf16 %v4377_v8, %v4376_v2 }
 0xdde   :  { %4592 = vmatmul.mubr.msk.bf16.vlgmr.msra.gmra.mxu0 %vm601_vm3, %v4378_v47 }
 0xe9e   :  { %v4419_v17 = vpop.f32.mrf.mxu0 }
 0xe9f   :  { %4428 = vrot.lane.b32.xlu0 %v4419_v17, %s4973_s11 }
 0xea0   :  { %v4593_v34 = vpop.f32.mrf.mxu0 }
 0xea2   :  { %v4422_v40 = vpop.f32.mrf.mxu0 }
 0xea3   :  { %4430 = vrot.lane.b32.xlu1 %v4422_v40, %s4973_s11 }
 0xea4   :  { %v4594_v27 = vpop.f32.mrf.mxu0 }
 0xf11   :  { %v4429_v55 = vpop.permute.xlu0 %4428 }
 0xf12   :  { %4435 = vst.msk [vmem:[#allocation11] sm:$0xff] %vm4434_vm15, %v4429_v55 }
 0xf15   :  { %v4431_v12 = vpop.permute.xlu1 %4430 }
 0xf16   :  { %4436 = vst.msk [vmem:[#allocation11 + $0x8] sm:$0xff] %vm4434_vm15, %v4431_v12 }
 0xf17   :  { %4933 = shalt.err (!%p4930_p1)
}
 0xf18   :  { %4448 = dma.vmem_to_hbm [thread:$0]  %s4443_s1, 256, %s6921_s6, [#allocation4], %s4955_s9, %s4955_s9, %s4956_s10  }
 0xf19   :  { %4948 = dma.done.wait [#allocation4], 256  }
 0xf1a   :  { %4949 = vsyncadd [#allocation4], 4294967040 }
 0xf1b   :  { %4452 = vsyncpa [#allocation3], 1 }
 0xf1c   :  { %4453 = vsyncpa [#allocation6], 1 }
 0xf1d   :  { %4454 = vsyncpa [#allocation9], 1 }
 0xf1e   :  { %4455 = vsyncpa [#allocation4], 1 }

</bundles_post_ra>
